<compile_context>
chip_gen: v7x
topology: tpu7x:2x2x1
jax: 0.10.0
libtpu: 0.0.40
codegen_flags: <defaults>
</compile_context>

<pallas_src>
import math

import jax
import jax.numpy as jnp
from jax import lax
from jax.experimental import pallas as pl
from jax.experimental.pallas import tpu as pltpu

HIDDEN = 128
EMB = 8
IN_FEATS = 29
HEAD_SIZES = (6, 4, 4, 4, 4, 7, 49, 1)    # 7 policy heads + value
TOTAL_OUT = sum(HEAD_SIZES)               # 79
OUT_PAD = 128                             # lane-dense fused head output
SUBLANE = 8


# -----------------------------------------------------------------------------------
# Kernel
# -----------------------------------------------------------------------------------
def actor_critic_kernel(
    x_ref,            # (T*B, 29)  f32   time-major flattened input
    w_comb_ref,       # (29, 512)  f32   w_emb @ w_ih_enc, gate-prescaled
    b_comb_ref,       # (1, 512)   f32   b_emb @ w_ih_enc + b_enc, gate-prescaled
    w_hh_e_ref,       # (128, 512) bf16  encoder hidden->gates, gate-prescaled
    b_d_ref,          # (1, 512)   f32   decoder bias (b_ih + b_hh), gate-prescaled
    b_heads_ref,      # (1, 128)   f32   fused head bias, zero-padded to 128 lanes
    w_hh_d_hbm,       # (128, 512) bf16  HBM: decoder hidden->gates (step 0 only)
    w_dec_sum_hbm,    # (128, 512) bf16  HBM: w_ih_dec + w_hh_dec   (steps >= 1)
    w_heads_hbm,      # (128, 128) bf16  HBM: fused policy + value heads
    out_ref,          # (B, 128)   f32
    gin_ref,          # scratch (T*B, 512) f32: precomputed encoder input-gate slab
    w_hh_d_vmem,      # scratch (128, 512) bf16
    w_dec_sum_vmem,   # scratch (128, 512) bf16
    w_heads_vmem,     # scratch (128, 128) bf16
    dma_sem,          # scratch DMA semaphores (3,)
):
    B = out_ref.shape[0]
    T = x_ref.shape[0] // B
    H = HIDDEN
    G = 4 * H

    # ---- hide decoder / head weight DMAs under the encoder compute -------------
    cp_whd = pltpu.make_async_copy(w_hh_d_hbm, w_hh_d_vmem, dma_sem.at[0])
    cp_wds = pltpu.make_async_copy(w_dec_sum_hbm, w_dec_sum_vmem, dma_sem.at[1])
    cp_wh = pltpu.make_async_copy(w_heads_hbm, w_heads_vmem, dma_sem.at[2])
    cp_whd.start()
    cp_wds.start()
    cp_wh.start()

    # ---- all encoder input-gate contributions in one well-shaped matmul --------
    gin_ref[...] = (
        jnp.dot(x_ref[...], w_comb_ref[...], preferred_element_type=jnp.float32)
        + b_comb_ref[...]
    )

    def split_gates(gates):
        # i/f/o gate columns were pre-scaled by 0.5 offline, so one EUP tanh over
        # the whole (B, 4H) slab covers all four nonlinearities:
        #   sigmoid(x) = 0.5 * (tanh(0.5 x) + 1),  tanh(x) for the g columns.
        t = jnp.tanh(gates)
        i = 0.5 * (t[:, 0 * H:1 * H] + 1.0)
        f = 0.5 * (t[:, 1 * H:2 * H] + 1.0)
        g = t[:, 2 * H:3 * H]
        o = 0.5 * (t[:, 3 * H:4 * H] + 1.0)
        return i, f, g, o

    def gates_to_hc(gates, c):
        i, f, g, o = split_gates(gates)
        c_new = f * c + i * g
        h_new = o * jnp.tanh(c_new)
        return h_new, c_new

    # ---- encoder LSTM: only h @ w_hh_e on the serial path ----------------------
    # step 0 peeled: h0 = c0 = 0  =>  gates = gin[0:B], c1 = i*g (no matmul needed).
    i0, _f0, g0, o0 = split_gates(gin_ref[pl.ds(0, B), :])
    c = i0 * g0
    h = o0 * jnp.tanh(c)

    def enc_body(t, carry):
        h, c = carry
        row = pl.multiple_of(t * B, B)
        # Weight operand streamed from VMEM at the dot (no multi-vreg hoist).
        gates = gin_ref[pl.ds(row, B), :] + jnp.dot(
            h.astype(jnp.bfloat16), w_hh_e_ref[...],
            preferred_element_type=jnp.float32,
        )
        return gates_to_hc(gates, c)

    h, c = lax.fori_loop(1, T, enc_body, (h, c), unroll=True)

    # ---- decoder LSTM -----------------------------------------------------------
    b_d = jnp.broadcast_to(b_d_ref[...], (B, G))   # hoisted: broadcast exactly once

    # step 0: decoder input is zero -> gates = h_enc @ w_hh_d + b_d
    cp_whd.wait()
    gates0 = (
        jnp.dot(h.astype(jnp.bfloat16), w_hh_d_vmem[...],
                preferred_element_type=jnp.float32)
        + b_d
    )
    h, c = gates_to_hc(gates0, c)

    # steps 1..T-1: decoder input == previous decoder output == previous hidden,
    # so gates = h @ (w_ih_d + w_hh_d) + b_d exactly (single MXU matmul per step).
    cp_wds.wait()

    def dec_body(t, carry):
        h, c = carry
        gates = (
            jnp.dot(h.astype(jnp.bfloat16), w_dec_sum_vmem[...],
                    preferred_element_type=jnp.float32)
            + b_d
        )
        return gates_to_hc(gates, c)

    h, c = lax.fori_loop(1, T, dec_body, (h, c), unroll=True)

    # ---- fused, lane-dense policy / value heads ---------------------------------
    cp_wh.wait()
    logits = (
        jnp.dot(h.astype(jnp.bfloat16), w_heads_vmem[...],
                preferred_element_type=jnp.float32)
        + b_heads_ref[...]
    )
    out_ref[...] = logits.astype(out_ref.dtype)


# -----------------------------------------------------------------------------------
# Parameter construction / preparation
# -----------------------------------------------------------------------------------
def init_params(key):
    """Deterministic synthetic params mirroring the PyTorch module's shapes."""
    keys = jax.random.split(key, 16)

    def linear(k, fan_in, fan_out, std):
        w = jax.random.normal(k, (fan_in, fan_out), jnp.float32) * std
        b = jnp.zeros((1, fan_out), jnp.float32)
        return w, b

    def lstm(k, in_dim, hid):
        k1, k2, k3, k4 = jax.random.split(k, 4)
        bound = 1.0 / math.sqrt(hid)
        w_ih = jax.random.uniform(k1, (in_dim, 4 * hid), jnp.float32, -bound, bound)
        w_hh = jax.random.uniform(k2, (hid, 4 * hid), jnp.float32, -bound, bound)
        b_ih = jax.random.uniform(k3, (1, 4 * hid), jnp.float32, -bound, bound)
        b_hh = jax.random.uniform(k4, (1, 4 * hid), jnp.float32, -bound, bound)
        return w_ih, w_hh, b_ih + b_hh

    w_emb, b_emb = linear(keys[0], IN_FEATS, EMB, 0.01)
    w_ih_e, w_hh_e, b_e = lstm(keys[1], EMB, HIDDEN)
    w_ih_d, w_hh_d, b_d = lstm(keys[2], HIDDEN, HIDDEN)

    head_ws, head_bs = [], []
    head_stds = (0.01, 0.01, 0.01, 0.01, 0.01, 0.01, 0.01, 1.0)  # policies 0.01, value 1
    for i, (sz, std) in enumerate(zip(HEAD_SIZES, head_stds)):
        w, b = linear(keys[3 + i], HIDDEN, sz, std)
        head_ws.append(w)
        head_bs.append(b)
    w_heads = jnp.concatenate(head_ws, axis=1)   # (128, 79)
    b_heads = jnp.concatenate(head_bs, axis=1)   # (1, 79)

    return (w_emb, b_emb, w_ih_e, w_hh_e, b_e, w_ih_d, w_hh_d, b_d, w_heads, b_heads)


def _gate_prescale(a):
    """Scale the i/f/o gate columns by 0.5 (PyTorch gate order [i, f, g, o]).

    With this fold, sigmoid(x) == 0.5*(tanh(scaled_x)+1) and tanh(x_g) == tanh(scaled_x_g),
    so a single tanh over the whole 4H-wide gate slab yields all four nonlinearities.
    The 0.5 scale is a power of two, so applying it before the bf16 cast is exact.
    """
    scale = jnp.concatenate([
        jnp.full((HIDDEN,), 0.5, jnp.float32),
        jnp.full((HIDDEN,), 0.5, jnp.float32),
        jnp.ones((HIDDEN,), jnp.float32),
        jnp.full((HIDDEN,), 0.5, jnp.float32),
    ])
    return a * scale


def _prepare_kernel_params(params):
    (w_emb, b_emb, w_ih_e, w_hh_e, b_e, w_ih_d, w_hh_d, b_d, w_heads, b_heads) = params

    # Fold the embedding Linear into the encoder input projection (exact algebra).
    w_comb = _gate_prescale(jnp.dot(w_emb, w_ih_e))              # (29, 512)
    b_comb = _gate_prescale(jnp.dot(b_emb, w_ih_e) + b_e)        # (1, 512)

    # Recurrent weights: gate prescale folded, bf16 MXU operands (f32 accumulation).
    w_hh_e_b = _gate_prescale(w_hh_e).astype(jnp.bfloat16)
    w_hh_d_b = _gate_prescale(w_hh_d).astype(jnp.bfloat16)
    # Decoder steps >= 1 feed the previous hidden back as input -> fold w_ih + w_hh.
    w_dec_sum_b = _gate_prescale(w_ih_d + w_hh_d).astype(jnp.bfloat16)
    b_d_s = _gate_prescale(b_d)

    # Lane-dense heads: zero-pad 79 -> 128 output columns; bf16 MXU operand.
    w_heads_b = (jnp.zeros((HIDDEN, OUT_PAD), jnp.float32)
                 .at[:, :TOTAL_OUT].set(w_heads)).astype(jnp.bfloat16)
    b_heads_p = jnp.zeros((1, OUT_PAD), jnp.float32).at[:, :TOTAL_OUT].set(b_heads)

    vmem_params = (w_comb, b_comb, w_hh_e_b, b_d_s, b_heads_p)
    hbm_params = (w_hh_d_b, w_dec_sum_b, w_heads_b)   # DMA'd under the encoder
    return vmem_params, hbm_params


def _preprocess(x, b_pad):
    """Batch-first (B,T,F) -> zero-padded, time-major, flattened (T*B_pad, F) f32."""
    B, T, F = x.shape
    x_tm = jnp.zeros((T, b_pad, F), jnp.float32).at[:, :B, :].set(
        jnp.swapaxes(x, 0, 1).astype(jnp.float32))
    return x_tm.reshape(T * b_pad, F)


# -----------------------------------------------------------------------------------
# Wrapper
# -----------------------------------------------------------------------------------
def actor_critic_forward(x, params):
    """x: (B, T, 29) batch-first, like the PyTorch module.

    Returns ([7 policy-head logits], value). Logits are the MaskedCategorical inputs.
    """
    B, T, F = x.shape
    assert F == IN_FEATS

    b_pad = ((B + SUBLANE - 1) // SUBLANE) * SUBLANE
    x_tm = _preprocess(x, b_pad)

    vmem_params, hbm_params = _prepare_kernel_params(params)

    out = pl.pallas_call(
        actor_critic_kernel,
        out_shape=jax.ShapeDtypeStruct((b_pad, OUT_PAD), jnp.float32),
        in_specs=(
            [pl.BlockSpec(memory_space=pltpu.MemorySpace.VMEM)] * (1 + len(vmem_params))
            + [pl.BlockSpec(memory_space=pl.ANY)] * len(hbm_params)
        ),
        out_specs=pl.BlockSpec(memory_space=pltpu.MemorySpace.VMEM),
        scratch_shapes=[
            pltpu.VMEM((T * b_pad, 4 * HIDDEN), jnp.float32),      # gin slab
            pltpu.VMEM((HIDDEN, 4 * HIDDEN), jnp.bfloat16),        # w_hh_d landing buf
            pltpu.VMEM((HIDDEN, 4 * HIDDEN), jnp.bfloat16),        # w_dec_sum landing buf
            pltpu.VMEM((HIDDEN, OUT_PAD), jnp.bfloat16),           # w_heads landing buf
            pltpu.SemaphoreType.DMA((3,)),
        ],
    )(x_tm, *vmem_params, *hbm_params)

    # Drop padded rows/lanes, then split the fused output into per-head logits + value.
    out = out[:B, :TOTAL_OUT]
    heads = []
    off = 0
    for sz in HEAD_SIZES:
        heads.append(out[:, off:off + sz])
        off += sz
    return heads[:-1], heads[-1]


def _folded_reference(x_tm, vmem_params, hbm_params, B, T):
    """Plain-JAX replica of the kernel math (same prepared params) for verification."""
    w_comb, b_comb, w_hh_e_b, b_d, b_heads_p = vmem_params
    w_hh_d_b, w_dec_sum_b, w_heads_b = hbm_params
    H = HIDDEN

    def split_gates(gates):
        t = jnp.tanh(gates)
        return (0.5 * (t[:, :H] + 1.0), 0.5 * (t[:, H:2 * H] + 1.0),
                t[:, 2 * H:3 * H], 0.5 * (t[:, 3 * H:] + 1.0))

    def step(gates, c):
        i, f, g, o = split_gates(gates)
        c = f * c + i * g
        return o * jnp.tanh(c), c

    gin = jnp.dot(x_tm, w_comb, preferred_element_type=jnp.float32) + b_comb

    i, _, g, o = split_gates(gin[:B])
    c = i * g
    h = o * jnp.tanh(c)
    for t in range(1, T):
        gates = gin[t * B:(t + 1) * B] + jnp.dot(
            h.astype(jnp.bfloat16), w_hh_e_b, preferred_element_type=jnp.float32)
        h, c = step(gates, c)

    gates = jnp.dot(h.astype(jnp.bfloat16), w_hh_d_b,
                    preferred_element_type=jnp.float32) + b_d
    h, c = step(gates, c)
    for t in range(1, T):
        gates = jnp.dot(h.astype(jnp.bfloat16), w_dec_sum_b,
                        preferred_element_type=jnp.float32) + b_d
        h, c = step(gates, c)

    return jnp.dot(h.astype(jnp.bfloat16), w_heads_b,
                   preferred_element_type=jnp.float32) + b_heads_p


# -----------------------------------------------------------------------------------
# Demo / self-check
# -----------------------------------------------------------------------------------
if __name__ == "__main__":
    key = jax.random.PRNGKey(0)
    k_param, k_x = jax.random.split(key)

    B, T = 2, 8
    x = jax.random.normal(k_x, (B, T, IN_FEATS), jnp.float32)
    params = init_params(k_param)

    policy_logits, value = jax.jit(actor_critic_forward)(x, params)

    jax.block_until_ready(value)
    for lg in policy_logits:
        jax.block_until_ready(lg)

    assert [lg.shape for lg in policy_logits] == [(B, s) for s in HEAD_SIZES[:-1]]
    assert value.shape == (B, 1)

    # Verify the Pallas kernel against a plain-JAX replica of the same prepared math.
    b_pad = ((B + SUBLANE - 1) // SUBLANE) * SUBLANE
    x_tm = _preprocess(x, b_pad)
    vmem_params, hbm_params = _prepare_kernel_params(params)
    ref = _folded_reference(x_tm, vmem_params, hbm_params, b_pad, T)[:B, :TOTAL_OUT]
    got = jnp.concatenate(list(policy_logits) + [value], axis=1)
    assert bool(jnp.all(jnp.isfinite(got)))
    max_err = float(jnp.max(jnp.abs(got - ref)))
    assert bool(jnp.allclose(got, ref, atol=1e-2, rtol=1e-2)), max_err

    print("KERNEL_OK")
</pallas_src>

<mosaic_0001>
module attributes {stable_mosaic.version = 11 : i64} {
  func.func @actor_critic_kernel(%arg0: memref<64x29xf32, #tpu.memory_space<vmem>>, %arg1: memref<29x512xf32, #tpu.memory_space<vmem>>, %arg2: memref<1x512xf32, #tpu.memory_space<vmem>>, %arg3: memref<128x512xbf16, #tpu.memory_space<vmem>>, %arg4: memref<1x512xf32, #tpu.memory_space<vmem>>, %arg5: memref<1x128xf32, #tpu.memory_space<vmem>>, %arg6: memref<128x512xbf16, #tpu.memory_space<any>>, %arg7: memref<128x512xbf16, #tpu.memory_space<any>>, %arg8: memref<128x128xbf16, #tpu.memory_space<any>>, %arg9: memref<8x128xf32, #tpu.memory_space<vmem>>, %arg10: memref<64x512xf32, #tpu.memory_space<vmem>>, %arg11: memref<128x512xbf16, #tpu.memory_space<vmem>>, %arg12: memref<128x512xbf16, #tpu.memory_space<vmem>>, %arg13: memref<128x128xbf16, #tpu.memory_space<vmem>>, %arg14: memref<3x!tpu.dma_semaphore, #tpu.memory_space<semaphore_mem>>) attributes {dimension_semantics = [], scalar_prefetch = 0 : i64, scratch_operands = 5 : i64, tpu.core_type = #tpu.core_type<tc>} {
    %c0_i32 = arith.constant 0 : i32
    %0 = tpu.memref_slice %arg14[%c0_i32] : memref<3x!tpu.dma_semaphore, #tpu.memory_space<semaphore_mem>> -> memref<1x!tpu.dma_semaphore, #tpu.memory_space<semaphore_mem>>
    %1 = tpu.memref_squeeze %0 : memref<1x!tpu.dma_semaphore, #tpu.memory_space<semaphore_mem>> -> memref<!tpu.dma_semaphore, #tpu.memory_space<semaphore_mem>>
    tpu.enqueue_dma source(%arg6 : memref<128x512xbf16, #tpu.memory_space<any>>) target(%arg11 : memref<128x512xbf16, #tpu.memory_space<vmem>>) target_semaphore(%1 : memref<!tpu.dma_semaphore, #tpu.memory_space<semaphore_mem>>)
    %c1_i32 = arith.constant 1 : i32
    %2 = tpu.memref_slice %arg14[%c1_i32] : memref<3x!tpu.dma_semaphore, #tpu.memory_space<semaphore_mem>> -> memref<1x!tpu.dma_semaphore, #tpu.memory_space<semaphore_mem>>
    %3 = tpu.memref_squeeze %2 : memref<1x!tpu.dma_semaphore, #tpu.memory_space<semaphore_mem>> -> memref<!tpu.dma_semaphore, #tpu.memory_space<semaphore_mem>>
    tpu.enqueue_dma source(%arg7 : memref<128x512xbf16, #tpu.memory_space<any>>) target(%arg12 : memref<128x512xbf16, #tpu.memory_space<vmem>>) target_semaphore(%3 : memref<!tpu.dma_semaphore, #tpu.memory_space<semaphore_mem>>)
    %c2_i32 = arith.constant 2 : i32
    %4 = tpu.memref_slice %arg14[%c2_i32] : memref<3x!tpu.dma_semaphore, #tpu.memory_space<semaphore_mem>> -> memref<1x!tpu.dma_semaphore, #tpu.memory_space<semaphore_mem>>
    %5 = tpu.memref_squeeze %4 : memref<1x!tpu.dma_semaphore, #tpu.memory_space<semaphore_mem>> -> memref<!tpu.dma_semaphore, #tpu.memory_space<semaphore_mem>>
    tpu.enqueue_dma source(%arg8 : memref<128x128xbf16, #tpu.memory_space<any>>) target(%arg13 : memref<128x128xbf16, #tpu.memory_space<vmem>>) target_semaphore(%5 : memref<!tpu.dma_semaphore, #tpu.memory_space<semaphore_mem>>)
    %c0 = arith.constant 0 : index
    %c0_0 = arith.constant 0 : index
    %6 = vector.load %arg0[%c0, %c0_0] : memref<64x29xf32, #tpu.memory_space<vmem>>, vector<64x29xf32>
    %c0_1 = arith.constant 0 : index
    %c0_2 = arith.constant 0 : index
    %7 = vector.load %arg1[%c0_1, %c0_2] : memref<29x512xf32, #tpu.memory_space<vmem>>, vector<29x512xf32>
    %cst = arith.constant dense<0.000000e+00> : vector<64x512xf32>
    %8 = tpu.matmul %6, %7, %cst {dimension_numbers = #tpu.dot_dimension_numbers<[1], [0], [0], [1], [0, 0, 1, 1], [], []>} : vector<64x29xf32>, vector<29x512xf32>, vector<64x512xf32> -> vector<64x512xf32>
    %c0_3 = arith.constant 0 : index
    %c0_4 = arith.constant 0 : index
    %9 = vector.load %arg2[%c0_3, %c0_4] : memref<1x512xf32, #tpu.memory_space<vmem>>, vector<1x512xf32>
    %10 = vector.broadcast %9 : vector<1x512xf32> to vector<64x512xf32>
    %11 = arith.addf %8, %10 : vector<64x512xf32>
    %c0_5 = arith.constant 0 : index
    %c0_6 = arith.constant 0 : index
    %12 = vector.load %arg10[%c0_5, %c0_6] : memref<64x512xf32, #tpu.memory_space<vmem>>, vector<64x512xf32>
    tpu.vector_store %arg10[%c0_5, %c0_6], %11 {strides = array<i32>} : memref<64x512xf32, #tpu.memory_space<vmem>>, vector<64x512xf32>,
    %c0_7 = arith.constant 0 : index
    %c0_8 = arith.constant 0 : index
    %13 = vector.load %arg10[%c0_7, %c0_8] : memref<64x512xf32, #tpu.memory_space<vmem>>, vector<8x512xf32>
    %14 = math.tanh %13 : vector<8x512xf32>
    %15 = vector.extract_strided_slice %14 {offsets = [0, 0], sizes = [8, 128], strides = [1, 1]} : vector<8x512xf32> to vector<8x128xf32>
    %cst_9 = arith.constant 1.000000e+00 : f32
    %16 = vector.broadcast %cst_9 : f32 to vector<8x128xf32>
    %17 = arith.addf %15, %16 : vector<8x128xf32>
    %cst_10 = arith.constant 5.000000e-01 : f32
    %18 = vector.broadcast %cst_10 : f32 to vector<8x128xf32>
    %19 = arith.mulf %18, %17 : vector<8x128xf32>
    %20 = vector.extract_strided_slice %14 {offsets = [0, 256], sizes = [8, 128], strides = [1, 1]} : vector<8x512xf32> to vector<8x128xf32>
    %21 = vector.extract_strided_slice %14 {offsets = [0, 384], sizes = [8, 128], strides = [1, 1]} : vector<8x512xf32> to vector<8x128xf32>
    %cst_11 = arith.constant 1.000000e+00 : f32
    %22 = vector.broadcast %cst_11 : f32 to vector<8x128xf32>
    %23 = arith.addf %21, %22 : vector<8x128xf32>
    %cst_12 = arith.constant 5.000000e-01 : f32
    %24 = vector.broadcast %cst_12 : f32 to vector<8x128xf32>
    %25 = arith.mulf %24, %23 : vector<8x128xf32>
    %26 = arith.mulf %19, %20 : vector<8x128xf32>
    %27 = math.tanh %26 : vector<8x128xf32>
    %28 = arith.mulf %25, %27 : vector<8x128xf32>
    %c1_i32_13 = arith.constant 1 : i32
    %c8_i32 = arith.constant 8 : i32
    %29 = arith.muli %c1_i32_13, %c8_i32 : i32
    %30 = tpu.assume_multiple %29, 8 : i32
    %31 = arith.index_cast %30 : i32 to index
    %c0_14 = arith.constant 0 : index
    %32 = vector.load %arg10[%31, %c0_14] : memref<64x512xf32, #tpu.memory_space<vmem>>, vector<8x512xf32>
    %33 = arith.truncf %28 : vector<8x128xf32> to vector<8x128xbf16>
    %c0_15 = arith.constant 0 : index
    %c0_16 = arith.constant 0 : index
    %34 = vector.load %arg3[%c0_15, %c0_16] : memref<128x512xbf16, #tpu.memory_space<vmem>>, vector<128x512xbf16>
    %cst_17 = arith.constant dense<0.000000e+00> : vector<8x512xf32>
    %35 = tpu.matmul %33, %34, %cst_17 {dimension_numbers = #tpu.dot_dimension_numbers<[1], [0], [0], [1], [0, 0, 1, 1], [], []>} : vector<8x128xbf16>, vector<128x512xbf16>, vector<8x512xf32> -> vector<8x512xf32>
    %36 = arith.addf %32, %35 : vector<8x512xf32>
    %37 = math.tanh %36 : vector<8x512xf32>
    %38 = vector.extract_strided_slice %37 {offsets = [0, 0], sizes = [8, 128], strides = [1, 1]} : vector<8x512xf32> to vector<8x128xf32>
    %cst_18 = arith.constant 1.000000e+00 : f32
    %39 = vector.broadcast %cst_18 : f32 to vector<8x128xf32>
    %40 = arith.addf %38, %39 : vector<8x128xf32>
    %cst_19 = arith.constant 5.000000e-01 : f32
    %41 = vector.broadcast %cst_19 : f32 to vector<8x128xf32>
    %42 = arith.mulf %41, %40 : vector<8x128xf32>
    %43 = vector.extract_strided_slice %37 {offsets = [0, 128], sizes = [8, 128], strides = [1, 1]} : vector<8x512xf32> to vector<8x128xf32>
    %cst_20 = arith.constant 1.000000e+00 : f32
    %44 = vector.broadcast %cst_20 : f32 to vector<8x128xf32>
    %45 = arith.addf %43, %44 : vector<8x128xf32>
    %cst_21 = arith.constant 5.000000e-01 : f32
    %46 = vector.broadcast %cst_21 : f32 to vector<8x128xf32>
    %47 = arith.mulf %46, %45 : vector<8x128xf32>
    %48 = vector.extract_strided_slice %37 {offsets = [0, 256], sizes = [8, 128], strides = [1, 1]} : vector<8x512xf32> to vector<8x128xf32>
    %49 = vector.extract_strided_slice %37 {offsets = [0, 384], sizes = [8, 128], strides = [1, 1]} : vector<8x512xf32> to vector<8x128xf32>
    %cst_22 = arith.constant 1.000000e+00 : f32
    %50 = vector.broadcast %cst_22 : f32 to vector<8x128xf32>
    %51 = arith.addf %49, %50 : vector<8x128xf32>
    %cst_23 = arith.constant 5.000000e-01 : f32
    %52 = vector.broadcast %cst_23 : f32 to vector<8x128xf32>
    %53 = arith.mulf %52, %51 : vector<8x128xf32>
    %54 = arith.mulf %47, %26 : vector<8x128xf32>
    %55 = arith.mulf %42, %48 : vector<8x128xf32>
    %56 = arith.addf %54, %55 : vector<8x128xf32>
    %57 = math.tanh %56 : vector<8x128xf32>
    %58 = arith.mulf %53, %57 : vector<8x128xf32>
    %c2_i32_24 = arith.constant 2 : i32
    %c8_i32_25 = arith.constant 8 : i32
    %59 = arith.muli %c2_i32_24, %c8_i32_25 : i32
    %60 = tpu.assume_multiple %59, 8 : i32
    %61 = arith.index_cast %60 : i32 to index
    %c0_26 = arith.constant 0 : index
    %62 = vector.load %arg10[%61, %c0_26] : memref<64x512xf32, #tpu.memory_space<vmem>>, vector<8x512xf32>
    %63 = arith.truncf %58 : vector<8x128xf32> to vector<8x128xbf16>
    %c0_27 = arith.constant 0 : index
    %c0_28 = arith.constant 0 : index
    %64 = vector.load %arg3[%c0_27, %c0_28] : memref<128x512xbf16, #tpu.memory_space<vmem>>, vector<128x512xbf16>
    %cst_29 = arith.constant dense<0.000000e+00> : vector<8x512xf32>
    %65 = tpu.matmul %63, %64, %cst_29 {dimension_numbers = #tpu.dot_dimension_numbers<[1], [0], [0], [1], [0, 0, 1, 1], [], []>} : vector<8x128xbf16>, vector<128x512xbf16>, vector<8x512xf32> -> vector<8x512xf32>
    %66 = arith.addf %62, %65 : vector<8x512xf32>
    %67 = math.tanh %66 : vector<8x512xf32>
    %68 = vector.extract_strided_slice %67 {offsets = [0, 0], sizes = [8, 128], strides = [1, 1]} : vector<8x512xf32> to vector<8x128xf32>
    %cst_30 = arith.constant 1.000000e+00 : f32
    %69 = vector.broadcast %cst_30 : f32 to vector<8x128xf32>
    %70 = arith.addf %68, %69 : vector<8x128xf32>
    %cst_31 = arith.constant 5.000000e-01 : f32
    %71 = vector.broadcast %cst_31 : f32 to vector<8x128xf32>
    %72 = arith.mulf %71, %70 : vector<8x128xf32>
    %73 = vector.extract_strided_slice %67 {offsets = [0, 128], sizes = [8, 128], strides = [1, 1]} : vector<8x512xf32> to vector<8x128xf32>
    %cst_32 = arith.constant 1.000000e+00 : f32
    %74 = vector.broadcast %cst_32 : f32 to vector<8x128xf32>
    %75 = arith.addf %73, %74 : vector<8x128xf32>
    %cst_33 = arith.constant 5.000000e-01 : f32
    %76 = vector.broadcast %cst_33 : f32 to vector<8x128xf32>
    %77 = arith.mulf %76, %75 : vector<8x128xf32>
    %78 = vector.extract_strided_slice %67 {offsets = [0, 256], sizes = [8, 128], strides = [1, 1]} : vector<8x512xf32> to vector<8x128xf32>
    %79 = vector.extract_strided_slice %67 {offsets = [0, 384], sizes = [8, 128], strides = [1, 1]} : vector<8x512xf32> to vector<8x128xf32>
    %cst_34 = arith.constant 1.000000e+00 : f32
    %80 = vector.broadcast %cst_34 : f32 to vector<8x128xf32>
    %81 = arith.addf %79, %80 : vector<8x128xf32>
    %cst_35 = arith.constant 5.000000e-01 : f32
    %82 = vector.broadcast %cst_35 : f32 to vector<8x128xf32>
    %83 = arith.mulf %82, %81 : vector<8x128xf32>
    %84 = arith.mulf %77, %56 : vector<8x128xf32>
    %85 = arith.mulf %72, %78 : vector<8x128xf32>
    %86 = arith.addf %84, %85 : vector<8x128xf32>
    %87 = math.tanh %86 : vector<8x128xf32>
    %88 = arith.mulf %83, %87 : vector<8x128xf32>
    %c3_i32 = arith.constant 3 : i32
    %c8_i32_36 = arith.constant 8 : i32
    %89 = arith.muli %c3_i32, %c8_i32_36 : i32
    %90 = tpu.assume_multiple %89, 8 : i32
    %91 = arith.index_cast %90 : i32 to index
    %c0_37 = arith.constant 0 : index
    %92 = vector.load %arg10[%91, %c0_37] : memref<64x512xf32, #tpu.memory_space<vmem>>, vector<8x512xf32>
    %93 = arith.truncf %88 : vector<8x128xf32> to vector<8x128xbf16>
    %c0_38 = arith.constant 0 : index
    %c0_39 = arith.constant 0 : index
    %94 = vector.load %arg3[%c0_38, %c0_39] : memref<128x512xbf16, #tpu.memory_space<vmem>>, vector<128x512xbf16>
    %cst_40 = arith.constant dense<0.000000e+00> : vector<8x512xf32>
    %95 = tpu.matmul %93, %94, %cst_40 {dimension_numbers = #tpu.dot_dimension_numbers<[1], [0], [0], [1], [0, 0, 1, 1], [], []>} : vector<8x128xbf16>, vector<128x512xbf16>, vector<8x512xf32> -> vector<8x512xf32>
    %96 = arith.addf %92, %95 : vector<8x512xf32>
    %97 = math.tanh %96 : vector<8x512xf32>
    %98 = vector.extract_strided_slice %97 {offsets = [0, 0], sizes = [8, 128], strides = [1, 1]} : vector<8x512xf32> to vector<8x128xf32>
    %cst_41 = arith.constant 1.000000e+00 : f32
    %99 = vector.broadcast %cst_41 : f32 to vector<8x128xf32>
    %100 = arith.addf %98, %99 : vector<8x128xf32>
    %cst_42 = arith.constant 5.000000e-01 : f32
    %101 = vector.broadcast %cst_42 : f32 to vector<8x128xf32>
    %102 = arith.mulf %101, %100 : vector<8x128xf32>
    %103 = vector.extract_strided_slice %97 {offsets = [0, 128], sizes = [8, 128], strides = [1, 1]} : vector<8x512xf32> to vector<8x128xf32>
    %cst_43 = arith.constant 1.000000e+00 : f32
    %104 = vector.broadcast %cst_43 : f32 to vector<8x128xf32>
    %105 = arith.addf %103, %104 : vector<8x128xf32>
    %cst_44 = arith.constant 5.000000e-01 : f32
    %106 = vector.broadcast %cst_44 : f32 to vector<8x128xf32>
    %107 = arith.mulf %106, %105 : vector<8x128xf32>
    %108 = vector.extract_strided_slice %97 {offsets = [0, 256], sizes = [8, 128], strides = [1, 1]} : vector<8x512xf32> to vector<8x128xf32>
    %109 = vector.extract_strided_slice %97 {offsets = [0, 384], sizes = [8, 128], strides = [1, 1]} : vector<8x512xf32> to vector<8x128xf32>
    %cst_45 = arith.constant 1.000000e+00 : f32
    %110 = vector.broadcast %cst_45 : f32 to vector<8x128xf32>
    %111 = arith.addf %109, %110 : vector<8x128xf32>
    %cst_46 = arith.constant 5.000000e-01 : f32
    %112 = vector.broadcast %cst_46 : f32 to vector<8x128xf32>
    %113 = arith.mulf %112, %111 : vector<8x128xf32>
    %114 = arith.mulf %107, %86 : vector<8x128xf32>
    %115 = arith.mulf %102, %108 : vector<8x128xf32>
    %116 = arith.addf %114, %115 : vector<8x128xf32>
    %117 = math.tanh %116 : vector<8x128xf32>
    %118 = arith.mulf %113, %117 : vector<8x128xf32>
    %c4_i32 = arith.constant 4 : i32
    %c8_i32_47 = arith.constant 8 : i32
    %119 = arith.muli %c4_i32, %c8_i32_47 : i32
    %120 = tpu.assume_multiple %119, 8 : i32
    %121 = arith.index_cast %120 : i32 to index
    %c0_48 = arith.constant 0 : index
    %122 = vector.load %arg10[%121, %c0_48] : memref<64x512xf32, #tpu.memory_space<vmem>>, vector<8x512xf32>
    %123 = arith.truncf %118 : vector<8x128xf32> to vector<8x128xbf16>
    %c0_49 = arith.constant 0 : index
    %c0_50 = arith.constant 0 : index
    %124 = vector.load %arg3[%c0_49, %c0_50] : memref<128x512xbf16, #tpu.memory_space<vmem>>, vector<128x512xbf16>
    %cst_51 = arith.constant dense<0.000000e+00> : vector<8x512xf32>
    %125 = tpu.matmul %123, %124, %cst_51 {dimension_numbers = #tpu.dot_dimension_numbers<[1], [0], [0], [1], [0, 0, 1, 1], [], []>} : vector<8x128xbf16>, vector<128x512xbf16>, vector<8x512xf32> -> vector<8x512xf32>
    %126 = arith.addf %122, %125 : vector<8x512xf32>
    %127 = math.tanh %126 : vector<8x512xf32>
    %128 = vector.extract_strided_slice %127 {offsets = [0, 0], sizes = [8, 128], strides = [1, 1]} : vector<8x512xf32> to vector<8x128xf32>
    %cst_52 = arith.constant 1.000000e+00 : f32
    %129 = vector.broadcast %cst_52 : f32 to vector<8x128xf32>
    %130 = arith.addf %128, %129 : vector<8x128xf32>
    %cst_53 = arith.constant 5.000000e-01 : f32
    %131 = vector.broadcast %cst_53 : f32 to vector<8x128xf32>
    %132 = arith.mulf %131, %130 : vector<8x128xf32>
    %133 = vector.extract_strided_slice %127 {offsets = [0, 128], sizes = [8, 128], strides = [1, 1]} : vector<8x512xf32> to vector<8x128xf32>
    %cst_54 = arith.constant 1.000000e+00 : f32
    %134 = vector.broadcast %cst_54 : f32 to vector<8x128xf32>
    %135 = arith.addf %133, %134 : vector<8x128xf32>
    %cst_55 = arith.constant 5.000000e-01 : f32
    %136 = vector.broadcast %cst_55 : f32 to vector<8x128xf32>
    %137 = arith.mulf %136, %135 : vector<8x128xf32>
    %138 = vector.extract_strided_slice %127 {offsets = [0, 256], sizes = [8, 128], strides = [1, 1]} : vector<8x512xf32> to vector<8x128xf32>
    %139 = vector.extract_strided_slice %127 {offsets = [0, 384], sizes = [8, 128], strides = [1, 1]} : vector<8x512xf32> to vector<8x128xf32>
    %cst_56 = arith.constant 1.000000e+00 : f32
    %140 = vector.broadcast %cst_56 : f32 to vector<8x128xf32>
    %141 = arith.addf %139, %140 : vector<8x128xf32>
    %cst_57 = arith.constant 5.000000e-01 : f32
    %142 = vector.broadcast %cst_57 : f32 to vector<8x128xf32>
    %143 = arith.mulf %142, %141 : vector<8x128xf32>
    %144 = arith.mulf %137, %116 : vector<8x128xf32>
    %145 = arith.mulf %132, %138 : vector<8x128xf32>
    %146 = arith.addf %144, %145 : vector<8x128xf32>
    %147 = math.tanh %146 : vector<8x128xf32>
    %148 = arith.mulf %143, %147 : vector<8x128xf32>
    %c5_i32 = arith.constant 5 : i32
    %c8_i32_58 = arith.constant 8 : i32
    %149 = arith.muli %c5_i32, %c8_i32_58 : i32
    %150 = tpu.assume_multiple %149, 8 : i32
    %151 = arith.index_cast %150 : i32 to index
    %c0_59 = arith.constant 0 : index
    %152 = vector.load %arg10[%151, %c0_59] : memref<64x512xf32, #tpu.memory_space<vmem>>, vector<8x512xf32>
    %153 = arith.truncf %148 : vector<8x128xf32> to vector<8x128xbf16>
    %c0_60 = arith.constant 0 : index
    %c0_61 = arith.constant 0 : index
    %154 = vector.load %arg3[%c0_60, %c0_61] : memref<128x512xbf16, #tpu.memory_space<vmem>>, vector<128x512xbf16>
    %cst_62 = arith.constant dense<0.000000e+00> : vector<8x512xf32>
    %155 = tpu.matmul %153, %154, %cst_62 {dimension_numbers = #tpu.dot_dimension_numbers<[1], [0], [0], [1], [0, 0, 1, 1], [], []>} : vector<8x128xbf16>, vector<128x512xbf16>, vector<8x512xf32> -> vector<8x512xf32>
    %156 = arith.addf %152, %155 : vector<8x512xf32>
    %157 = math.tanh %156 : vector<8x512xf32>
    %158 = vector.extract_strided_slice %157 {offsets = [0, 0], sizes = [8, 128], strides = [1, 1]} : vector<8x512xf32> to vector<8x128xf32>
    %cst_63 = arith.constant 1.000000e+00 : f32
    %159 = vector.broadcast %cst_63 : f32 to vector<8x128xf32>
    %160 = arith.addf %158, %159 : vector<8x128xf32>
    %cst_64 = arith.constant 5.000000e-01 : f32
    %161 = vector.broadcast %cst_64 : f32 to vector<8x128xf32>
    %162 = arith.mulf %161, %160 : vector<8x128xf32>
    %163 = vector.extract_strided_slice %157 {offsets = [0, 128], sizes = [8, 128], strides = [1, 1]} : vector<8x512xf32> to vector<8x128xf32>
    %cst_65 = arith.constant 1.000000e+00 : f32
    %164 = vector.broadcast %cst_65 : f32 to vector<8x128xf32>
    %165 = arith.addf %163, %164 : vector<8x128xf32>
    %cst_66 = arith.constant 5.000000e-01 : f32
    %166 = vector.broadcast %cst_66 : f32 to vector<8x128xf32>
    %167 = arith.mulf %166, %165 : vector<8x128xf32>
    %168 = vector.extract_strided_slice %157 {offsets = [0, 256], sizes = [8, 128], strides = [1, 1]} : vector<8x512xf32> to vector<8x128xf32>
    %169 = vector.extract_strided_slice %157 {offsets = [0, 384], sizes = [8, 128], strides = [1, 1]} : vector<8x512xf32> to vector<8x128xf32>
    %cst_67 = arith.constant 1.000000e+00 : f32
    %170 = vector.broadcast %cst_67 : f32 to vector<8x128xf32>
    %171 = arith.addf %169, %170 : vector<8x128xf32>
    %cst_68 = arith.constant 5.000000e-01 : f32
    %172 = vector.broadcast %cst_68 : f32 to vector<8x128xf32>
    %173 = arith.mulf %172, %171 : vector<8x128xf32>
    %174 = arith.mulf %167, %146 : vector<8x128xf32>
    %175 = arith.mulf %162, %168 : vector<8x128xf32>
    %176 = arith.addf %174, %175 : vector<8x128xf32>
    %177 = math.tanh %176 : vector<8x128xf32>
    %178 = arith.mulf %173, %177 : vector<8x128xf32>
    %c6_i32 = arith.constant 6 : i32
    %c8_i32_69 = arith.constant 8 : i32
    %179 = arith.muli %c6_i32, %c8_i32_69 : i32
    %180 = tpu.assume_multiple %179, 8 : i32
    %181 = arith.index_cast %180 : i32 to index
    %c0_70 = arith.constant 0 : index
    %182 = vector.load %arg10[%181, %c0_70] : memref<64x512xf32, #tpu.memory_space<vmem>>, vector<8x512xf32>
    %183 = arith.truncf %178 : vector<8x128xf32> to vector<8x128xbf16>
    %c0_71 = arith.constant 0 : index
    %c0_72 = arith.constant 0 : index
    %184 = vector.load %arg3[%c0_71, %c0_72] : memref<128x512xbf16, #tpu.memory_space<vmem>>, vector<128x512xbf16>
    %cst_73 = arith.constant dense<0.000000e+00> : vector<8x512xf32>
    %185 = tpu.matmul %183, %184, %cst_73 {dimension_numbers = #tpu.dot_dimension_numbers<[1], [0], [0], [1], [0, 0, 1, 1], [], []>} : vector<8x128xbf16>, vector<128x512xbf16>, vector<8x512xf32> -> vector<8x512xf32>
    %186 = arith.addf %182, %185 : vector<8x512xf32>
    %187 = math.tanh %186 : vector<8x512xf32>
    %188 = vector.extract_strided_slice %187 {offsets = [0, 0], sizes = [8, 128], strides = [1, 1]} : vector<8x512xf32> to vector<8x128xf32>
    %cst_74 = arith.constant 1.000000e+00 : f32
    %189 = vector.broadcast %cst_74 : f32 to vector<8x128xf32>
    %190 = arith.addf %188, %189 : vector<8x128xf32>
    %cst_75 = arith.constant 5.000000e-01 : f32
    %191 = vector.broadcast %cst_75 : f32 to vector<8x128xf32>
    %192 = arith.mulf %191, %190 : vector<8x128xf32>
    %193 = vector.extract_strided_slice %187 {offsets = [0, 128], sizes = [8, 128], strides = [1, 1]} : vector<8x512xf32> to vector<8x128xf32>
    %cst_76 = arith.constant 1.000000e+00 : f32
    %194 = vector.broadcast %cst_76 : f32 to vector<8x128xf32>
    %195 = arith.addf %193, %194 : vector<8x128xf32>
    %cst_77 = arith.constant 5.000000e-01 : f32
    %196 = vector.broadcast %cst_77 : f32 to vector<8x128xf32>
    %197 = arith.mulf %196, %195 : vector<8x128xf32>
    %198 = vector.extract_strided_slice %187 {offsets = [0, 256], sizes = [8, 128], strides = [1, 1]} : vector<8x512xf32> to vector<8x128xf32>
    %199 = vector.extract_strided_slice %187 {offsets = [0, 384], sizes = [8, 128], strides = [1, 1]} : vector<8x512xf32> to vector<8x128xf32>
    %cst_78 = arith.constant 1.000000e+00 : f32
    %200 = vector.broadcast %cst_78 : f32 to vector<8x128xf32>
    %201 = arith.addf %199, %200 : vector<8x128xf32>
    %cst_79 = arith.constant 5.000000e-01 : f32
    %202 = vector.broadcast %cst_79 : f32 to vector<8x128xf32>
    %203 = arith.mulf %202, %201 : vector<8x128xf32>
    %204 = arith.mulf %197, %176 : vector<8x128xf32>
    %205 = arith.mulf %192, %198 : vector<8x128xf32>
    %206 = arith.addf %204, %205 : vector<8x128xf32>
    %207 = math.tanh %206 : vector<8x128xf32>
    %208 = arith.mulf %203, %207 : vector<8x128xf32>
    %c7_i32 = arith.constant 7 : i32
    %c8_i32_80 = arith.constant 8 : i32
    %209 = arith.muli %c7_i32, %c8_i32_80 : i32
    %210 = tpu.assume_multiple %209, 8 : i32
    %211 = arith.index_cast %210 : i32 to index
    %c0_81 = arith.constant 0 : index
    %212 = vector.load %arg10[%211, %c0_81] : memref<64x512xf32, #tpu.memory_space<vmem>>, vector<8x512xf32>
    %213 = arith.truncf %208 : vector<8x128xf32> to vector<8x128xbf16>
    %c0_82 = arith.constant 0 : index
    %c0_83 = arith.constant 0 : index
    %214 = vector.load %arg3[%c0_82, %c0_83] : memref<128x512xbf16, #tpu.memory_space<vmem>>, vector<128x512xbf16>
    %cst_84 = arith.constant dense<0.000000e+00> : vector<8x512xf32>
    %215 = tpu.matmul %213, %214, %cst_84 {dimension_numbers = #tpu.dot_dimension_numbers<[1], [0], [0], [1], [0, 0, 1, 1], [], []>} : vector<8x128xbf16>, vector<128x512xbf16>, vector<8x512xf32> -> vector<8x512xf32>
    %216 = arith.addf %212, %215 : vector<8x512xf32>
    %217 = math.tanh %216 : vector<8x512xf32>
    %218 = vector.extract_strided_slice %217 {offsets = [0, 0], sizes = [8, 128], strides = [1, 1]} : vector<8x512xf32> to vector<8x128xf32>
    %cst_85 = arith.constant 1.000000e+00 : f32
    %219 = vector.broadcast %cst_85 : f32 to vector<8x128xf32>
    %220 = arith.addf %218, %219 : vector<8x128xf32>
    %cst_86 = arith.constant 5.000000e-01 : f32
    %221 = vector.broadcast %cst_86 : f32 to vector<8x128xf32>
    %222 = arith.mulf %221, %220 : vector<8x128xf32>
    %223 = vector.extract_strided_slice %217 {offsets = [0, 128], sizes = [8, 128], strides = [1, 1]} : vector<8x512xf32> to vector<8x128xf32>
    %cst_87 = arith.constant 1.000000e+00 : f32
    %224 = vector.broadcast %cst_87 : f32 to vector<8x128xf32>
    %225 = arith.addf %223, %224 : vector<8x128xf32>
    %cst_88 = arith.constant 5.000000e-01 : f32
    %226 = vector.broadcast %cst_88 : f32 to vector<8x128xf32>
    %227 = arith.mulf %226, %225 : vector<8x128xf32>
    %228 = vector.extract_strided_slice %217 {offsets = [0, 256], sizes = [8, 128], strides = [1, 1]} : vector<8x512xf32> to vector<8x128xf32>
    %229 = vector.extract_strided_slice %217 {offsets = [0, 384], sizes = [8, 128], strides = [1, 1]} : vector<8x512xf32> to vector<8x128xf32>
    %cst_89 = arith.constant 1.000000e+00 : f32
    %230 = vector.broadcast %cst_89 : f32 to vector<8x128xf32>
    %231 = arith.addf %229, %230 : vector<8x128xf32>
    %cst_90 = arith.constant 5.000000e-01 : f32
    %232 = vector.broadcast %cst_90 : f32 to vector<8x128xf32>
    %233 = arith.mulf %232, %231 : vector<8x128xf32>
    %234 = arith.mulf %227, %206 : vector<8x128xf32>
    %235 = arith.mulf %222, %228 : vector<8x128xf32>
    %236 = arith.addf %234, %235 : vector<8x128xf32>
    %237 = math.tanh %236 : vector<8x128xf32>
    %238 = arith.mulf %233, %237 : vector<8x128xf32>
    %c7_i32_91 = arith.constant 7 : i32
    %c0_92 = arith.constant 0 : index
    %c0_93 = arith.constant 0 : index
    %239 = vector.load %arg4[%c0_92, %c0_93] : memref<1x512xf32, #tpu.memory_space<vmem>>, vector<1x512xf32>
    %240 = vector.shape_cast %239 : vector<1x512xf32> to vector<1x512xf32>
    %241 = vector.broadcast %240 : vector<1x512xf32> to vector<8x512xf32>
    %c0_i32_94 = arith.constant 0 : i32
    %242 = tpu.memref_slice %arg14[%c0_i32_94] : memref<3x!tpu.dma_semaphore, #tpu.memory_space<semaphore_mem>> -> memref<1x!tpu.dma_semaphore, #tpu.memory_space<semaphore_mem>>
    %243 = tpu.memref_squeeze %242 : memref<1x!tpu.dma_semaphore, #tpu.memory_space<semaphore_mem>> -> memref<!tpu.dma_semaphore, #tpu.memory_space<semaphore_mem>>
    tpu.wait_dma2 semaphore(%243 : memref<!tpu.dma_semaphore, #tpu.memory_space<semaphore_mem>>) src(%arg6 : memref<128x512xbf16, #tpu.memory_space<any>>) dst(%arg11 : memref<128x512xbf16, #tpu.memory_space<vmem>>)
    %244 = arith.truncf %238 : vector<8x128xf32> to vector<8x128xbf16>
    %c0_95 = arith.constant 0 : index
    %c0_96 = arith.constant 0 : index
    %245 = vector.load %arg11[%c0_95, %c0_96] : memref<128x512xbf16, #tpu.memory_space<vmem>>, vector<128x512xbf16>
    %cst_97 = arith.constant dense<0.000000e+00> : vector<8x512xf32>
    %246 = tpu.matmul %244, %245, %cst_97 {dimension_numbers = #tpu.dot_dimension_numbers<[1], [0], [0], [1], [0, 0, 1, 1], [], []>} : vector<8x128xbf16>, vector<128x512xbf16>, vector<8x512xf32> -> vector<8x512xf32>
    %247 = arith.addf %246, %241 : vector<8x512xf32>
    %248 = math.tanh %247 : vector<8x512xf32>
    %249 = vector.extract_strided_slice %248 {offsets = [0, 0], sizes = [8, 128], strides = [1, 1]} : vector<8x512xf32> to vector<8x128xf32>
    %cst_98 = arith.constant 1.000000e+00 : f32
    %250 = vector.broadcast %cst_98 : f32 to vector<8x128xf32>
    %251 = arith.addf %249, %250 : vector<8x128xf32>
    %cst_99 = arith.constant 5.000000e-01 : f32
    %252 = vector.broadcast %cst_99 : f32 to vector<8x128xf32>
    %253 = arith.mulf %252, %251 : vector<8x128xf32>
    %254 = vector.extract_strided_slice %248 {offsets = [0, 128], sizes = [8, 128], strides = [1, 1]} : vector<8x512xf32> to vector<8x128xf32>
    %cst_100 = arith.constant 1.000000e+00 : f32
    %255 = vector.broadcast %cst_100 : f32 to vector<8x128xf32>
    %256 = arith.addf %254, %255 : vector<8x128xf32>
    %cst_101 = arith.constant 5.000000e-01 : f32
    %257 = vector.broadcast %cst_101 : f32 to vector<8x128xf32>
    %258 = arith.mulf %257, %256 : vector<8x128xf32>
    %259 = vector.extract_strided_slice %248 {offsets = [0, 256], sizes = [8, 128], strides = [1, 1]} : vector<8x512xf32> to vector<8x128xf32>
    %260 = vector.extract_strided_slice %248 {offsets = [0, 384], sizes = [8, 128], strides = [1, 1]} : vector<8x512xf32> to vector<8x128xf32>
    %cst_102 = arith.constant 1.000000e+00 : f32
    %261 = vector.broadcast %cst_102 : f32 to vector<8x128xf32>
    %262 = arith.addf %260, %261 : vector<8x128xf32>
    %cst_103 = arith.constant 5.000000e-01 : f32
    %263 = vector.broadcast %cst_103 : f32 to vector<8x128xf32>
    %264 = arith.mulf %263, %262 : vector<8x128xf32>
    %265 = arith.mulf %258, %236 : vector<8x128xf32>
    %266 = arith.mulf %253, %259 : vector<8x128xf32>
    %267 = arith.addf %265, %266 : vector<8x128xf32>
    %268 = math.tanh %267 : vector<8x128xf32>
    %269 = arith.mulf %264, %268 : vector<8x128xf32>
    %c1_i32_104 = arith.constant 1 : i32
    %270 = tpu.memref_slice %arg14[%c1_i32_104] : memref<3x!tpu.dma_semaphore, #tpu.memory_space<semaphore_mem>> -> memref<1x!tpu.dma_semaphore, #tpu.memory_space<semaphore_mem>>
    %271 = tpu.memref_squeeze %270 : memref<1x!tpu.dma_semaphore, #tpu.memory_space<semaphore_mem>> -> memref<!tpu.dma_semaphore, #tpu.memory_space<semaphore_mem>>
    tpu.wait_dma2 semaphore(%271 : memref<!tpu.dma_semaphore, #tpu.memory_space<semaphore_mem>>) src(%arg7 : memref<128x512xbf16, #tpu.memory_space<any>>) dst(%arg12 : memref<128x512xbf16, #tpu.memory_space<vmem>>)
    %c0_i32_105 = arith.constant 0 : i32
    %272 = arith.truncf %269 : vector<8x128xf32> to vector<8x128xbf16>
    %c0_106 = arith.constant 0 : index
    %c0_107 = arith.constant 0 : index
    %273 = vector.load %arg12[%c0_106, %c0_107] : memref<128x512xbf16, #tpu.memory_space<vmem>>, vector<128x512xbf16>
    %cst_108 = arith.constant dense<0.000000e+00> : vector<8x512xf32>
    %274 = tpu.matmul %272, %273, %cst_108 {dimension_numbers = #tpu.dot_dimension_numbers<[1], [0], [0], [1], [0, 0, 1, 1], [], []>} : vector<8x128xbf16>, vector<128x512xbf16>, vector<8x512xf32> -> vector<8x512xf32>
    %275 = arith.addf %274, %241 : vector<8x512xf32>
    %276 = math.tanh %275 : vector<8x512xf32>
    %277 = vector.extract_strided_slice %276 {offsets = [0, 0], sizes = [8, 128], strides = [1, 1]} : vector<8x512xf32> to vector<8x128xf32>
    %cst_109 = arith.constant 1.000000e+00 : f32
    %278 = vector.broadcast %cst_109 : f32 to vector<8x128xf32>
    %279 = arith.addf %277, %278 : vector<8x128xf32>
    %cst_110 = arith.constant 5.000000e-01 : f32
    %280 = vector.broadcast %cst_110 : f32 to vector<8x128xf32>
    %281 = arith.mulf %280, %279 : vector<8x128xf32>
    %282 = vector.extract_strided_slice %276 {offsets = [0, 128], sizes = [8, 128], strides = [1, 1]} : vector<8x512xf32> to vector<8x128xf32>
    %cst_111 = arith.constant 1.000000e+00 : f32
    %283 = vector.broadcast %cst_111 : f32 to vector<8x128xf32>
    %284 = arith.addf %282, %283 : vector<8x128xf32>
    %cst_112 = arith.constant 5.000000e-01 : f32
    %285 = vector.broadcast %cst_112 : f32 to vector<8x128xf32>
    %286 = arith.mulf %285, %284 : vector<8x128xf32>
    %287 = vector.extract_strided_slice %276 {offsets = [0, 256], sizes = [8, 128], strides = [1, 1]} : vector<8x512xf32> to vector<8x128xf32>
    %288 = vector.extract_strided_slice %276 {offsets = [0, 384], sizes = [8, 128], strides = [1, 1]} : vector<8x512xf32> to vector<8x128xf32>
    %cst_113 = arith.constant 1.000000e+00 : f32
    %289 = vector.broadcast %cst_113 : f32 to vector<8x128xf32>
    %290 = arith.addf %288, %289 : vector<8x128xf32>
    %cst_114 = arith.constant 5.000000e-01 : f32
    %291 = vector.broadcast %cst_114 : f32 to vector<8x128xf32>
    %292 = arith.mulf %291, %290 : vector<8x128xf32>
    %293 = arith.mulf %286, %267 : vector<8x128xf32>
    %294 = arith.mulf %281, %287 : vector<8x128xf32>
    %295 = arith.addf %293, %294 : vector<8x128xf32>
    %296 = math.tanh %295 : vector<8x128xf32>
    %297 = arith.mulf %292, %296 : vector<8x128xf32>
    %c1_i32_115 = arith.constant 1 : i32
    %298 = arith.truncf %297 : vector<8x128xf32> to vector<8x128xbf16>
    %c0_116 = arith.constant 0 : index
    %c0_117 = arith.constant 0 : index
    %299 = vector.load %arg12[%c0_116, %c0_117] : memref<128x512xbf16, #tpu.memory_space<vmem>>, vector<128x512xbf16>
    %cst_118 = arith.constant dense<0.000000e+00> : vector<8x512xf32>
    %300 = tpu.matmul %298, %299, %cst_118 {dimension_numbers = #tpu.dot_dimension_numbers<[1], [0], [0], [1], [0, 0, 1, 1], [], []>} : vector<8x128xbf16>, vector<128x512xbf16>, vector<8x512xf32> -> vector<8x512xf32>
    %301 = arith.addf %300, %241 : vector<8x512xf32>
    %302 = math.tanh %301 : vector<8x512xf32>
    %303 = vector.extract_strided_slice %302 {offsets = [0, 0], sizes = [8, 128], strides = [1, 1]} : vector<8x512xf32> to vector<8x128xf32>
    %cst_119 = arith.constant 1.000000e+00 : f32
    %304 = vector.broadcast %cst_119 : f32 to vector<8x128xf32>
    %305 = arith.addf %303, %304 : vector<8x128xf32>
    %cst_120 = arith.constant 5.000000e-01 : f32
    %306 = vector.broadcast %cst_120 : f32 to vector<8x128xf32>
    %307 = arith.mulf %306, %305 : vector<8x128xf32>
    %308 = vector.extract_strided_slice %302 {offsets = [0, 128], sizes = [8, 128], strides = [1, 1]} : vector<8x512xf32> to vector<8x128xf32>
    %cst_121 = arith.constant 1.000000e+00 : f32
    %309 = vector.broadcast %cst_121 : f32 to vector<8x128xf32>
    %310 = arith.addf %308, %309 : vector<8x128xf32>
    %cst_122 = arith.constant 5.000000e-01 : f32
    %311 = vector.broadcast %cst_122 : f32 to vector<8x128xf32>
    %312 = arith.mulf %311, %310 : vector<8x128xf32>
    %313 = vector.extract_strided_slice %302 {offsets = [0, 256], sizes = [8, 128], strides = [1, 1]} : vector<8x512xf32> to vector<8x128xf32>
    %314 = vector.extract_strided_slice %302 {offsets = [0, 384], sizes = [8, 128], strides = [1, 1]} : vector<8x512xf32> to vector<8x128xf32>
    %cst_123 = arith.constant 1.000000e+00 : f32
    %315 = vector.broadcast %cst_123 : f32 to vector<8x128xf32>
    %316 = arith.addf %314, %315 : vector<8x128xf32>
    %cst_124 = arith.constant 5.000000e-01 : f32
    %317 = vector.broadcast %cst_124 : f32 to vector<8x128xf32>
    %318 = arith.mulf %317, %316 : vector<8x128xf32>
    %319 = arith.mulf %312, %295 : vector<8x128xf32>
    %320 = arith.mulf %307, %313 : vector<8x128xf32>
    %321 = arith.addf %319, %320 : vector<8x128xf32>
    %322 = math.tanh %321 : vector<8x128xf32>
    %323 = arith.mulf %318, %322 : vector<8x128xf32>
    %c2_i32_125 = arith.constant 2 : i32
    %324 = arith.truncf %323 : vector<8x128xf32> to vector<8x128xbf16>
    %c0_126 = arith.constant 0 : index
    %c0_127 = arith.constant 0 : index
    %325 = vector.load %arg12[%c0_126, %c0_127] : memref<128x512xbf16, #tpu.memory_space<vmem>>, vector<128x512xbf16>
    %cst_128 = arith.constant dense<0.000000e+00> : vector<8x512xf32>
    %326 = tpu.matmul %324, %325, %cst_128 {dimension_numbers = #tpu.dot_dimension_numbers<[1], [0], [0], [1], [0, 0, 1, 1], [], []>} : vector<8x128xbf16>, vector<128x512xbf16>, vector<8x512xf32> -> vector<8x512xf32>
    %327 = arith.addf %326, %241 : vector<8x512xf32>
    %328 = math.tanh %327 : vector<8x512xf32>
    %329 = vector.extract_strided_slice %328 {offsets = [0, 0], sizes = [8, 128], strides = [1, 1]} : vector<8x512xf32> to vector<8x128xf32>
    %cst_129 = arith.constant 1.000000e+00 : f32
    %330 = vector.broadcast %cst_129 : f32 to vector<8x128xf32>
    %331 = arith.addf %329, %330 : vector<8x128xf32>
    %cst_130 = arith.constant 5.000000e-01 : f32
    %332 = vector.broadcast %cst_130 : f32 to vector<8x128xf32>
    %333 = arith.mulf %332, %331 : vector<8x128xf32>
    %334 = vector.extract_strided_slice %328 {offsets = [0, 128], sizes = [8, 128], strides = [1, 1]} : vector<8x512xf32> to vector<8x128xf32>
    %cst_131 = arith.constant 1.000000e+00 : f32
    %335 = vector.broadcast %cst_131 : f32 to vector<8x128xf32>
    %336 = arith.addf %334, %335 : vector<8x128xf32>
    %cst_132 = arith.constant 5.000000e-01 : f32
    %337 = vector.broadcast %cst_132 : f32 to vector<8x128xf32>
    %338 = arith.mulf %337, %336 : vector<8x128xf32>
    %339 = vector.extract_strided_slice %328 {offsets = [0, 256], sizes = [8, 128], strides = [1, 1]} : vector<8x512xf32> to vector<8x128xf32>
    %340 = vector.extract_strided_slice %328 {offsets = [0, 384], sizes = [8, 128], strides = [1, 1]} : vector<8x512xf32> to vector<8x128xf32>
    %cst_133 = arith.constant 1.000000e+00 : f32
    %341 = vector.broadcast %cst_133 : f32 to vector<8x128xf32>
    %342 = arith.addf %340, %341 : vector<8x128xf32>
    %cst_134 = arith.constant 5.000000e-01 : f32
    %343 = vector.broadcast %cst_134 : f32 to vector<8x128xf32>
    %344 = arith.mulf %343, %342 : vector<8x128xf32>
    %345 = arith.mulf %338, %321 : vector<8x128xf32>
    %346 = arith.mulf %333, %339 : vector<8x128xf32>
    %347 = arith.addf %345, %346 : vector<8x128xf32>
    %348 = math.tanh %347 : vector<8x128xf32>
    %349 = arith.mulf %344, %348 : vector<8x128xf32>
    %c3_i32_135 = arith.constant 3 : i32
    %350 = arith.truncf %349 : vector<8x128xf32> to vector<8x128xbf16>
    %c0_136 = arith.constant 0 : index
    %c0_137 = arith.constant 0 : index
    %351 = vector.load %arg12[%c0_136, %c0_137] : memref<128x512xbf16, #tpu.memory_space<vmem>>, vector<128x512xbf16>
    %cst_138 = arith.constant dense<0.000000e+00> : vector<8x512xf32>
    %352 = tpu.matmul %350, %351, %cst_138 {dimension_numbers = #tpu.dot_dimension_numbers<[1], [0], [0], [1], [0, 0, 1, 1], [], []>} : vector<8x128xbf16>, vector<128x512xbf16>, vector<8x512xf32> -> vector<8x512xf32>
    %353 = arith.addf %352, %241 : vector<8x512xf32>
    %354 = math.tanh %353 : vector<8x512xf32>
    %355 = vector.extract_strided_slice %354 {offsets = [0, 0], sizes = [8, 128], strides = [1, 1]} : vector<8x512xf32> to vector<8x128xf32>
    %cst_139 = arith.constant 1.000000e+00 : f32
    %356 = vector.broadcast %cst_139 : f32 to vector<8x128xf32>
    %357 = arith.addf %355, %356 : vector<8x128xf32>
    %cst_140 = arith.constant 5.000000e-01 : f32
    %358 = vector.broadcast %cst_140 : f32 to vector<8x128xf32>
    %359 = arith.mulf %358, %357 : vector<8x128xf32>
    %360 = vector.extract_strided_slice %354 {offsets = [0, 128], sizes = [8, 128], strides = [1, 1]} : vector<8x512xf32> to vector<8x128xf32>
    %cst_141 = arith.constant 1.000000e+00 : f32
    %361 = vector.broadcast %cst_141 : f32 to vector<8x128xf32>
    %362 = arith.addf %360, %361 : vector<8x128xf32>
    %cst_142 = arith.constant 5.000000e-01 : f32
    %363 = vector.broadcast %cst_142 : f32 to vector<8x128xf32>
    %364 = arith.mulf %363, %362 : vector<8x128xf32>
    %365 = vector.extract_strided_slice %354 {offsets = [0, 256], sizes = [8, 128], strides = [1, 1]} : vector<8x512xf32> to vector<8x128xf32>
    %366 = vector.extract_strided_slice %354 {offsets = [0, 384], sizes = [8, 128], strides = [1, 1]} : vector<8x512xf32> to vector<8x128xf32>
    %cst_143 = arith.constant 1.000000e+00 : f32
    %367 = vector.broadcast %cst_143 : f32 to vector<8x128xf32>
    %368 = arith.addf %366, %367 : vector<8x128xf32>
    %cst_144 = arith.constant 5.000000e-01 : f32
    %369 = vector.broadcast %cst_144 : f32 to vector<8x128xf32>
    %370 = arith.mulf %369, %368 : vector<8x128xf32>
    %371 = arith.mulf %364, %347 : vector<8x128xf32>
    %372 = arith.mulf %359, %365 : vector<8x128xf32>
    %373 = arith.addf %371, %372 : vector<8x128xf32>
    %374 = math.tanh %373 : vector<8x128xf32>
    %375 = arith.mulf %370, %374 : vector<8x128xf32>
    %c4_i32_145 = arith.constant 4 : i32
    %376 = arith.truncf %375 : vector<8x128xf32> to vector<8x128xbf16>
    %c0_146 = arith.constant 0 : index
    %c0_147 = arith.constant 0 : index
    %377 = vector.load %arg12[%c0_146, %c0_147] : memref<128x512xbf16, #tpu.memory_space<vmem>>, vector<128x512xbf16>
    %cst_148 = arith.constant dense<0.000000e+00> : vector<8x512xf32>
    %378 = tpu.matmul %376, %377, %cst_148 {dimension_numbers = #tpu.dot_dimension_numbers<[1], [0], [0], [1], [0, 0, 1, 1], [], []>} : vector<8x128xbf16>, vector<128x512xbf16>, vector<8x512xf32> -> vector<8x512xf32>
    %379 = arith.addf %378, %241 : vector<8x512xf32>
    %380 = math.tanh %379 : vector<8x512xf32>
    %381 = vector.extract_strided_slice %380 {offsets = [0, 0], sizes = [8, 128], strides = [1, 1]} : vector<8x512xf32> to vector<8x128xf32>
    %cst_149 = arith.constant 1.000000e+00 : f32
    %382 = vector.broadcast %cst_149 : f32 to vector<8x128xf32>
    %383 = arith.addf %381, %382 : vector<8x128xf32>
    %cst_150 = arith.constant 5.000000e-01 : f32
    %384 = vector.broadcast %cst_150 : f32 to vector<8x128xf32>
    %385 = arith.mulf %384, %383 : vector<8x128xf32>
    %386 = vector.extract_strided_slice %380 {offsets = [0, 128], sizes = [8, 128], strides = [1, 1]} : vector<8x512xf32> to vector<8x128xf32>
    %cst_151 = arith.constant 1.000000e+00 : f32
    %387 = vector.broadcast %cst_151 : f32 to vector<8x128xf32>
    %388 = arith.addf %386, %387 : vector<8x128xf32>
    %cst_152 = arith.constant 5.000000e-01 : f32
    %389 = vector.broadcast %cst_152 : f32 to vector<8x128xf32>
    %390 = arith.mulf %389, %388 : vector<8x128xf32>
    %391 = vector.extract_strided_slice %380 {offsets = [0, 256], sizes = [8, 128], strides = [1, 1]} : vector<8x512xf32> to vector<8x128xf32>
    %392 = vector.extract_strided_slice %380 {offsets = [0, 384], sizes = [8, 128], strides = [1, 1]} : vector<8x512xf32> to vector<8x128xf32>
    %cst_153 = arith.constant 1.000000e+00 : f32
    %393 = vector.broadcast %cst_153 : f32 to vector<8x128xf32>
    %394 = arith.addf %392, %393 : vector<8x128xf32>
    %cst_154 = arith.constant 5.000000e-01 : f32
    %395 = vector.broadcast %cst_154 : f32 to vector<8x128xf32>
    %396 = arith.mulf %395, %394 : vector<8x128xf32>
    %397 = arith.mulf %390, %373 : vector<8x128xf32>
    %398 = arith.mulf %385, %391 : vector<8x128xf32>
    %399 = arith.addf %397, %398 : vector<8x128xf32>
    %400 = math.tanh %399 : vector<8x128xf32>
    %401 = arith.mulf %396, %400 : vector<8x128xf32>
    %c5_i32_155 = arith.constant 5 : i32
    %402 = arith.truncf %401 : vector<8x128xf32> to vector<8x128xbf16>
    %c0_156 = arith.constant 0 : index
    %c0_157 = arith.constant 0 : index
    %403 = vector.load %arg12[%c0_156, %c0_157] : memref<128x512xbf16, #tpu.memory_space<vmem>>, vector<128x512xbf16>
    %cst_158 = arith.constant dense<0.000000e+00> : vector<8x512xf32>
    %404 = tpu.matmul %402, %403, %cst_158 {dimension_numbers = #tpu.dot_dimension_numbers<[1], [0], [0], [1], [0, 0, 1, 1], [], []>} : vector<8x128xbf16>, vector<128x512xbf16>, vector<8x512xf32> -> vector<8x512xf32>
    %405 = arith.addf %404, %241 : vector<8x512xf32>
    %406 = math.tanh %405 : vector<8x512xf32>
    %407 = vector.extract_strided_slice %406 {offsets = [0, 0], sizes = [8, 128], strides = [1, 1]} : vector<8x512xf32> to vector<8x128xf32>
    %cst_159 = arith.constant 1.000000e+00 : f32
    %408 = vector.broadcast %cst_159 : f32 to vector<8x128xf32>
    %409 = arith.addf %407, %408 : vector<8x128xf32>
    %cst_160 = arith.constant 5.000000e-01 : f32
    %410 = vector.broadcast %cst_160 : f32 to vector<8x128xf32>
    %411 = arith.mulf %410, %409 : vector<8x128xf32>
    %412 = vector.extract_strided_slice %406 {offsets = [0, 128], sizes = [8, 128], strides = [1, 1]} : vector<8x512xf32> to vector<8x128xf32>
    %cst_161 = arith.constant 1.000000e+00 : f32
    %413 = vector.broadcast %cst_161 : f32 to vector<8x128xf32>
    %414 = arith.addf %412, %413 : vector<8x128xf32>
    %cst_162 = arith.constant 5.000000e-01 : f32
    %415 = vector.broadcast %cst_162 : f32 to vector<8x128xf32>
    %416 = arith.mulf %415, %414 : vector<8x128xf32>
    %417 = vector.extract_strided_slice %406 {offsets = [0, 256], sizes = [8, 128], strides = [1, 1]} : vector<8x512xf32> to vector<8x128xf32>
    %418 = vector.extract_strided_slice %406 {offsets = [0, 384], sizes = [8, 128], strides = [1, 1]} : vector<8x512xf32> to vector<8x128xf32>
    %cst_163 = arith.constant 1.000000e+00 : f32
    %419 = vector.broadcast %cst_163 : f32 to vector<8x128xf32>
    %420 = arith.addf %418, %419 : vector<8x128xf32>
    %cst_164 = arith.constant 5.000000e-01 : f32
    %421 = vector.broadcast %cst_164 : f32 to vector<8x128xf32>
    %422 = arith.mulf %421, %420 : vector<8x128xf32>
    %423 = arith.mulf %416, %399 : vector<8x128xf32>
    %424 = arith.mulf %411, %417 : vector<8x128xf32>
    %425 = arith.addf %423, %424 : vector<8x128xf32>
    %426 = math.tanh %425 : vector<8x128xf32>
    %427 = arith.mulf %422, %426 : vector<8x128xf32>
    %c6_i32_165 = arith.constant 6 : i32
    %428 = arith.truncf %427 : vector<8x128xf32> to vector<8x128xbf16>
    %c0_166 = arith.constant 0 : index
    %c0_167 = arith.constant 0 : index
    %429 = vector.load %arg12[%c0_166, %c0_167] : memref<128x512xbf16, #tpu.memory_space<vmem>>, vector<128x512xbf16>
    %cst_168 = arith.constant dense<0.000000e+00> : vector<8x512xf32>
    %430 = tpu.matmul %428, %429, %cst_168 {dimension_numbers = #tpu.dot_dimension_numbers<[1], [0], [0], [1], [0, 0, 1, 1], [], []>} : vector<8x128xbf16>, vector<128x512xbf16>, vector<8x512xf32> -> vector<8x512xf32>
    %431 = arith.addf %430, %241 : vector<8x512xf32>
    %432 = math.tanh %431 : vector<8x512xf32>
    %433 = vector.extract_strided_slice %432 {offsets = [0, 0], sizes = [8, 128], strides = [1, 1]} : vector<8x512xf32> to vector<8x128xf32>
    %cst_169 = arith.constant 1.000000e+00 : f32
    %434 = vector.broadcast %cst_169 : f32 to vector<8x128xf32>
    %435 = arith.addf %433, %434 : vector<8x128xf32>
    %cst_170 = arith.constant 5.000000e-01 : f32
    %436 = vector.broadcast %cst_170 : f32 to vector<8x128xf32>
    %437 = arith.mulf %436, %435 : vector<8x128xf32>
    %438 = vector.extract_strided_slice %432 {offsets = [0, 128], sizes = [8, 128], strides = [1, 1]} : vector<8x512xf32> to vector<8x128xf32>
    %cst_171 = arith.constant 1.000000e+00 : f32
    %439 = vector.broadcast %cst_171 : f32 to vector<8x128xf32>
    %440 = arith.addf %438, %439 : vector<8x128xf32>
    %cst_172 = arith.constant 5.000000e-01 : f32
    %441 = vector.broadcast %cst_172 : f32 to vector<8x128xf32>
    %442 = arith.mulf %441, %440 : vector<8x128xf32>
    %443 = vector.extract_strided_slice %432 {offsets = [0, 256], sizes = [8, 128], strides = [1, 1]} : vector<8x512xf32> to vector<8x128xf32>
    %444 = vector.extract_strided_slice %432 {offsets = [0, 384], sizes = [8, 128], strides = [1, 1]} : vector<8x512xf32> to vector<8x128xf32>
    %cst_173 = arith.constant 1.000000e+00 : f32
    %445 = vector.broadcast %cst_173 : f32 to vector<8x128xf32>
    %446 = arith.addf %444, %445 : vector<8x128xf32>
    %cst_174 = arith.constant 5.000000e-01 : f32
    %447 = vector.broadcast %cst_174 : f32 to vector<8x128xf32>
    %448 = arith.mulf %447, %446 : vector<8x128xf32>
    %449 = arith.mulf %442, %425 : vector<8x128xf32>
    %450 = arith.mulf %437, %443 : vector<8x128xf32>
    %451 = arith.addf %449, %450 : vector<8x128xf32>
    %452 = math.tanh %451 : vector<8x128xf32>
    %453 = arith.mulf %448, %452 : vector<8x128xf32>
    %c2_i32_175 = arith.constant 2 : i32
    %454 = tpu.memref_slice %arg14[%c2_i32_175] : memref<3x!tpu.dma_semaphore, #tpu.memory_space<semaphore_mem>> -> memref<1x!tpu.dma_semaphore, #tpu.memory_space<semaphore_mem>>
    %455 = tpu.memref_squeeze %454 : memref<1x!tpu.dma_semaphore, #tpu.memory_space<semaphore_mem>> -> memref<!tpu.dma_semaphore, #tpu.memory_space<semaphore_mem>>
    tpu.wait_dma2 semaphore(%455 : memref<!tpu.dma_semaphore, #tpu.memory_space<semaphore_mem>>) src(%arg8 : memref<128x128xbf16, #tpu.memory_space<any>>) dst(%arg13 : memref<128x128xbf16, #tpu.memory_space<vmem>>)
    %456 = arith.truncf %453 : vector<8x128xf32> to vector<8x128xbf16>
    %c0_176 = arith.constant 0 : index
    %c0_177 = arith.constant 0 : index
    %457 = vector.load %arg13[%c0_176, %c0_177] : memref<128x128xbf16, #tpu.memory_space<vmem>>, vector<128x128xbf16>
    %cst_178 = arith.constant dense<0.000000e+00> : vector<8x128xf32>
    %458 = tpu.matmul %456, %457, %cst_178 {dimension_numbers = #tpu.dot_dimension_numbers<[1], [0], [0], [1], [0, 0, 1, 1], [], []>} : vector<8x128xbf16>, vector<128x128xbf16>, vector<8x128xf32> -> vector<8x128xf32>
    %c0_179 = arith.constant 0 : index
    %c0_180 = arith.constant 0 : index
    %459 = vector.load %arg5[%c0_179, %c0_180] : memref<1x128xf32, #tpu.memory_space<vmem>>, vector<1x128xf32>
    %460 = vector.broadcast %459 : vector<1x128xf32> to vector<8x128xf32>
    %461 = arith.addf %458, %460 : vector<8x128xf32>
    %c0_181 = arith.constant 0 : index
    %c0_182 = arith.constant 0 : index
    %462 = vector.load %arg9[%c0_181, %c0_182] : memref<8x128xf32, #tpu.memory_space<vmem>>, vector<8x128xf32>
    tpu.vector_store %arg9[%c0_181, %c0_182], %461 {strides = array<i32>} : memref<8x128xf32, #tpu.memory_space<vmem>>, vector<8x128xf32>,
    return
  }
}

</mosaic_0001>

<bundles_post_ra>
// kernel: actor_critic_forward.1
= control target key start
LH: loop header
LB: loop body
LE: loop exit
PB: predicated region body
PF: predicated region fallthrough
CT: control target
= control target key end

     0   :  { %s4871_s0 = inlined_call_operand.vmem [shape: f32[64,29], index: 0, kind: input, shape index: {}]   ;;  %s4872_s1 = inlined_call_operand.vmem [shape: f32[29,512], index: 1, kind: input, shape index: {}]   ;;  %s4873_s2 = inlined_call_operand.vmem [shape: f32[1,512], index: 2, kind: input, shape index: {}]   ;;  %s4874_s3 = inlined_call_operand.vmem [shape: bf16[128,512], index: 3, kind: input, shape index: {}]   ;;  %s4875_s4 = inlined_call_operand.vmem [shape: f32[1,512], index: 4, kind: input, shape index: {}]   ;;  %s4876_s5 = inlined_call_operand.vmem [shape: f32[1,128], index: 5, kind: input, shape index: {}]   ;;  %s4877_s6 = inlined_call_operand.vmem [shape: bf16[128,512], index: 6, kind: input, shape index: {}]   ;;  %s4878_s7 = inlined_call_operand.vmem [shape: bf16[128,512], index: 7, kind: input, shape index: {}]   ;;  %s4879_s8 = inlined_call_operand.vmem [shape: bf16[128,128], index: 8, kind: input, shape index: {}]   ;;  %s4880_s9 = inlined_call_operand.vmem [shape: f32[8,128], index: 9, kind: output, shape index: {}]  }
   0x1   :  { %v44_v0 = vld [vmem:[%s4877_s6] sm:$0xf]  ;;  %v46_v1 = vld [vmem:[%s4877_s6 + $0x10] sm:$0xf]  ;;  %v48_v2 = vld [vmem:[%s4877_s6 + $0x4] sm:$0xf] }
   0x2   :  { %45 = vst [vmem:[#allocation3] sm:$0xf] %v44_v0  ;;  %47 = vst [vmem:[#allocation3 + $0x4] sm:$0xf] %v46_v1  ;;  %v50_v3 = vld [vmem:[%s4877_s6 + $0x14] sm:$0xf] }
   0x3   :  { %49 = vst [vmem:[#allocation3 + $0x8] sm:$0xf] %v48_v2  ;;  %v52_v4 = vld [vmem:[%s4877_s6 + $0x8] sm:$0xf]  ;;  %v54_v5 = vld [vmem:[%s4877_s6 + $0x18] sm:$0xf] }
   0x4   :  { %51 = vst [vmem:[#allocation3 + $0xc] sm:$0xf] %v50_v3  ;;  %53 = vst [vmem:[#allocation3 + $0x10] sm:$0xf] %v52_v4  ;;  %v56_v6 = vld [vmem:[%s4877_s6 + $0xc] sm:$0xf] }
   0x5   :  { %55 = vst [vmem:[#allocation3 + $0x14] sm:$0xf] %v54_v5  ;;  %v58_v7 = vld [vmem:[%s4877_s6 + $0x1c] sm:$0xff]   ;;  %v62_v8 = vld [vmem:[%s4877_s6 + $0x30] sm:$0xf] }
   0x6   :  { %57 = vst [vmem:[#allocation3 + $0x18] sm:$0xf] %v56_v6  ;;  %59 = vst [vmem:[#allocation3 + $0x1c] sm:$0xff] %v58_v7   ;;  %v64_v9 = vld [vmem:[%s4877_s6 + $0x24] sm:$0xf]  ;;  %v74_v14 = vld [vmem:[%s4877_s6 + $0x3c] sm:$0xff]  }
   0x7   :  { %63 = vst [vmem:[#allocation3 + $0x24] sm:$0xf] %v62_v8  ;;  %v66_v10 = vld [vmem:[%s4877_s6 + $0x34] sm:$0xf]  ;;  %v68_v11 = vld [vmem:[%s4877_s6 + $0x28] sm:$0xf] }
   0x8   :  { %65 = vst [vmem:[#allocation3 + $0x28] sm:$0xf] %v64_v9  ;;  %67 = vst [vmem:[#allocation3 + $0x2c] sm:$0xf] %v66_v10  ;;  %v70_v12 = vld [vmem:[%s4877_s6 + $0x38] sm:$0xf] }
   0x9   :  { %69 = vst [vmem:[#allocation3 + $0x30] sm:$0xf] %v68_v11  ;;  %v72_v13 = vld [vmem:[%s4877_s6 + $0x2c] sm:$0xf]  ;;  %71 = vst [vmem:[#allocation3 + $0x34] sm:$0xf] %v70_v12 }
   0xa   :  { %73 = vst [vmem:[#allocation3 + $0x38] sm:$0xf] %v72_v13  ;;  %75 = vst [vmem:[#allocation3 + $0x3c] sm:$0xff] %v74_v14   ;;  %v78_v15 = vld [vmem:[%s4877_s6 + $0x50] sm:$0xf]  ;;  %v90_v21 = vld [vmem:[%s4877_s6 + $0x5c] sm:$0xff]  }
   0xb   :  { %v80_v16 = vld [vmem:[%s4877_s6 + $0x44] sm:$0xf]  ;;  %v82_v17 = vld [vmem:[%s4877_s6 + $0x54] sm:$0xf]  ;;  %79 = vst [vmem:[#allocation3 + $0x44] sm:$0xf] %v78_v15 }
   0xc   :  { %81 = vst [vmem:[#allocation3 + $0x48] sm:$0xf] %v80_v16  ;;  %83 = vst [vmem:[#allocation3 + $0x4c] sm:$0xf] %v82_v17  ;;  %v84_v18 = vld [vmem:[%s4877_s6 + $0x48] sm:$0xf] }
   0xd   :  { %v86_v19 = vld [vmem:[%s4877_s6 + $0x58] sm:$0xf]  ;;  %v88_v20 = vld [vmem:[%s4877_s6 + $0x4c] sm:$0xf]  ;;  %85 = vst [vmem:[#allocation3 + $0x50] sm:$0xf] %v84_v18 }
   0xe   :  { %87 = vst [vmem:[#allocation3 + $0x54] sm:$0xf] %v86_v19  ;;  %89 = vst [vmem:[#allocation3 + $0x58] sm:$0xf] %v88_v20  ;;  %v94_v22 = vld [vmem:[%s4877_s6 + $0x70] sm:$0xf] }
   0xf   :  { %v96_v23 = vld [vmem:[%s4877_s6 + $0x64] sm:$0xf]  ;;  %91 = vst [vmem:[#allocation3 + $0x5c] sm:$0xff] %v90_v21   ;;  %95 = vst [vmem:[#allocation3 + $0x64] sm:$0xf] %v94_v22  ;;  %v106_v28 = vld [vmem:[%s4877_s6 + $0x7c] sm:$0xff]  }
  0x10   :  { %97 = vst [vmem:[#allocation3 + $0x68] sm:$0xf] %v96_v23  ;;  %v98_v24 = vld [vmem:[%s4877_s6 + $0x74] sm:$0xf]  ;;  %v100_v25 = vld [vmem:[%s4877_s6 + $0x68] sm:$0xf] }
  0x11   :  { %v102_v26 = vld [vmem:[%s4877_s6 + $0x78] sm:$0xf]  ;;  %99 = vst [vmem:[#allocation3 + $0x6c] sm:$0xf] %v98_v24  ;;  %101 = vst [vmem:[#allocation3 + $0x70] sm:$0xf] %v100_v25 }
  0x12   :  { %103 = vst [vmem:[#allocation3 + $0x74] sm:$0xf] %v102_v26  ;;  %v104_v27 = vld [vmem:[%s4877_s6 + $0x6c] sm:$0xf]  ;;  %v110_v29 = vld [vmem:[%s4877_s6 + $0x90] sm:$0xf] }
  0x13   :  { %105 = vst [vmem:[#allocation3 + $0x78] sm:$0xf] %v104_v27  ;;  %107 = vst [vmem:[#allocation3 + $0x7c] sm:$0xff] %v106_v28   ;;  %v112_v30 = vld [vmem:[%s4877_s6 + $0x84] sm:$0xf]  ;;  %v122_v35 = vld [vmem:[%s4877_s6 + $0x9c] sm:$0xff]  }
  0x14   :  { %111 = vst [vmem:[#allocation3 + $0x84] sm:$0xf] %v110_v29  ;;  %v114_v31 = vld [vmem:[%s4877_s6 + $0x94] sm:$0xf]  ;;  %v116_v32 = vld [vmem:[%s4877_s6 + $0x88] sm:$0xf] }
  0x15   :  { %113 = vst [vmem:[#allocation3 + $0x88] sm:$0xf] %v112_v30  ;;  %115 = vst [vmem:[#allocation3 + $0x8c] sm:$0xf] %v114_v31  ;;  %v118_v33 = vld [vmem:[%s4877_s6 + $0x98] sm:$0xf] }
  0x16   :  { %117 = vst [vmem:[#allocation3 + $0x90] sm:$0xf] %v116_v32  ;;  %v120_v34 = vld [vmem:[%s4877_s6 + $0x8c] sm:$0xf]  ;;  %119 = vst [vmem:[#allocation3 + $0x94] sm:$0xf] %v118_v33 }
  0x17   :  { %121 = vst [vmem:[#allocation3 + $0x98] sm:$0xf] %v120_v34  ;;  %123 = vst [vmem:[#allocation3 + $0x9c] sm:$0xff] %v122_v35   ;;  %v126_v36 = vld [vmem:[%s4877_s6 + $0xb0] sm:$0xf]  ;;  %v138_v42 = vld [vmem:[%s4877_s6 + $0xbc] sm:$0xff]  }
  0x18   :  { %v128_v37 = vld [vmem:[%s4877_s6 + $0xa4] sm:$0xf]  ;;  %v130_v38 = vld [vmem:[%s4877_s6 + $0xb4] sm:$0xf]  ;;  %127 = vst [vmem:[#allocation3 + $0xa4] sm:$0xf] %v126_v36 }
  0x19   :  { %129 = vst [vmem:[#allocation3 + $0xa8] sm:$0xf] %v128_v37  ;;  %131 = vst [vmem:[#allocation3 + $0xac] sm:$0xf] %v130_v38  ;;  %v132_v39 = vld [vmem:[%s4877_s6 + $0xa8] sm:$0xf] }
  0x1a   :  { %v134_v40 = vld [vmem:[%s4877_s6 + $0xb8] sm:$0xf]  ;;  %v136_v41 = vld [vmem:[%s4877_s6 + $0xac] sm:$0xf]  ;;  %133 = vst [vmem:[#allocation3 + $0xb0] sm:$0xf] %v132_v39 }
  0x1b   :  { %135 = vst [vmem:[#allocation3 + $0xb4] sm:$0xf] %v134_v40  ;;  %137 = vst [vmem:[#allocation3 + $0xb8] sm:$0xf] %v136_v41  ;;  %v142_v43 = vld [vmem:[%s4877_s6 + $0xd0] sm:$0xf] }
  0x1c   :  { %v144_v44 = vld [vmem:[%s4877_s6 + $0xc4] sm:$0xf]  ;;  %139 = vst [vmem:[#allocation3 + $0xbc] sm:$0xff] %v138_v42   ;;  %143 = vst [vmem:[#allocation3 + $0xc4] sm:$0xf] %v142_v43  ;;  %v154_v49 = vld [vmem:[%s4877_s6 + $0xdc] sm:$0xff]  }
  0x1d   :  { %145 = vst [vmem:[#allocation3 + $0xc8] sm:$0xf] %v144_v44  ;;  %v146_v45 = vld [vmem:[%s4877_s6 + $0xd4] sm:$0xf]  ;;  %v148_v46 = vld [vmem:[%s4877_s6 + $0xc8] sm:$0xf] }
  0x1e   :  { %v150_v47 = vld [vmem:[%s4877_s6 + $0xd8] sm:$0xf]  ;;  %147 = vst [vmem:[#allocation3 + $0xcc] sm:$0xf] %v146_v45  ;;  %149 = vst [vmem:[#allocation3 + $0xd0] sm:$0xf] %v148_v46 }
  0x1f   :  { %151 = vst [vmem:[#allocation3 + $0xd4] sm:$0xf] %v150_v47  ;;  %v152_v48 = vld [vmem:[%s4877_s6 + $0xcc] sm:$0xf]  ;;  %v158_v50 = vld [vmem:[%s4877_s6 + $0xf0] sm:$0xf] }
  0x20   :  { %153 = vst [vmem:[#allocation3 + $0xd8] sm:$0xf] %v152_v48  ;;  %155 = vst [vmem:[#allocation3 + $0xdc] sm:$0xff] %v154_v49   ;;  %v160_v51 = vld [vmem:[%s4877_s6 + $0xe4] sm:$0xf] }
  0x21   :  { %159 = vst [vmem:[#allocation3 + $0xe4] sm:$0xf] %v158_v50  ;;  %v162_v52 = vld [vmem:[%s4877_s6 + $0xf4] sm:$0xf]  ;;  %v164_v53 = vld [vmem:[%s4877_s6 + $0xe8] sm:$0xf] }
  0x22   :  { %161 = vst [vmem:[#allocation3 + $0xe8] sm:$0xf] %v160_v51  ;;  %163 = vst [vmem:[#allocation3 + $0xec] sm:$0xf] %v162_v52  ;;  %v166_v54 = vld [vmem:[%s4877_s6 + $0xf8] sm:$0xf] }
  0x23   :  { %165 = vst [vmem:[#allocation3 + $0xf0] sm:$0xf] %v164_v53  ;;  %v168_v55 = vld [vmem:[%s4877_s6 + $0xec] sm:$0xf]  ;;  %v170_v56 = vld [vmem:[%s4877_s6 + $0xfc] sm:$0xf] }
  0x24   :  { %167 = vst [vmem:[#allocation3 + $0xf4] sm:$0xf] %v166_v54  ;;  %169 = vst [vmem:[#allocation3 + $0xf8] sm:$0xf] %v168_v55 }
  0x25   :  { %171 = vst [vmem:[#allocation3 + $0xfc] sm:$0xf] %v170_v56 }
  0x26   :  { %330 = vsyncadd [#allocation6], 4096  ;;  %v349_v57 = vld [vmem:[%s4878_s7] sm:$0xf]  ;;  %v351_v58 = vld [vmem:[%s4878_s7 + $0x10] sm:$0xf] }
  0x27   :  { %350 = vst [vmem:[#allocation4] sm:$0xf] %v349_v57  ;;  %352 = vst [vmem:[#allocation4 + $0x4] sm:$0xf] %v351_v58  ;;  %v353_v59 = vld [vmem:[%s4878_s7 + $0x4] sm:$0xf] }
  0x28   :  { %v355_v60 = vld [vmem:[%s4878_s7 + $0x14] sm:$0xf]  ;;  %v357_v61 = vld [vmem:[%s4878_s7 + $0x8] sm:$0xf]  ;;  %354 = vst [vmem:[#allocation4 + $0x8] sm:$0xf] %v353_v59 }
  0x29   :  { %356 = vst [vmem:[#allocation4 + $0xc] sm:$0xf] %v355_v60  ;;  %358 = vst [vmem:[#allocation4 + $0x10] sm:$0xf] %v357_v61  ;;  %v359_v62 = vld [vmem:[%s4878_s7 + $0x18] sm:$0xf] }
  0x2a   :  { %v361_v63 = vld [vmem:[%s4878_s7 + $0xc] sm:$0xf]  ;;  %v363_v0 = vld [vmem:[%s4878_s7 + $0x1c] sm:$0xff]   ;;  %360 = vst [vmem:[#allocation4 + $0x14] sm:$0xf] %v359_v62 }
  0x2b   :  { %362 = vst [vmem:[#allocation4 + $0x18] sm:$0xf] %v361_v63  ;;  %364 = vst [vmem:[#allocation4 + $0x1c] sm:$0xff] %v363_v0   ;;  %v367_v1 = vld [vmem:[%s4878_s7 + $0x30] sm:$0xf]  ;;  %v379_v7 = vld [vmem:[%s4878_s7 + $0x3c] sm:$0xff]  }
  0x2c   :  { %v369_v2 = vld [vmem:[%s4878_s7 + $0x24] sm:$0xf]  ;;  %v371_v3 = vld [vmem:[%s4878_s7 + $0x34] sm:$0xf]  ;;  %368 = vst [vmem:[#allocation4 + $0x24] sm:$0xf] %v367_v1 }
  0x2d   :  { %370 = vst [vmem:[#allocation4 + $0x28] sm:$0xf] %v369_v2  ;;  %372 = vst [vmem:[#allocation4 + $0x2c] sm:$0xf] %v371_v3  ;;  %v373_v4 = vld [vmem:[%s4878_s7 + $0x28] sm:$0xf] }
  0x2e   :  { %v375_v5 = vld [vmem:[%s4878_s7 + $0x38] sm:$0xf]  ;;  %v377_v6 = vld [vmem:[%s4878_s7 + $0x2c] sm:$0xf]  ;;  %374 = vst [vmem:[#allocation4 + $0x30] sm:$0xf] %v373_v4 }
  0x2f   :  { %376 = vst [vmem:[#allocation4 + $0x34] sm:$0xf] %v375_v5  ;;  %378 = vst [vmem:[#allocation4 + $0x38] sm:$0xf] %v377_v6  ;;  %v383_v8 = vld [vmem:[%s4878_s7 + $0x50] sm:$0xf] }
  0x30   :  { %v385_v9 = vld [vmem:[%s4878_s7 + $0x44] sm:$0xf]  ;;  %380 = vst [vmem:[#allocation4 + $0x3c] sm:$0xff] %v379_v7   ;;  %384 = vst [vmem:[#allocation4 + $0x44] sm:$0xf] %v383_v8  ;;  %v395_v14 = vld [vmem:[%s4878_s7 + $0x5c] sm:$0xff]  }
  0x31   :  { %386 = vst [vmem:[#allocation4 + $0x48] sm:$0xf] %v385_v9  ;;  %v387_v10 = vld [vmem:[%s4878_s7 + $0x54] sm:$0xf]  ;;  %v389_v11 = vld [vmem:[%s4878_s7 + $0x48] sm:$0xf] }
  0x32   :  { %v391_v12 = vld [vmem:[%s4878_s7 + $0x58] sm:$0xf]  ;;  %388 = vst [vmem:[#allocation4 + $0x4c] sm:$0xf] %v387_v10  ;;  %390 = vst [vmem:[#allocation4 + $0x50] sm:$0xf] %v389_v11 }
  0x33   :  { %392 = vst [vmem:[#allocation4 + $0x54] sm:$0xf] %v391_v12  ;;  %v393_v13 = vld [vmem:[%s4878_s7 + $0x4c] sm:$0xf]  ;;  %v399_v15 = vld [vmem:[%s4878_s7 + $0x70] sm:$0xf] }
  0x34   :  { %394 = vst [vmem:[#allocation4 + $0x58] sm:$0xf] %v393_v13  ;;  %396 = vst [vmem:[#allocation4 + $0x5c] sm:$0xff] %v395_v14   ;;  %v401_v16 = vld [vmem:[%s4878_s7 + $0x64] sm:$0xf]  ;;  %v411_v21 = vld [vmem:[%s4878_s7 + $0x7c] sm:$0xff]  }
  0x35   :  { %400 = vst [vmem:[#allocation4 + $0x64] sm:$0xf] %v399_v15  ;;  %v403_v17 = vld [vmem:[%s4878_s7 + $0x74] sm:$0xf]  ;;  %v405_v18 = vld [vmem:[%s4878_s7 + $0x68] sm:$0xf] }
  0x36   :  { %402 = vst [vmem:[#allocation4 + $0x68] sm:$0xf] %v401_v16  ;;  %404 = vst [vmem:[#allocation4 + $0x6c] sm:$0xf] %v403_v17  ;;  %v407_v19 = vld [vmem:[%s4878_s7 + $0x78] sm:$0xf] }
  0x37   :  { %406 = vst [vmem:[#allocation4 + $0x70] sm:$0xf] %v405_v18  ;;  %v409_v20 = vld [vmem:[%s4878_s7 + $0x6c] sm:$0xf]  ;;  %408 = vst [vmem:[#allocation4 + $0x74] sm:$0xf] %v407_v19 }
  0x38   :  { %410 = vst [vmem:[#allocation4 + $0x78] sm:$0xf] %v409_v20  ;;  %412 = vst [vmem:[#allocation4 + $0x7c] sm:$0xff] %v411_v21   ;;  %v415_v22 = vld [vmem:[%s4878_s7 + $0x90] sm:$0xf]  ;;  %v427_v28 = vld [vmem:[%s4878_s7 + $0x9c] sm:$0xff]  }
  0x39   :  { %v417_v23 = vld [vmem:[%s4878_s7 + $0x84] sm:$0xf]  ;;  %v419_v24 = vld [vmem:[%s4878_s7 + $0x94] sm:$0xf]  ;;  %416 = vst [vmem:[#allocation4 + $0x84] sm:$0xf] %v415_v22 }
  0x3a   :  { %418 = vst [vmem:[#allocation4 + $0x88] sm:$0xf] %v417_v23  ;;  %420 = vst [vmem:[#allocation4 + $0x8c] sm:$0xf] %v419_v24  ;;  %v421_v25 = vld [vmem:[%s4878_s7 + $0x88] sm:$0xf] }
  0x3b   :  { %v423_v26 = vld [vmem:[%s4878_s7 + $0x98] sm:$0xf]  ;;  %v425_v27 = vld [vmem:[%s4878_s7 + $0x8c] sm:$0xf]  ;;  %422 = vst [vmem:[#allocation4 + $0x90] sm:$0xf] %v421_v25 }
  0x3c   :  { %424 = vst [vmem:[#allocation4 + $0x94] sm:$0xf] %v423_v26  ;;  %426 = vst [vmem:[#allocation4 + $0x98] sm:$0xf] %v425_v27  ;;  %v431_v29 = vld [vmem:[%s4878_s7 + $0xb0] sm:$0xf] }
  0x3d   :  { %v433_v30 = vld [vmem:[%s4878_s7 + $0xa4] sm:$0xf]  ;;  %428 = vst [vmem:[#allocation4 + $0x9c] sm:$0xff] %v427_v28   ;;  %432 = vst [vmem:[#allocation4 + $0xa4] sm:$0xf] %v431_v29  ;;  %v443_v35 = vld [vmem:[%s4878_s7 + $0xbc] sm:$0xff]  }
  0x3e   :  { %434 = vst [vmem:[#allocation4 + $0xa8] sm:$0xf] %v433_v30  ;;  %v435_v31 = vld [vmem:[%s4878_s7 + $0xb4] sm:$0xf]  ;;  %v437_v32 = vld [vmem:[%s4878_s7 + $0xa8] sm:$0xf] }
  0x3f   :  { %v439_v33 = vld [vmem:[%s4878_s7 + $0xb8] sm:$0xf]  ;;  %436 = vst [vmem:[#allocation4 + $0xac] sm:$0xf] %v435_v31  ;;  %438 = vst [vmem:[#allocation4 + $0xb0] sm:$0xf] %v437_v32 }
  0x40   :  { %440 = vst [vmem:[#allocation4 + $0xb4] sm:$0xf] %v439_v33  ;;  %v441_v34 = vld [vmem:[%s4878_s7 + $0xac] sm:$0xf]  ;;  %v447_v36 = vld [vmem:[%s4878_s7 + $0xd0] sm:$0xf] }
  0x41   :  { %442 = vst [vmem:[#allocation4 + $0xb8] sm:$0xf] %v441_v34  ;;  %444 = vst [vmem:[#allocation4 + $0xbc] sm:$0xff] %v443_v35   ;;  %v449_v37 = vld [vmem:[%s4878_s7 + $0xc4] sm:$0xf]  ;;  %v459_v42 = vld [vmem:[%s4878_s7 + $0xdc] sm:$0xff]  }
  0x42   :  { %448 = vst [vmem:[#allocation4 + $0xc4] sm:$0xf] %v447_v36  ;;  %v451_v38 = vld [vmem:[%s4878_s7 + $0xd4] sm:$0xf]  ;;  %v453_v39 = vld [vmem:[%s4878_s7 + $0xc8] sm:$0xf] }
  0x43   :  { %450 = vst [vmem:[#allocation4 + $0xc8] sm:$0xf] %v449_v37  ;;  %452 = vst [vmem:[#allocation4 + $0xcc] sm:$0xf] %v451_v38  ;;  %v455_v40 = vld [vmem:[%s4878_s7 + $0xd8] sm:$0xf] }
  0x44   :  { %454 = vst [vmem:[#allocation4 + $0xd0] sm:$0xf] %v453_v39  ;;  %v457_v41 = vld [vmem:[%s4878_s7 + $0xcc] sm:$0xf]  ;;  %456 = vst [vmem:[#allocation4 + $0xd4] sm:$0xf] %v455_v40 }
  0x45   :  { %458 = vst [vmem:[#allocation4 + $0xd8] sm:$0xf] %v457_v41  ;;  %460 = vst [vmem:[#allocation4 + $0xdc] sm:$0xff] %v459_v42   ;;  %v463_v43 = vld [vmem:[%s4878_s7 + $0xf0] sm:$0xf] }
  0x46   :  { %v465_v44 = vld [vmem:[%s4878_s7 + $0xe4] sm:$0xf]  ;;  %v467_v45 = vld [vmem:[%s4878_s7 + $0xf4] sm:$0xf]  ;;  %464 = vst [vmem:[#allocation4 + $0xe4] sm:$0xf] %v463_v43 }
  0x47   :  { %466 = vst [vmem:[#allocation4 + $0xe8] sm:$0xf] %v465_v44  ;;  %468 = vst [vmem:[#allocation4 + $0xec] sm:$0xf] %v467_v45  ;;  %v469_v46 = vld [vmem:[%s4878_s7 + $0xe8] sm:$0xf] }
  0x48   :  { %v471_v47 = vld [vmem:[%s4878_s7 + $0xf8] sm:$0xf]  ;;  %v473_v48 = vld [vmem:[%s4878_s7 + $0xec] sm:$0xf]  ;;  %470 = vst [vmem:[#allocation4 + $0xf0] sm:$0xf] %v469_v46 }
  0x49   :  { %472 = vst [vmem:[#allocation4 + $0xf4] sm:$0xf] %v471_v47  ;;  %474 = vst [vmem:[#allocation4 + $0xf8] sm:$0xf] %v473_v48  ;;  %v475_v49 = vld [vmem:[%s4878_s7 + $0xfc] sm:$0xf] }
  0x4a   :  { %476 = vst [vmem:[#allocation4 + $0xfc] sm:$0xf] %v475_v49 }
  0x4b   :  { %635 = vsyncadd [#allocation6 + $0x1], 4096  ;;  %v3740_v50 = vld [vmem:[%s4879_s8] sm:$0xff]  ;;  %v3745_v51 = vld [vmem:[%s4879_s8 + $0x8] sm:$0xff] }
  0x4c   :  { %4890 = vst [vmem:[#allocation13_spill] sm:$0xff] %v3740_v50  ;;  %4891 = vst [vmem:[#allocation14_spill] sm:$0xff] %v3745_v51  ;;  %v3750_v52 = vld [vmem:[%s4879_s8 + $0x10] sm:$0xff]  ;;  %v3755_v53 = vld [vmem:[%s4879_s8 + $0x18] sm:$0xff] }
  0x4d   :  { %4892 = vst [vmem:[#allocation15_spill] sm:$0xff] %v3750_v52  ;;  %4893 = vst [vmem:[#allocation16_spill] sm:$0xff] %v3755_v53  ;;  %v3760_v54 = vld [vmem:[%s4879_s8 + $0x20] sm:$0xff]  ;;  %v3765_v55 = vld [vmem:[%s4879_s8 + $0x28] sm:$0xff] }
  0x4e   :  { %4894 = vst [vmem:[#allocation17_spill] sm:$0xff] %v3760_v54  ;;  %4895 = vst [vmem:[#allocation18_spill] sm:$0xff] %v3765_v55  ;;  %v3770_v56 = vld [vmem:[%s4879_s8 + $0x30] sm:$0xff]  ;;  %v3775_v57 = vld [vmem:[%s4879_s8 + $0x38] sm:$0xff] }
  0x4f   :  { %4896 = vst [vmem:[#allocation19_spill] sm:$0xff] %v3770_v56  ;;  %4897 = vst [vmem:[#allocation20_spill] sm:$0xff] %v3775_v57 }
  0x50   :  { %692 = vsyncadd [#allocation6 + $0x2], 1024  ;;  %v702_v58 = vld [vmem:[%s4872_s1 + $0x8] sm:$0xff]  ;;  %vm764_vm0 = vcmask 1044480   ;;  %v701_v61 = vld [vmem:[%s4872_s1] sm:$0xff]  ;;  %v4881_v4 = vmov 0.0  }
  0x51   :  { %v706_v59 = vld [vmem:[%s4872_s1 + $0x28] sm:$0xff]  ;;  %v705_v62 = vld [vmem:[%s4872_s1 + $0x20] sm:$0xff]  ;;  %v704_v63 = vld [vmem:[%s4872_s1 + $0x18] sm:$0xff]  ;;  %841 = vmatprep.mubr.f32.mxu0 %v4881_v4  ;;  %954 = vmatprep.mubr.f32.mxu1 %v4881_v4  ;;  %vm3342_vm1 = vmmov 1   ;;  %vm739_vm3 = vcmask 236544  }
  0x52   :  { %v3091_v60 = vpack.c.bf16 %v706_v59, %v702_v58  ;;  %v3093_v0 = vpack.c.bf16 %v705_v62, %v701_v61  ;;  %v708_v1 = vld [vmem:[%s4872_s1 + $0x38] sm:$0xff]  ;;  %v710_v2 = vld [vmem:[%s4872_s1 + $0x48] sm:$0xff]  ;;  %vm3804_vm2 = vmpackc.low %vm764_vm0, %vm3342_vm1 }
  0x53   :  { %v714_v3 = vld [vmem:[%s4872_s1 + $0x68] sm:$0x1f]  ;;  %v3101_v5 = vpack.c.bf16 %v708_v1, %v704_v63  ;;  %v703_v8 = vld [vmem:[%s4872_s1 + $0x10] sm:$0xff]  ;;  %v709_v11 = vld [vmem:[%s4872_s1 + $0x40] sm:$0xff] }
  0x54   :  { %3092 = vmatprep.subr.bf16.mxu0 %v3091_v60  ;;  %v3095_v6 = vpack.c.bf16 %v714_v3, %v710_v2  ;;  %v707_v9 = vld [vmem:[%s4872_s1 + $0x30] sm:$0xff]  ;;  %v713_v12 = vld [vmem:[%s4872_s1 + $0x60] sm:$0x1f]  ;;  %v712_v13 = vld [vmem:[%s4872_s1 + $0x58] sm:$0xff] }
  0x55   :  { %3094 = vmatpush1.bf16.msra.mxu0 %v3093_v0  ;;  %v3103_v10 = vpack.c.bf16 %v707_v9, %v703_v8  ;;  %3102 = vmatprep.subr.bf16.mxu1 %v3101_v5  ;;  %v3098_v14 = vpack.c.bf16 %v713_v12, %v709_v11  ;;  %v716_v15 = vld [vmem:[%s4872_s1 + $0x78] sm:$0x1f]  ;;  %v711_v16 = vld [vmem:[%s4872_s1 + $0x50] sm:$0xff]  ;;  %v693_v18 = vld [vmem:[%s4871_s0] sm:$0xff]  ;;  %v4884_v5 = vmov 0  }
  0x56   :  { %3097 = vmatprep.subr.msk.bf16.mxu0 %vm3804_vm2, %v3095_v6  ;;  %v3105_v17 = vpack.c.bf16 %v716_v15, %v712_v13  ;;  %v715_v19 = vld [vmem:[%s4872_s1 + $0x70] sm:$0x1f]  ;;  %v3855_v22 = vld [vmem:[%s4874_s3 + $0xc] ss:$16 sps:$4 sm:$0xff]   ;;  %v3865_v24 = vld [vmem:[%s4874_s3 + $0x8] ss:$16 sps:$4 sm:$0xff]   ;;  %v719_v6 = vlaneseq }
  0x57   :  { %3104 = vmatpush1.bf16.msra.mxu1 %v3103_v10  ;;  %v3108_v20 = vpack.c.bf16 %v715_v19, %v711_v16  ;;  %v3850_v21 = vld [vmem:[%s4874_s3 + $0x4] ss:$16 sps:$4 sm:$0xff]   ;;  %v3860_v23 = vld [vmem:[%s4874_s3] ss:$16 sps:$4 sm:$0xff]   ;;  %v694_v25 = vld [vmem:[%s4871_s0 + $0x8] sm:$0xff] }
  0x58   :  { %3107 = vmatprep.subr.msk.bf16.mxu1 %vm3804_vm2, %v3105_v17  ;;  %v3877_v26 = vld [vmem:[%s4874_s3 + $0x24] ss:$16 sps:$4 sm:$0xff]   ;;  %v3882_v27 = vld [vmem:[%s4874_s3 + $0x2c] ss:$16 sps:$4 sm:$0xff]   ;;  %v3889_v28 = vld [vmem:[%s4874_s3 + $0x20] ss:$16 sps:$4 sm:$0xff]  }
  0x59   :  { %3100 = vmatpush1.bf16.msk.msra.mxu0 %vm3804_vm2, %v3098_v14  ;;  %v3894_v29 = vld [vmem:[%s4874_s3 + $0x28] ss:$16 sps:$4 sm:$0xff]   ;;  %v695_v30 = vld [vmem:[%s4871_s0 + $0x10] sm:$0xff]  ;;  %v3913_v32 = vld [vmem:[%s4874_s3 + $0x4c] ss:$16 sps:$4 sm:$0xff]   ;;  %v4090_v7 = vshrl.u32 %v719_v6, 7 }
  0x5a   :  { %1248 = vmatprep.subr.bf16.mxu0 %v3850_v21  ;;  %v3908_v31 = vld [vmem:[%s4874_s3 + $0x44] ss:$16 sps:$4 sm:$0xff]   ;;  %v3920_v33 = vld [vmem:[%s4874_s3 + $0x40] ss:$16 sps:$4 sm:$0xff]   ;;  %v3925_v34 = vld [vmem:[%s4874_s3 + $0x48] ss:$16 sps:$4 sm:$0xff]  }
  0x5b   :  { %3110 = vmatpush1.bf16.msk.msra.mxu1 %vm3804_vm2, %v3108_v20  ;;  %v696_v35 = vld [vmem:[%s4871_s0 + $0x18] sm:$0xff]  ;;  %v3939_v36 = vld [vmem:[%s4874_s3 + $0x64] ss:$16 sps:$4 sm:$0xff]   ;;  %v3951_v38 = vld [vmem:[%s4874_s3 + $0x60] ss:$16 sps:$4 sm:$0xff]   ;;  %v721_v8 = vsub.s32 0, %v4090_v7 }
  0x5c   :  { %3008 = vmatmul.mubr.msk.f32.vlgmr.msra.gmra.mrb[0].mxu0 %vm739_vm3, %v693_v18  ;;  %1289 = vmatprep.subr.bf16.mxu1 %v3855_v22  ;;  %v3944_v37 = vld [vmem:[%s4874_s3 + $0x6c] ss:$16 sps:$4 sm:$0xff]   ;;  %v3956_v39 = vld [vmem:[%s4874_s3 + $0x68] ss:$16 sps:$4 sm:$0xff]   ;;  %v697_v40 = vld [vmem:[%s4871_s0 + $0x20] sm:$0xff]  ;;  %v729_v9 = vsub.s32 2, %v4090_v7 }
  0x5d   :  { %847 = vmatprep.mubr.f32.mxu0 %v4881_v4  ;;  %1249 = vmatpush1.bf16.msra.mxu0 %v3860_v23  ;;  %v3970_v41 = vld [vmem:[%s4874_s3 + $0x84] ss:$16 sps:$4 sm:$0xff]   ;;  %v3975_v42 = vld [vmem:[%s4874_s3 + $0x8c] ss:$16 sps:$4 sm:$0xff]   ;;  %v3982_v43 = vld [vmem:[%s4874_s3 + $0x80] ss:$16 sps:$4 sm:$0xff]  }
  0x5e   :  { %3018 = vmatmul.mubr.msk.f32.vlgmr.msra.gmra.mrb[0].mxu1 %vm739_vm3, %v693_v18  ;;  %1250 = vmatprep.subr.bf16.mxu0 %v3877_v26  ;;  %v3987_v44 = vld [vmem:[%s4874_s3 + $0x88] ss:$16 sps:$4 sm:$0xff]   ;;  %v4001_v46 = vld [vmem:[%s4874_s3 + $0xa4] ss:$16 sps:$4 sm:$0xff]   ;;  %v4006_v47 = vld [vmem:[%s4874_s3 + $0xac] ss:$16 sps:$4 sm:$0xff]  }
  0x5f   :  { %960 = vmatprep.mubr.f32.mxu1 %v4881_v4  ;;  %1290 = vmatpush1.bf16.msra.mxu1 %v3865_v24  ;;  %v698_v45 = vld [vmem:[%s4871_s0 + $0x28] sm:$0xff]  ;;  %v4013_v48 = vld [vmem:[%s4874_s3 + $0xa0] ss:$16 sps:$4 sm:$0xff]   ;;  %v4032_v59 = vld [vmem:[%s4874_s3 + $0xc4] ss:$16 sps:$4 sm:$0xff]   ;;  %v4883_v10 = vsub.s32 1, %v4090_v7 }
  0x60   :  { %3009 = vmatmul.mubr.msk.f32.gmra.mrb[2].mxu0 %vm739_vm3, %v694_v25  ;;  %1291 = vmatprep.subr.bf16.mxu1 %v3882_v27  ;;  %v4018_v49 = vld [vmem:[%s4874_s3 + $0xa8] ss:$16 sps:$4 sm:$0xff]   ;;  %v699_v58 = vld [vmem:[%s4871_s0 + $0x30] sm:$0xff]  ;;  %v4037_v60 = vld [vmem:[%s4874_s3 + $0xcc] ss:$16 sps:$4 sm:$0xff]   ;;  %v733_v11 = vsub.s32 3, %v4090_v7 }
  0x61   :  { %1251 = vmatpush1.bf16.msra.mxu0 %v3889_v28  ;;  %853 = vmatprep.mubr.f32.mxu0 %v4881_v4  ;;  %v4044_v61 = vld [vmem:[%s4874_s3 + $0xc0] ss:$16 sps:$4 sm:$0xff]   ;;  %v4049_v62 = vld [vmem:[%s4874_s3 + $0xc8] ss:$16 sps:$4 sm:$0xff]   ;;  %v4063_v0 = vld [vmem:[%s4874_s3 + $0xe4] ss:$16 sps:$4 sm:$0xff]  }
  0x62   :  { %3019 = vmatmul.mubr.msk.f32.gmra.mrb[2].mxu1 %vm739_vm3, %v694_v25  ;;  %1252 = vmatprep.subr.bf16.mxu0 %v3908_v31  ;;  %v700_v63 = vld [vmem:[%s4871_s0 + $0x38] sm:$0xff]  ;;  %v4075_v2 = vld [vmem:[%s4874_s3 + $0xe0] ss:$16 sps:$4 sm:$0xff]  }
  0x63   :  { %1292 = vmatpush1.bf16.msra.mxu1 %v3894_v29  ;;  %966 = vmatprep.mubr.f32.mxu1 %v4881_v4  ;;  %v4068_v1 = vld [vmem:[%s4874_s3 + $0xec] ss:$16 sps:$4 sm:$0xff]   ;;  %v4080_v3 = vld [vmem:[%s4874_s3 + $0xe8] ss:$16 sps:$4 sm:$0xff]   ;;  %v2003_v12 = vld [vmem:[%s4875_s4] sm:$0xf] }
  0x64   :  { %3010 = vmatmul.mubr.msk.f32.gmra.mrb[4].mxu0 %vm739_vm3, %v695_v30  ;;  %1293 = vmatprep.subr.bf16.mxu1 %v3913_v32  ;;  %v4099_v13 = vrot.slane %v2003_v12, %v721_v8  ;;  %v4103_v14 = vrot.slane %v2003_v12, %v4883_v10  ;;  %v4105_v15 = vrot.slane %v2003_v12, %v729_v9  ;;  %v4112_v17 = vld [vmem:[%s4873_s2] sm:$0xf] }
  0x65   :  { %1253 = vmatpush1.bf16.msra.mxu0 %v3920_v33  ;;  %859 = vmatprep.mubr.f32.mxu0 %v4881_v4  ;;  %v4107_v16 = vrot.slane %v2003_v12, %v733_v11  ;;  %v4115_v18 = vrot.slane %v4112_v17, %v721_v8  ;;  %v4118_v19 = vrot.slane %v4112_v17, %v729_v9 }
  0x66   :  { %3020 = vmatmul.mubr.msk.f32.gmra.mrb[4].mxu1 %vm739_vm3, %v695_v30  ;;  %1254 = vmatprep.subr.bf16.mxu0 %v3939_v36  ;;  %4900 = vst [vmem:[#allocation21_spill] sm:$0xff] %v4099_v13  ;;  %4901 = vst [vmem:[#allocation22_spill] sm:$0xff] %v4103_v14 }
  0x67   :  { %1294 = vmatpush1.bf16.msra.mxu1 %v3925_v34  ;;  %972 = vmatprep.mubr.f32.mxu1 %v4881_v4  ;;  %4902 = vst [vmem:[#allocation23_spill] sm:$0xff] %v4105_v15  ;;  %4903 = vst [vmem:[#allocation24_spill] sm:$0xff] %v4107_v16 }
  0x68   :  { %3011 = vmatmul.mubr.msk.f32.gmra.mrb[6].mxu0 %vm739_vm3, %v696_v35  ;;  %1295 = vmatprep.subr.bf16.mxu1 %v3944_v37 }
  0x69   :  { %1255 = vmatpush1.bf16.msra.mxu0 %v3951_v38  ;;  %865 = vmatprep.mubr.f32.mxu0 %v4881_v4 }
  0x6a   :  { %3021 = vmatmul.mubr.msk.f32.gmra.mrb[6].mxu1 %vm739_vm3, %v696_v35  ;;  %1256 = vmatprep.subr.bf16.mxu0 %v3970_v41 }
  0x6b   :  { %1296 = vmatpush1.bf16.msra.mxu1 %v3956_v39  ;;  %978 = vmatprep.mubr.f32.mxu1 %v4881_v4 }
  0x6c   :  { %3012 = vmatmul.mubr.msk.f32.gmra.mrb[8].mxu0 %vm739_vm3, %v697_v40  ;;  %1297 = vmatprep.subr.bf16.mxu1 %v3975_v42 }
  0x6d   :  { %1257 = vmatpush1.bf16.msra.mxu0 %v3982_v43  ;;  %871 = vmatprep.mubr.f32.mxu0 %v4881_v4 }
  0x6e   :  { %3022 = vmatmul.mubr.msk.f32.gmra.mrb[8].mxu1 %vm739_vm3, %v697_v40  ;;  %1258 = vmatprep.subr.bf16.mxu0 %v4001_v46 }
  0x6f   :  { %1298 = vmatpush1.bf16.msra.mxu1 %v3987_v44  ;;  %984 = vmatprep.mubr.f32.mxu1 %v4881_v4 }
  0x70   :  { %3013 = vmatmul.mubr.msk.f32.gmra.mrb[10].mxu0 %vm739_vm3, %v698_v45  ;;  %1299 = vmatprep.subr.bf16.mxu1 %v4006_v47 }
  0x71   :  { %1259 = vmatpush1.bf16.msra.mxu0 %v4013_v48  ;;  %877 = vmatprep.mubr.f32.mxu0 %v4881_v4 }
  0x72   :  { %3023 = vmatmul.mubr.msk.f32.gmra.mrb[10].mxu1 %vm739_vm3, %v698_v45  ;;  %1260 = vmatprep.subr.bf16.mxu0 %v4032_v59 }
  0x73   :  { %1300 = vmatpush1.bf16.msra.mxu1 %v4018_v49  ;;  %990 = vmatprep.mubr.f32.mxu1 %v4881_v4 }
  0x74   :  { %3014 = vmatmul.mubr.msk.f32.gmra.mrb[12].mxu0 %vm739_vm3, %v699_v58  ;;  %1301 = vmatprep.subr.bf16.mxu1 %v4037_v60 }
  0x75   :  { %1261 = vmatpush1.bf16.msra.mxu0 %v4044_v61  ;;  %883 = vmatprep.mubr.f32.mxu0 %v4881_v4 }
  0x76   :  { %3024 = vmatmul.mubr.msk.f32.gmra.mrb[12].mxu1 %vm739_vm3, %v699_v58  ;;  %1262 = vmatprep.subr.bf16.mxu0 %v4063_v0  ;;  %v4123_v58 = vrot.slane %v4112_v17, %v733_v11  ;;  %v4904_v11 = vmov 0  }
  0x77   :  { %1302 = vmatpush1.bf16.msra.mxu1 %v4049_v62  ;;  %996 = vmatprep.mubr.f32.mxu1 %v4881_v4 }
  0x78   :  { %3015 = vmatmul.mubr.msk.f32.gmra.mrb[14].mxu0 %vm739_vm3, %v700_v63  ;;  %1303 = vmatprep.subr.bf16.mxu1 %v4068_v1 }
  0x79   :  { %1263 = vmatpush1.bf16.msra.mxu0 %v4075_v2  ;;  %1280 = vmatprep.mubr.bf16.mxu0 %v4884_v5 }
  0x7a   :  { %3025 = vmatmul.mubr.msk.f32.gmra.mrb[14].mxu1 %vm739_vm3, %v700_v63  ;;  %1357 = vmatprep.subr.bf16.mxu0 %v3850_v21 }
  0x7b   :  { %1304 = vmatpush1.bf16.msra.mxu1 %v4080_v3  ;;  %1321 = vmatprep.mubr.bf16.mxu1 %v4884_v5 }
  0x7c   :  { %1398 = vmatprep.subr.bf16.mxu1 %v3855_v22 }
 0x12f   :  { %v843_v20 = vpop.f32.mrb[0].mxu0 }
 0x130   :  { %v844_v25 = vadd.f32 %v843_v20, %v4115_v18  ;;  %v845_v30 = vpop.f32.mrb[1].mxu0 }
 0x131   :  { %v956_v35 = vpop.f32.mrb[0].mxu1 }
 0x132   :  { %3163 = vtanh.f32 %v844_v25  ;;  %v957_v40 = vadd.f32 %v956_v35, %v4118_v19  ;;  %v958_v45 = vpop.f32.mrb[1].mxu1 }
 0x133   :  { %v959_v63 = vadd.f32 %v958_v45, %v4123_v58 }
 0x134   :  { %3165 = vtanh.f32 %v957_v40 }
 0x135   :  { %3167 = vtanh.f32 %v959_v63  ;;  %v4905_v63 = vsub.s32 1, %v4090_v7 }
 0x13c   :  { %v3164_v6 = vpop.eup %3163 }
 0x13d   :  { %v1041_v8 = vadd.f32 1.0, %v3164_v6  ;;  %v726_v6 = vrot.slane %v4112_v17, %v4905_v63 }
 0x13e   :  { %v3166_v9 = vpop.eup %3165 }
 0x13f   :  { %v1042_v12 = vmul.f32 0.5, %v1041_v8  ;;  %v3168_v20 = vpop.eup %3167 }
 0x140   :  { %v1043_v25 = vadd.f32 1.0, %v3168_v20 }
 0x141   :  { %v4126_v4 = vmul.f32 %v3166_v9, %v1042_v12 }
 0x142   :  { %v1044_v30 = vmul.f32 0.5, %v1043_v25 }
 0x143   :  { %3169 = vtanh.f32 %v4126_v4 }
 0x14d   :  { %v3170_v35 = vpop.eup %3169 }
 0x14e   :  { %v1047_v10 = vmul.f32 %v3170_v35, %v1044_v30 }
 0x150   :  { %v1055_v5 = vpack.c.bf16 %v1047_v10, %v1047_v10  ;;  %v962_v10 = vpop.f32.mrb[2].mxu1 }
 0x151   :  { %v964_v45 = vpop.f32.mrb[3].mxu1 }
 0x152   :  { %1281 = vmatmul.mubr.bf16.vlgmr.msra.gmra.mrb[16].mxu0 %v1055_v5  ;;  %1322 = vmatmul.mubr.bf16.vlgmr.msra.gmra.mrb[16].mxu1 %v1055_v5  ;;  %v849_v5 = vpop.f32.mrb[2].mxu0  ;;  %v4168_v9 = vpop.f32.mrb[4].mxu1 }
 0x153   :  { %1358 = vmatpush1.bf16.msra.mxu0 %v3860_v23  ;;  %1399 = vmatpush1.bf16.msra.mxu1 %v3865_v24  ;;  %v851_v40 = vpop.f32.mrb[3].mxu0  ;;  %v4170_v20 = vpop.f32.mrb[5].mxu1 }
 0x154   :  { %1359 = vmatprep.subr.bf16.mxu0 %v3877_v26  ;;  %1400 = vmatprep.subr.bf16.mxu1 %v3882_v27  ;;  %v4166_v8 = vpop.f32.mrb[4].mxu0  ;;  %v4176_v35 = vpop.f32.mrb[6].mxu1 }
 0x155   :  { %1389 = vmatprep.mubr.bf16.mxu0 %v4904_v11  ;;  %1430 = vmatprep.mubr.bf16.mxu1 %v4904_v11  ;;  %v857_v12 = vpop.f32.mrb[5].mxu0  ;;  %4906 = vst [vmem:[#allocation25_spill] sm:$0xff] %v4176_v35  ;;  %v4178_v56 = vpop.f32.mrb[7].mxu1 }
 0x156   :  { %v4172_v25 = vadd.f32 %v857_v12, %v726_v6  ;;  %v4174_v30 = vpop.f32.mrb[6].mxu0  ;;  %4907 = vst [vmem:[#allocation26_spill] sm:$0xff] %v4178_v56  ;;  %v4184_v17 = vpop.f32.mrb[8].mxu1 }
 0x157   :  { %1360 = vmatpush1.bf16.msra.mxu0 %v3889_v28  ;;  %1401 = vmatpush1.bf16.msra.mxu1 %v3894_v29  ;;  %v863_v57 = vpop.f32.mrb[7].mxu0  ;;  %4910 = vst [vmem:[#allocation29_spill] sm:$0xff] %v4184_v17  ;;  %v4186_v54 = vpop.f32.mrb[9].mxu1 }
 0x158   :  { %1361 = vmatprep.subr.bf16.mxu0 %v3908_v31  ;;  %1402 = vmatprep.subr.bf16.mxu1 %v3913_v32  ;;  %v4180_v55 = vadd.f32 %v863_v57, %v726_v6  ;;  %v4182_v7 = vpop.f32.mrb[8].mxu0  ;;  %4911 = vst [vmem:[#allocation30_spill] sm:$0xff] %v4186_v54  ;;  %v4192_v52 = vpop.f32.mrb[10].mxu1 }
 0x159   :  { %4909 = vst [vmem:[#allocation28_spill] sm:$0xff] %v4182_v7  ;;  %v869_v63 = vpop.f32.mrb[9].mxu0  ;;  %4914 = vst [vmem:[#allocation33_spill] sm:$0xff] %v4192_v52  ;;  %v4194_v50 = vpop.f32.mrb[11].mxu1 }
 0x15a   :  { %4908 = vst [vmem:[#allocation27_spill] sm:$0xff] %v4180_v55  ;;  %v4188_v53 = vadd.f32 %v869_v63, %v726_v6  ;;  %v4190_v12 = vpop.f32.mrb[10].mxu0  ;;  %4915 = vst [vmem:[#allocation34_spill] sm:$0xff] %v4194_v50  ;;  %v4200_v14 = vpop.f32.mrb[12].mxu1 }
 0x15b   :  { %1362 = vmatpush1.bf16.msra.mxu0 %v3920_v33  ;;  %1403 = vmatpush1.bf16.msra.mxu1 %v3925_v34  ;;  %4913 = vst [vmem:[#allocation32_spill] sm:$0xff] %v4190_v12  ;;  %v875_v51 = vpop.f32.mrb[11].mxu0  ;;  %4918 = vst [vmem:[#allocation37_spill] sm:$0xff] %v4200_v14  ;;  %v4202_v13 = vpop.f32.mrb[13].mxu1  ;;  %v965_v14 = vadd.f32 %v964_v45, %v4123_v58 }
 0x15c   :  { %1363 = vmatprep.subr.bf16.mxu0 %v3939_v36  ;;  %1404 = vmatprep.subr.bf16.mxu1 %v3944_v37  ;;  %4912 = vst [vmem:[#allocation31_spill] sm:$0xff] %v4188_v53  ;;  %v4196_v16 = vadd.f32 %v875_v51, %v726_v6  ;;  %v4198_v57 = vpop.f32.mrb[12].mxu0  ;;  %4919 = vst [vmem:[#allocation38_spill] sm:$0xff] %v4202_v13  ;;  %v4208_v53 = vpop.f32.mrb[14].mxu1  ;;  %v850_v51 = vadd.f32 %v849_v5, %v4115_v18 }
 0x15d   :  { %4917 = vst [vmem:[#allocation36_spill] sm:$0xff] %v4198_v57  ;;  %v881_v15 = vpop.f32.mrb[13].mxu0  ;;  %4922 = vst [vmem:[#allocation41_spill] sm:$0xff] %v4208_v53  ;;  %v4210_v52 = vpop.f32.mrb[15].mxu1  ;;  %v963_v57 = vadd.f32 %v962_v10, %v4118_v19 }
 0x15e   :  { %4916 = vst [vmem:[#allocation35_spill] sm:$0xff] %v4196_v16  ;;  %v4204_v17 = vadd.f32 %v881_v15, %v726_v6  ;;  %v4206_v63 = vpop.f32.mrb[14].mxu0  ;;  %4923 = vst [vmem:[#allocation42_spill] sm:$0xff] %v4210_v52  ;;  %v852_v16 = vadd.f32 %v851_v40, %v726_v6 }
 0x15f   :  { %1364 = vmatpush1.bf16.msra.mxu0 %v3951_v38  ;;  %1405 = vmatpush1.bf16.msra.mxu1 %v3956_v39  ;;  %4921 = vst [vmem:[#allocation40_spill] sm:$0xff] %v4206_v63  ;;  %v887_v12 = vpop.f32.mrb[15].mxu0 }
 0x160   :  { %1365 = vmatprep.subr.bf16.mxu0 %v3970_v41  ;;  %1406 = vmatprep.subr.bf16.mxu1 %v3975_v42  ;;  %4920 = vst [vmem:[#allocation39_spill] sm:$0xff] %v4204_v17  ;;  %v4212_v54 = vadd.f32 %v887_v12, %v726_v6 }
 0x162   :  { %4924 = vst [vmem:[#allocation43_spill] sm:$0xff] %v4212_v54 }
 0x163   :  { %1366 = vmatpush1.bf16.msra.mxu0 %v3982_v43  ;;  %1407 = vmatpush1.bf16.msra.mxu1 %v3987_v44 }
 0x164   :  { %1367 = vmatprep.subr.bf16.mxu0 %v4001_v46  ;;  %1408 = vmatprep.subr.bf16.mxu1 %v4006_v47 }
 0x167   :  { %1368 = vmatpush1.bf16.msra.mxu0 %v4013_v48  ;;  %1409 = vmatpush1.bf16.msra.mxu1 %v4018_v49 }
 0x168   :  { %1369 = vmatprep.subr.bf16.mxu0 %v4032_v59  ;;  %1410 = vmatprep.subr.bf16.mxu1 %v4037_v60 }
 0x16b   :  { %1370 = vmatpush1.bf16.msra.mxu0 %v4044_v61  ;;  %1411 = vmatpush1.bf16.msra.mxu1 %v4049_v62 }
 0x16c   :  { %1371 = vmatprep.subr.bf16.mxu0 %v4063_v0  ;;  %1412 = vmatprep.subr.bf16.mxu1 %v4068_v1 }
 0x16f   :  { %1372 = vmatpush1.bf16.msra.mxu0 %v4075_v2  ;;  %1413 = vmatpush1.bf16.msra.mxu1 %v4080_v3 }
 0x170   :  { %1466 = vmatprep.subr.bf16.mxu0 %v3850_v21  ;;  %1507 = vmatprep.subr.bf16.mxu1 %v3855_v22 }
 0x225   :  { %v1282_v50 = vpop.f32.mrb[16].mxu0  ;;  %v1323_v13 = vpop.f32.mrb[16].mxu1 }
 0x226   :  { %v1330_v15 = vadd.f32 %v1282_v50, %v850_v51  ;;  %v1332_v17 = vadd.f32 %v1323_v13, %v963_v57  ;;  %v1284_v7 = vpop.f32.mrb[17].mxu0  ;;  %v1325_v63 = vpop.f32.mrb[17].mxu1 }
 0x227   :  { %v1331_v55 = vadd.f32 %v1284_v7, %v852_v16  ;;  %v1333_v53 = vadd.f32 %v1325_v63, %v965_v14  ;;  %v1286_v56 = vpop.f32.mrb[18].mxu0  ;;  %v1327_v35 = vpop.f32.mrb[18].mxu1 }
 0x228   :  { %3171 = vtanh.f32 %v1330_v15  ;;  %v1287_v12 = vpop.f32.mrb[19].mxu0  ;;  %v1328_v54 = vpop.f32.mrb[19].mxu1 }
 0x229   :  { %3173 = vtanh.f32 %v1331_v55 }
 0x22a   :  { %3175 = vtanh.f32 %v1332_v17 }
 0x22b   :  { %3177 = vtanh.f32 %v1333_v53  ;;  %v969_v53 = vadd.f32 %v4168_v9, %v4118_v19 }
 0x232   :  { %v3172_v5 = vpop.eup %3171 }
 0x233   :  { %v1338_v10 = vadd.f32 1.0, %v3172_v5  ;;  %v3174_v40 = vpop.eup %3173 }
 0x234   :  { %v1340_v45 = vadd.f32 1.0, %v3174_v40  ;;  %v3176_v52 = vpop.eup %3175 }
 0x235   :  { %v1339_v6 = vmul.f32 0.5, %v1338_v10  ;;  %v3178_v56 = vpop.eup %3177 }
 0x236   :  { %v1341_v50 = vmul.f32 0.5, %v1340_v45  ;;  %v1342_v14 = vadd.f32 1.0, %v3178_v56 }
 0x237   :  { %v1345_v13 = vmul.f32 %v3176_v52, %v1339_v6  ;;  %v856_v52 = vadd.f32 %v4166_v8, %v4115_v18 }
 0x238   :  { %v1344_v57 = vmul.f32 %v1341_v50, %v4126_v4  ;;  %v1343_v54 = vmul.f32 0.5, %v1342_v14  ;;  %v971_v4 = vadd.f32 %v4170_v20, %v4123_v58 }
 0x23a   :  { %v4218_v16 = vadd.f32 %v1345_v13, %v1344_v57 }
 0x23c   :  { %3179 = vtanh.f32 %v4218_v16 }
 0x246   :  { %v3180_v55 = vpop.eup %3179 }
 0x247   :  { %v1348_v35 = vmul.f32 %v3180_v55, %v1343_v54 }
 0x249   :  { %v1356_v7 = vpack.c.bf16 %v1348_v35, %v1348_v35 }
 0x24b   :  { %1390 = vmatmul.mubr.bf16.vlgmr.msra.gmra.mrb[20].mxu0 %v1356_v7  ;;  %1431 = vmatmul.mubr.bf16.vlgmr.msra.gmra.mrb[20].mxu1 %v1356_v7 }
 0x24c   :  { %1467 = vmatpush1.bf16.msra.mxu0 %v3860_v23  ;;  %1508 = vmatpush1.bf16.msra.mxu1 %v3865_v24 }
 0x24d   :  { %1468 = vmatprep.subr.bf16.mxu0 %v3877_v26  ;;  %1509 = vmatprep.subr.bf16.mxu1 %v3882_v27 }
 0x24e   :  { %1498 = vmatprep.mubr.bf16.mxu0 %v4904_v11  ;;  %1539 = vmatprep.mubr.bf16.mxu1 %v4904_v11 }
 0x250   :  { %1469 = vmatpush1.bf16.msra.mxu0 %v3889_v28  ;;  %1510 = vmatpush1.bf16.msra.mxu1 %v3894_v29 }
 0x251   :  { %1470 = vmatprep.subr.bf16.mxu0 %v3908_v31  ;;  %1511 = vmatprep.subr.bf16.mxu1 %v3913_v32 }
 0x254   :  { %1471 = vmatpush1.bf16.msra.mxu0 %v3920_v33  ;;  %1512 = vmatpush1.bf16.msra.mxu1 %v3925_v34 }
 0x255   :  { %1472 = vmatprep.subr.bf16.mxu0 %v3939_v36  ;;  %1513 = vmatprep.subr.bf16.mxu1 %v3944_v37 }
 0x258   :  { %1473 = vmatpush1.bf16.msra.mxu0 %v3951_v38  ;;  %1514 = vmatpush1.bf16.msra.mxu1 %v3956_v39 }
 0x259   :  { %1474 = vmatprep.subr.bf16.mxu0 %v3970_v41  ;;  %1515 = vmatprep.subr.bf16.mxu1 %v3975_v42 }
 0x25c   :  { %1475 = vmatpush1.bf16.msra.mxu0 %v3982_v43  ;;  %1516 = vmatpush1.bf16.msra.mxu1 %v3987_v44 }
 0x25d   :  { %1476 = vmatprep.subr.bf16.mxu0 %v4001_v46  ;;  %1517 = vmatprep.subr.bf16.mxu1 %v4006_v47 }
 0x260   :  { %1477 = vmatpush1.bf16.msra.mxu0 %v4013_v48  ;;  %1518 = vmatpush1.bf16.msra.mxu1 %v4018_v49 }
 0x261   :  { %1478 = vmatprep.subr.bf16.mxu0 %v4032_v59  ;;  %1519 = vmatprep.subr.bf16.mxu1 %v4037_v60 }
 0x264   :  { %1479 = vmatpush1.bf16.msra.mxu0 %v4044_v61  ;;  %1520 = vmatpush1.bf16.msra.mxu1 %v4049_v62 }
 0x265   :  { %1480 = vmatprep.subr.bf16.mxu0 %v4063_v0  ;;  %1521 = vmatprep.subr.bf16.mxu1 %v4068_v1 }
 0x268   :  { %1481 = vmatpush1.bf16.msra.mxu0 %v4075_v2  ;;  %1522 = vmatpush1.bf16.msra.mxu1 %v4080_v3 }
 0x269   :  { %1575 = vmatprep.subr.bf16.mxu0 %v3850_v21  ;;  %1616 = vmatprep.subr.bf16.mxu1 %v3855_v22 }
 0x31e   :  { %v1391_v17 = vpop.f32.mrb[20].mxu0  ;;  %v1432_v63 = vpop.f32.mrb[20].mxu1 }
 0x31f   :  { %v1439_v51 = vadd.f32 %v1391_v17, %v856_v52  ;;  %v1441_v15 = vadd.f32 %v1432_v63, %v969_v53  ;;  %v1393_v12 = vpop.f32.mrb[21].mxu0  ;;  %v1434_v5 = vpop.f32.mrb[21].mxu1 }
 0x320   :  { %v1440_v10 = vadd.f32 %v1393_v12, %v4172_v25  ;;  %v1442_v40 = vadd.f32 %v1434_v5, %v971_v4  ;;  %v1395_v6 = vpop.f32.mrb[22].mxu0  ;;  %v1436_v45 = vpop.f32.mrb[22].mxu1  ;;  %v4926_v12 = vld [vmem:[#allocation26_spill] sm:$0xff] }
 0x321   :  { %3181 = vtanh.f32 %v1439_v51  ;;  %v1396_v50 = vpop.f32.mrb[23].mxu0  ;;  %v1437_v8 = vpop.f32.mrb[23].mxu1  ;;  %v4925_v51 = vld [vmem:[#allocation25_spill] sm:$0xff]  ;;  %v977_v5 = vadd.f32 %v4926_v12, %v4123_v58 }
 0x322   :  { %3183 = vtanh.f32 %v1440_v10 }
 0x323   :  { %3185 = vtanh.f32 %v1441_v15  ;;  %v975_v15 = vadd.f32 %v4925_v51, %v4118_v19 }
 0x324   :  { %3187 = vtanh.f32 %v1442_v40 }
 0x32b   :  { %v3182_v9 = vpop.eup %3181 }
 0x32c   :  { %v1447_v13 = vadd.f32 1.0, %v3182_v9  ;;  %v3184_v57 = vpop.eup %3183  ;;  %v4927_v9 = vld [vmem:[#allocation27_spill] sm:$0xff] }
 0x32d   :  { %v1449_v56 = vadd.f32 1.0, %v3184_v57  ;;  %v3186_v14 = vpop.eup %3185 }
 0x32e   :  { %v1448_v20 = vmul.f32 0.5, %v1447_v13  ;;  %v3188_v7 = vpop.eup %3187 }
 0x32f   :  { %v1450_v54 = vmul.f32 0.5, %v1449_v56  ;;  %v1451_v52 = vadd.f32 1.0, %v3188_v7 }
 0x330   :  { %v1454_v55 = vmul.f32 %v3186_v14, %v1448_v20 }
 0x331   :  { %v1453_v35 = vmul.f32 %v1450_v54, %v4218_v16  ;;  %v1452_v53 = vmul.f32 0.5, %v1451_v52  ;;  %v862_v16 = vadd.f32 %v4174_v30, %v4115_v18 }
 0x333   :  { %v4263_v25 = vadd.f32 %v1454_v55, %v1453_v35 }
 0x335   :  { %3189 = vtanh.f32 %v4263_v25 }
 0x33f   :  { %v3190_v4 = vpop.eup %3189 }
 0x340   :  { %v1457_v17 = vmul.f32 %v3190_v4, %v1452_v53 }
 0x342   :  { %v1465_v63 = vpack.c.bf16 %v1457_v17, %v1457_v17 }
 0x344   :  { %1499 = vmatmul.mubr.bf16.vlgmr.msra.gmra.mrb[24].mxu0 %v1465_v63  ;;  %1540 = vmatmul.mubr.bf16.vlgmr.msra.gmra.mrb[24].mxu1 %v1465_v63 }
 0x345   :  { %1576 = vmatpush1.bf16.msra.mxu0 %v3860_v23  ;;  %1617 = vmatpush1.bf16.msra.mxu1 %v3865_v24 }
 0x346   :  { %1577 = vmatprep.subr.bf16.mxu0 %v3877_v26  ;;  %1618 = vmatprep.subr.bf16.mxu1 %v3882_v27 }
 0x347   :  { %1607 = vmatprep.mubr.bf16.mxu0 %v4904_v11  ;;  %1648 = vmatprep.mubr.bf16.mxu1 %v4904_v11 }
 0x349   :  { %1578 = vmatpush1.bf16.msra.mxu0 %v3889_v28  ;;  %1619 = vmatpush1.bf16.msra.mxu1 %v3894_v29 }
 0x34a   :  { %1579 = vmatprep.subr.bf16.mxu0 %v3908_v31  ;;  %1620 = vmatprep.subr.bf16.mxu1 %v3913_v32 }
 0x34d   :  { %1580 = vmatpush1.bf16.msra.mxu0 %v3920_v33  ;;  %1621 = vmatpush1.bf16.msra.mxu1 %v3925_v34 }
 0x34e   :  { %1581 = vmatprep.subr.bf16.mxu0 %v3939_v36  ;;  %1622 = vmatprep.subr.bf16.mxu1 %v3944_v37 }
 0x351   :  { %1582 = vmatpush1.bf16.msra.mxu0 %v3951_v38  ;;  %1623 = vmatpush1.bf16.msra.mxu1 %v3956_v39 }
 0x352   :  { %1583 = vmatprep.subr.bf16.mxu0 %v3970_v41  ;;  %1624 = vmatprep.subr.bf16.mxu1 %v3975_v42 }
 0x355   :  { %1584 = vmatpush1.bf16.msra.mxu0 %v3982_v43  ;;  %1625 = vmatpush1.bf16.msra.mxu1 %v3987_v44 }
 0x356   :  { %1585 = vmatprep.subr.bf16.mxu0 %v4001_v46  ;;  %1626 = vmatprep.subr.bf16.mxu1 %v4006_v47 }
 0x359   :  { %1586 = vmatpush1.bf16.msra.mxu0 %v4013_v48  ;;  %1627 = vmatpush1.bf16.msra.mxu1 %v4018_v49 }
 0x35a   :  { %1587 = vmatprep.subr.bf16.mxu0 %v4032_v59  ;;  %1628 = vmatprep.subr.bf16.mxu1 %v4037_v60 }
 0x35d   :  { %1588 = vmatpush1.bf16.msra.mxu0 %v4044_v61  ;;  %1629 = vmatpush1.bf16.msra.mxu1 %v4049_v62 }
 0x35e   :  { %1589 = vmatprep.subr.bf16.mxu0 %v4063_v0  ;;  %1630 = vmatprep.subr.bf16.mxu1 %v4068_v1 }
 0x361   :  { %1590 = vmatpush1.bf16.msra.mxu0 %v4075_v2  ;;  %1631 = vmatpush1.bf16.msra.mxu1 %v4080_v3 }
 0x362   :  { %1684 = vmatprep.subr.bf16.mxu0 %v3850_v21  ;;  %1725 = vmatprep.subr.bf16.mxu1 %v3855_v22 }
 0x417   :  { %v1500_v10 = vpop.f32.mrb[24].mxu0  ;;  %v1541_v40 = vpop.f32.mrb[24].mxu1 }
 0x418   :  { %v1548_v6 = vadd.f32 %v1500_v10, %v862_v16  ;;  %v1550_v45 = vadd.f32 %v1541_v40, %v975_v15  ;;  %v1502_v50 = vpop.f32.mrb[25].mxu0  ;;  %v1543_v8 = vpop.f32.mrb[25].mxu1 }
 0x419   :  { %v1549_v13 = vadd.f32 %v1502_v50, %v4927_v9  ;;  %v1551_v57 = vadd.f32 %v1543_v8, %v977_v5  ;;  %v1504_v20 = vpop.f32.mrb[26].mxu0  ;;  %v1545_v56 = vpop.f32.mrb[26].mxu1  ;;  %v4930_v8 = vld [vmem:[#allocation30_spill] sm:$0xff] }
 0x41a   :  { %3191 = vtanh.f32 %v1548_v6  ;;  %v1505_v14 = vpop.f32.mrb[27].mxu0  ;;  %v1546_v30 = vpop.f32.mrb[27].mxu1  ;;  %v983_v9 = vadd.f32 %v4930_v8, %v4123_v58 }
 0x41b   :  { %3193 = vtanh.f32 %v1549_v13 }
 0x41c   :  { %3195 = vtanh.f32 %v1550_v45  ;;  %v4929_v45 = vld [vmem:[#allocation29_spill] sm:$0xff] }
 0x41d   :  { %3197 = vtanh.f32 %v1551_v57  ;;  %v981_v50 = vadd.f32 %v4929_v45, %v4118_v19 }
 0x424   :  { %v3192_v54 = vpop.eup %3191 }
 0x425   :  { %v1556_v55 = vadd.f32 1.0, %v3192_v54  ;;  %v3194_v35 = vpop.eup %3193  ;;  %v4931_v54 = vld [vmem:[#allocation31_spill] sm:$0xff] }
 0x426   :  { %v1558_v52 = vadd.f32 1.0, %v3194_v35  ;;  %v3196_v53 = vpop.eup %3195 }
 0x427   :  { %v1557_v7 = vmul.f32 0.5, %v1556_v55  ;;  %v3198_v51 = vpop.eup %3197 }
 0x428   :  { %v1559_v4 = vmul.f32 0.5, %v1558_v52  ;;  %v1560_v15 = vadd.f32 1.0, %v3198_v51 }
 0x429   :  { %v1563_v17 = vmul.f32 %v3196_v53, %v1557_v7 }
 0x42a   :  { %v1562_v63 = vmul.f32 %v1559_v4, %v4263_v25  ;;  %v1561_v12 = vmul.f32 0.5, %v1560_v15  ;;  %v4928_v25 = vld [vmem:[#allocation28_spill] sm:$0xff] }
 0x42b   :  { %v868_v6 = vadd.f32 %v4928_v25, %v4115_v18 }
 0x42c   :  { %v4308_v16 = vadd.f32 %v1563_v17, %v1562_v63 }
 0x42e   :  { %3199 = vtanh.f32 %v4308_v16 }
 0x438   :  { %v3200_v5 = vpop.eup %3199 }
 0x439   :  { %v1566_v10 = vmul.f32 %v3200_v5, %v1561_v12 }
 0x43b   :  { %v1574_v40 = vpack.c.bf16 %v1566_v10, %v1566_v10 }
 0x43d   :  { %1608 = vmatmul.mubr.bf16.vlgmr.msra.gmra.mrb[28].mxu0 %v1574_v40  ;;  %1649 = vmatmul.mubr.bf16.vlgmr.msra.gmra.mrb[28].mxu1 %v1574_v40 }
 0x43e   :  { %1685 = vmatpush1.bf16.msra.mxu0 %v3860_v23  ;;  %1726 = vmatpush1.bf16.msra.mxu1 %v3865_v24 }
 0x43f   :  { %1686 = vmatprep.subr.bf16.mxu0 %v3877_v26  ;;  %1727 = vmatprep.subr.bf16.mxu1 %v3882_v27 }
 0x440   :  { %1716 = vmatprep.mubr.bf16.mxu0 %v4904_v11  ;;  %1757 = vmatprep.mubr.bf16.mxu1 %v4904_v11 }
 0x442   :  { %1687 = vmatpush1.bf16.msra.mxu0 %v3889_v28  ;;  %1728 = vmatpush1.bf16.msra.mxu1 %v3894_v29 }
 0x443   :  { %1688 = vmatprep.subr.bf16.mxu0 %v3908_v31  ;;  %1729 = vmatprep.subr.bf16.mxu1 %v3913_v32 }
 0x446   :  { %1689 = vmatpush1.bf16.msra.mxu0 %v3920_v33  ;;  %1730 = vmatpush1.bf16.msra.mxu1 %v3925_v34 }
 0x447   :  { %1690 = vmatprep.subr.bf16.mxu0 %v3939_v36  ;;  %1731 = vmatprep.subr.bf16.mxu1 %v3944_v37 }
 0x44a   :  { %1691 = vmatpush1.bf16.msra.mxu0 %v3951_v38  ;;  %1732 = vmatpush1.bf16.msra.mxu1 %v3956_v39 }
 0x44b   :  { %1692 = vmatprep.subr.bf16.mxu0 %v3970_v41  ;;  %1733 = vmatprep.subr.bf16.mxu1 %v3975_v42 }
 0x44e   :  { %1693 = vmatpush1.bf16.msra.mxu0 %v3982_v43  ;;  %1734 = vmatpush1.bf16.msra.mxu1 %v3987_v44 }
 0x44f   :  { %1694 = vmatprep.subr.bf16.mxu0 %v4001_v46  ;;  %1735 = vmatprep.subr.bf16.mxu1 %v4006_v47 }
 0x452   :  { %1695 = vmatpush1.bf16.msra.mxu0 %v4013_v48  ;;  %1736 = vmatpush1.bf16.msra.mxu1 %v4018_v49 }
 0x453   :  { %1696 = vmatprep.subr.bf16.mxu0 %v4032_v59  ;;  %1737 = vmatprep.subr.bf16.mxu1 %v4037_v60 }
 0x456   :  { %1697 = vmatpush1.bf16.msra.mxu0 %v4044_v61  ;;  %1738 = vmatpush1.bf16.msra.mxu1 %v4049_v62 }
 0x457   :  { %1698 = vmatprep.subr.bf16.mxu0 %v4063_v0  ;;  %1739 = vmatprep.subr.bf16.mxu1 %v4068_v1 }
 0x45a   :  { %1699 = vmatpush1.bf16.msra.mxu0 %v4075_v2  ;;  %1740 = vmatpush1.bf16.msra.mxu1 %v4080_v3 }
 0x45b   :  { %1793 = vmatprep.subr.bf16.mxu0 %v3850_v21  ;;  %1834 = vmatprep.subr.bf16.mxu1 %v3855_v22 }
 0x510   :  { %v1609_v13 = vpop.f32.mrb[28].mxu0  ;;  %v1650_v57 = vpop.f32.mrb[28].mxu1 }
 0x511   :  { %v1657_v20 = vadd.f32 %v1609_v13, %v868_v6  ;;  %v1659_v56 = vadd.f32 %v1650_v57, %v981_v50  ;;  %v1611_v14 = vpop.f32.mrb[29].mxu0  ;;  %v1652_v30 = vpop.f32.mrb[29].mxu1 }
 0x512   :  { %v1658_v55 = vadd.f32 %v1611_v14, %v4931_v54  ;;  %v1660_v35 = vadd.f32 %v1652_v30, %v983_v9  ;;  %v1613_v7 = vpop.f32.mrb[30].mxu0  ;;  %v1654_v52 = vpop.f32.mrb[30].mxu1 }
 0x513   :  { %3201 = vtanh.f32 %v1657_v20  ;;  %v1614_v53 = vpop.f32.mrb[31].mxu0  ;;  %v1655_v4 = vpop.f32.mrb[31].mxu1 }
 0x514   :  { %3203 = vtanh.f32 %v1658_v55 }
 0x515   :  { %3205 = vtanh.f32 %v1659_v56 }
 0x516   :  { %3207 = vtanh.f32 %v1660_v35 }
 0x51d   :  { %v3202_v17 = vpop.eup %3201 }
 0x51e   :  { %v1665_v63 = vadd.f32 1.0, %v3202_v17  ;;  %v3204_v51 = vpop.eup %3203 }
 0x51f   :  { %v1667_v12 = vadd.f32 1.0, %v3204_v51  ;;  %v3206_v5 = vpop.eup %3205 }
 0x520   :  { %v1666_v15 = vmul.f32 0.5, %v1665_v63  ;;  %v3208_v45 = vpop.eup %3207 }
 0x521   :  { %v1668_v10 = vmul.f32 0.5, %v1667_v12  ;;  %v1669_v50 = vadd.f32 1.0, %v3208_v45  ;;  %v3244_v45 = vld [vmem:[%s4874_s3 + $0x2c] ss:$16 sps:$4 sm:$0xff]  }
 0x522   :  { %v1672_v40 = vmul.f32 %v3206_v5, %v1666_v15 }
 0x523   :  { %v1671_v25 = vmul.f32 %v1668_v10, %v4308_v16  ;;  %v1670_v8 = vmul.f32 0.5, %v1669_v50  ;;  %v3245_v50 = vld [vmem:[%s4874_s3 + $0x20] ss:$16 sps:$4 sm:$0xff]  }
 0x525   :  { %v4353_v6 = vadd.f32 %v1672_v40, %v1671_v25  ;;  %v3241_v40 = vld [vmem:[%s4874_s3] ss:$16 sps:$4 sm:$0xff]   ;;  %v3242_v25 = vld [vmem:[%s4874_s3 + $0x8] ss:$16 sps:$4 sm:$0xff]  }
 0x527   :  { %3209 = vtanh.f32 %v4353_v6 }
 0x531   :  { %v3210_v9 = vpop.eup %3209 }
 0x532   :  { %v1675_v13 = vmul.f32 %v3210_v9, %v1670_v8  ;;  %v3246_v8 = vld [vmem:[%s4874_s3 + $0x28] ss:$16 sps:$4 sm:$0xff]   ;;  %v3247_v9 = vld [vmem:[%s4874_s3 + $0x44] ss:$16 sps:$4 sm:$0xff]  }
 0x534   :  { %v1683_v57 = vpack.c.bf16 %v1675_v13, %v1675_v13  ;;  %v3248_v13 = vld [vmem:[%s4874_s3 + $0x4c] ss:$16 sps:$4 sm:$0xff]  }
 0x536   :  { %1717 = vmatmul.mubr.bf16.vlgmr.msra.gmra.mrb[32].mxu0 %v1683_v57  ;;  %1758 = vmatmul.mubr.bf16.vlgmr.msra.gmra.mrb[32].mxu1 %v1683_v57  ;;  %v3249_v57 = vld [vmem:[%s4874_s3 + $0x40] ss:$16 sps:$4 sm:$0xff]  }
 0x537   :  { %1794 = vmatpush1.bf16.msra.mxu0 %v3860_v23  ;;  %1835 = vmatpush1.bf16.msra.mxu1 %v3865_v24  ;;  %v4932_v23 = vld [vmem:[#allocation32_spill] sm:$0xff] }
 0x538   :  { %1795 = vmatprep.subr.bf16.mxu0 %v3877_v26  ;;  %1836 = vmatprep.subr.bf16.mxu1 %v3882_v27  ;;  %v874_v24 = vadd.f32 %v4932_v23, %v4115_v18  ;;  %v4933_v26 = vld [vmem:[#allocation33_spill] sm:$0xff]  ;;  %v3250_v23 = vld [vmem:[%s4874_s3 + $0x48] ss:$16 sps:$4 sm:$0xff]  }
 0x539   :  { %1825 = vmatprep.mubr.bf16.mxu0 %v4904_v11  ;;  %1866 = vmatprep.mubr.bf16.mxu1 %v4904_v11  ;;  %v987_v27 = vadd.f32 %v4933_v26, %v4118_v19  ;;  %v3252_v26 = vld [vmem:[%s4874_s3 + $0x6c] ss:$16 sps:$4 sm:$0xff]  }
 0x53b   :  { %1796 = vmatpush1.bf16.msra.mxu0 %v3889_v28  ;;  %1837 = vmatpush1.bf16.msra.mxu1 %v3894_v29  ;;  %v4934_v28 = vld [vmem:[#allocation34_spill] sm:$0xff] }
 0x53c   :  { %1797 = vmatprep.subr.bf16.mxu0 %v3908_v31  ;;  %1838 = vmatprep.subr.bf16.mxu1 %v3913_v32  ;;  %v989_v29 = vadd.f32 %v4934_v28, %v4123_v58  ;;  %v3254_v28 = vld [vmem:[%s4874_s3 + $0x68] ss:$16 sps:$4 sm:$0xff]  }
 0x53f   :  { %1798 = vmatpush1.bf16.msra.mxu0 %v3920_v33  ;;  %1839 = vmatpush1.bf16.msra.mxu1 %v3925_v34 }
 0x540   :  { %1799 = vmatprep.subr.bf16.mxu0 %v3939_v36  ;;  %1840 = vmatprep.subr.bf16.mxu1 %v3944_v37 }
 0x543   :  { %1800 = vmatpush1.bf16.msra.mxu0 %v3951_v38  ;;  %1841 = vmatpush1.bf16.msra.mxu1 %v3956_v39  ;;  %v4935_v38 = vld [vmem:[#allocation35_spill] sm:$0xff] }
 0x544   :  { %1801 = vmatprep.subr.bf16.mxu0 %v3970_v41  ;;  %1842 = vmatprep.subr.bf16.mxu1 %v3975_v42 }
 0x547   :  { %1802 = vmatpush1.bf16.msra.mxu0 %v3982_v43  ;;  %1843 = vmatpush1.bf16.msra.mxu1 %v3987_v44 }
 0x548   :  { %1803 = vmatprep.subr.bf16.mxu0 %v4001_v46  ;;  %1844 = vmatprep.subr.bf16.mxu1 %v4006_v47 }
 0x54b   :  { %1804 = vmatpush1.bf16.msra.mxu0 %v4013_v48  ;;  %1845 = vmatpush1.bf16.msra.mxu1 %v4018_v49 }
 0x54c   :  { %1805 = vmatprep.subr.bf16.mxu0 %v4032_v59  ;;  %1846 = vmatprep.subr.bf16.mxu1 %v4037_v60 }
 0x54f   :  { %1806 = vmatpush1.bf16.msra.mxu0 %v4044_v61  ;;  %1847 = vmatpush1.bf16.msra.mxu1 %v4049_v62 }
 0x550   :  { %1807 = vmatprep.subr.bf16.mxu0 %v4063_v0  ;;  %1848 = vmatprep.subr.bf16.mxu1 %v4068_v1 }
 0x553   :  { %1808 = vmatpush1.bf16.msra.mxu0 %v4075_v2  ;;  %1849 = vmatpush1.bf16.msra.mxu1 %v4080_v3 }
 0x554   :  { %1902 = vmatprep.subr.bf16.mxu0 %v3850_v21  ;;  %1943 = vmatprep.subr.bf16.mxu1 %v3855_v22 }
 0x609   :  { %v1718_v31 = vpop.f32.mrb[32].mxu0  ;;  %v1759_v32 = vpop.f32.mrb[32].mxu1 }
 0x60a   :  { %v1766_v33 = vadd.f32 %v1718_v31, %v874_v24  ;;  %v1768_v34 = vadd.f32 %v1759_v32, %v987_v27  ;;  %v1720_v36 = vpop.f32.mrb[33].mxu0  ;;  %v1761_v37 = vpop.f32.mrb[33].mxu1  ;;  %v3251_v24 = vld [vmem:[%s4874_s3 + $0x64] ss:$16 sps:$4 sm:$0xff]   ;;  %v3253_v27 = vld [vmem:[%s4874_s3 + $0x60] ss:$16 sps:$4 sm:$0xff]  }
 0x60b   :  { %v1767_v39 = vadd.f32 %v1720_v36, %v4935_v38  ;;  %v1769_v21 = vadd.f32 %v1761_v37, %v989_v29  ;;  %v1722_v16 = vpop.f32.mrb[34].mxu0  ;;  %v1763_v22 = vpop.f32.mrb[34].mxu1 }
 0x60c   :  { %3211 = vtanh.f32 %v1766_v33  ;;  %v1723_v20 = vpop.f32.mrb[35].mxu0  ;;  %v1764_v56 = vpop.f32.mrb[35].mxu1 }
 0x60d   :  { %3213 = vtanh.f32 %v1767_v39 }
 0x60e   :  { %3215 = vtanh.f32 %v1768_v34 }
 0x60f   :  { %3217 = vtanh.f32 %v1769_v21 }
 0x616   :  { %v3212_v14 = vpop.eup %3211 }
 0x617   :  { %v1774_v30 = vadd.f32 1.0, %v3212_v14  ;;  %v3214_v54 = vpop.eup %3213 }
 0x618   :  { %v1776_v35 = vadd.f32 1.0, %v3214_v54  ;;  %v3216_v7 = vpop.eup %3215 }
 0x619   :  { %v1775_v55 = vmul.f32 0.5, %v1774_v30  ;;  %v3218_v63 = vpop.eup %3217 }
 0x61a   :  { %v1777_v52 = vmul.f32 0.5, %v1776_v35  ;;  %v1778_v51 = vadd.f32 1.0, %v3218_v63  ;;  %v4942_v63 = vld [vmem:[#allocation42_spill] sm:$0xff] }
 0x61b   :  { %v1781_v53 = vmul.f32 %v3216_v7, %v1775_v55  ;;  %v4940_v7 = vld [vmem:[#allocation40_spill] sm:$0xff] }
 0x61c   :  { %v1780_v4 = vmul.f32 %v1777_v52, %v4353_v6  ;;  %v1779_v15 = vmul.f32 0.5, %v1778_v51  ;;  %v3243_v6 = vld [vmem:[%s4874_s3 + $0x24] ss:$16 sps:$4 sm:$0xff]   ;;  %v886_v52 = vadd.f32 %v4940_v7, %v4115_v18  ;;  %v1001_v51 = vadd.f32 %v4942_v63, %v4123_v58 }
 0x61e   :  { %v4398_v17 = vadd.f32 %v1781_v53, %v1780_v4  ;;  %v4941_v53 = vld [vmem:[#allocation41_spill] sm:$0xff] }
 0x61f   :  { %v999_v4 = vadd.f32 %v4941_v53, %v4118_v19 }
 0x620   :  { %3219 = vtanh.f32 %v4398_v17 }
 0x62a   :  { %v3220_v12 = vpop.eup %3219 }
 0x62b   :  { %v1784_v5 = vmul.f32 %v3220_v12, %v1779_v15 }
 0x62d   :  { %v1792_v10 = vpack.c.bf16 %v1784_v5, %v1784_v5 }
 0x62f   :  { %1826 = vmatmul.mubr.bf16.vlgmr.msra.gmra.mrb[36].mxu0 %v1792_v10  ;;  %1867 = vmatmul.mubr.bf16.vlgmr.msra.gmra.mrb[36].mxu1 %v1792_v10 }
 0x630   :  { %1903 = vmatpush1.bf16.msra.mxu0 %v3241_v40  ;;  %1944 = vmatpush1.bf16.msra.mxu1 %v3242_v25  ;;  %v4943_v25 = vld [vmem:[#allocation43_spill] sm:$0xff] }
 0x631   :  { %1904 = vmatprep.subr.bf16.mxu0 %v3243_v6  ;;  %1945 = vmatprep.subr.bf16.mxu1 %v3244_v45 }
 0x632   :  { %1934 = vmatprep.mubr.bf16.mxu0 %v4904_v11  ;;  %1975 = vmatprep.mubr.bf16.mxu1 %v4904_v11 }
 0x634   :  { %1905 = vmatpush1.bf16.msra.mxu0 %v3245_v50  ;;  %1946 = vmatpush1.bf16.msra.mxu1 %v3246_v8 }
 0x635   :  { %1906 = vmatprep.subr.bf16.mxu0 %v3247_v9  ;;  %1947 = vmatprep.subr.bf16.mxu1 %v3248_v13 }
 0x638   :  { %1907 = vmatpush1.bf16.msra.mxu0 %v3249_v57  ;;  %1948 = vmatpush1.bf16.msra.mxu1 %v3250_v23 }
 0x639   :  { %1908 = vmatprep.subr.bf16.mxu0 %v3251_v24  ;;  %1949 = vmatprep.subr.bf16.mxu1 %v3252_v26 }
 0x63c   :  { %1909 = vmatpush1.bf16.msra.mxu0 %v3253_v27  ;;  %1950 = vmatpush1.bf16.msra.mxu1 %v3254_v28 }
 0x63d   :  { %1910 = vmatprep.subr.bf16.mxu0 %v3970_v41  ;;  %1951 = vmatprep.subr.bf16.mxu1 %v3975_v42  ;;  %v4936_v41 = vld [vmem:[#allocation36_spill] sm:$0xff] }
 0x63e   :  { %v880_v42 = vadd.f32 %v4936_v41, %v4115_v18 }
 0x640   :  { %1911 = vmatpush1.bf16.msra.mxu0 %v3982_v43  ;;  %1952 = vmatpush1.bf16.msra.mxu1 %v3987_v44  ;;  %v4937_v43 = vld [vmem:[#allocation37_spill] sm:$0xff] }
 0x641   :  { %1912 = vmatprep.subr.bf16.mxu0 %v4001_v46  ;;  %1953 = vmatprep.subr.bf16.mxu1 %v4006_v47  ;;  %v993_v44 = vadd.f32 %v4937_v43, %v4118_v19  ;;  %v4938_v46 = vld [vmem:[#allocation38_spill] sm:$0xff] }
 0x642   :  { %v995_v47 = vadd.f32 %v4938_v46, %v4123_v58 }
 0x644   :  { %1913 = vmatpush1.bf16.msra.mxu0 %v4013_v48  ;;  %1954 = vmatpush1.bf16.msra.mxu1 %v4018_v49 }
 0x645   :  { %1914 = vmatprep.subr.bf16.mxu0 %v4032_v59  ;;  %1955 = vmatprep.subr.bf16.mxu1 %v4037_v60 }
 0x648   :  { %1915 = vmatpush1.bf16.msra.mxu0 %v4044_v61  ;;  %1956 = vmatpush1.bf16.msra.mxu1 %v4049_v62 }
 0x649   :  { %1916 = vmatprep.subr.bf16.mxu0 %v4063_v0  ;;  %1957 = vmatprep.subr.bf16.mxu1 %v4068_v1  ;;  %v4939_v0 = vld [vmem:[#allocation39_spill] sm:$0xff] }
 0x64c   :  { %1917 = vmatpush1.bf16.msra.mxu0 %v4075_v2  ;;  %1958 = vmatpush1.bf16.msra.mxu1 %v4080_v3 }
 0x702   :  { %v1827_v48 = vpop.f32.mrb[36].mxu0  ;;  %v1868_v49 = vpop.f32.mrb[36].mxu1 }
 0x703   :  { %v1875_v59 = vadd.f32 %v1827_v48, %v880_v42  ;;  %v1877_v60 = vadd.f32 %v1868_v49, %v993_v44  ;;  %v1829_v61 = vpop.f32.mrb[37].mxu0  ;;  %v1870_v62 = vpop.f32.mrb[37].mxu1 }
 0x704   :  { %v1876_v1 = vadd.f32 %v1829_v61, %v4939_v0  ;;  %v1878_v2 = vadd.f32 %v1870_v62, %v995_v47  ;;  %v1831_v29 = vpop.f32.mrb[38].mxu0  ;;  %v1872_v3 = vpop.f32.mrb[38].mxu1 }
 0x705   :  { %3221 = vtanh.f32 %v1875_v59  ;;  %v1832_v31 = vpop.f32.mrb[39].mxu0  ;;  %v1873_v32 = vpop.f32.mrb[39].mxu1 }
 0x706   :  { %3223 = vtanh.f32 %v1876_v1 }
 0x707   :  { %3225 = vtanh.f32 %v1877_v60 }
 0x708   :  { %3227 = vtanh.f32 %v1878_v2 }
 0x70f   :  { %v3222_v33 = vpop.eup %3221 }
 0x710   :  { %v1883_v34 = vadd.f32 1.0, %v3222_v33  ;;  %v3224_v36 = vpop.eup %3223 }
 0x711   :  { %v1885_v38 = vadd.f32 1.0, %v3224_v36  ;;  %v3226_v39 = vpop.eup %3225 }
 0x712   :  { %v1884_v37 = vmul.f32 0.5, %v1883_v34  ;;  %v3228_v56 = vpop.eup %3227 }
 0x713   :  { %v1886_v21 = vmul.f32 0.5, %v1885_v38  ;;  %v1887_v14 = vadd.f32 1.0, %v3228_v56 }
 0x714   :  { %v1890_v16 = vmul.f32 %v3226_v39, %v1884_v37 }
 0x715   :  { %v1889_v22 = vmul.f32 %v1886_v21, %v4398_v17  ;;  %v1888_v30 = vmul.f32 0.5, %v1887_v14 }
 0x717   :  { %v1891_v20 = vadd.f32 %v1890_v16, %v1889_v22 }
 0x719   :  { %3229 = vtanh.f32 %v1891_v20 }
 0x723   :  { %v3230_v54 = vpop.eup %3229 }
 0x724   :  { %v1893_v55 = vmul.f32 %v3230_v54, %v1888_v30 }
 0x726   :  { %v1901_v35 = vpack.c.bf16 %v1893_v55, %v1893_v55 }
 0x728   :  { %1935 = vmatmul.mubr.bf16.vlgmr.msra.gmra.mrb[40].mxu0 %v1901_v35  ;;  %1976 = vmatmul.mubr.bf16.vlgmr.msra.gmra.mrb[40].mxu1 %v1901_v35 }
 0x7fb   :  { %v1936_v17 = vpop.f32.mrb[40].mxu0  ;;  %v1977_v15 = vpop.f32.mrb[40].mxu1 }
 0x7fc   :  { %v1984_v12 = vadd.f32 %v1936_v17, %v886_v52  ;;  %v1986_v5 = vadd.f32 %v1977_v15, %v999_v4  ;;  %v1938_v10 = vpop.f32.mrb[41].mxu0  ;;  %v1979_v40 = vpop.f32.mrb[41].mxu1 }
 0x7fd   :  { %v1985_v6 = vadd.f32 %v1938_v10, %v4943_v25  ;;  %v1987_v45 = vadd.f32 %v1979_v40, %v1001_v51  ;;  %v1940_v50 = vpop.f32.mrb[42].mxu0  ;;  %v1981_v8 = vpop.f32.mrb[42].mxu1 }
 0x7fe   :  { %3231 = vtanh.f32 %v1984_v12  ;;  %v1941_v9 = vpop.f32.mrb[43].mxu0  ;;  %v1982_v18 = vpop.f32.mrb[43].mxu1 }
 0x7ff   :  { %3233 = vtanh.f32 %v1985_v6 }
 0x800   :  { %3235 = vtanh.f32 %v1986_v5 }
 0x801   :  { %3237 = vtanh.f32 %v1987_v45 }
 0x808   :  { %v3232_v19 = vpop.eup %3231 }
 0x809   :  { %v1992_v13 = vadd.f32 1.0, %v3232_v19  ;;  %v3234_v57 = vpop.eup %3233 }
 0x80a   :  { %v1994_v23 = vadd.f32 1.0, %v3234_v57  ;;  %v3236_v24 = vpop.eup %3235 }
 0x80b   :  { %v1993_v58 = vmul.f32 0.5, %v1992_v13  ;;  %v3238_v42 = vpop.eup %3237 }
 0x80c   :  { %v1995_v26 = vmul.f32 0.5, %v1994_v23  ;;  %v1996_v43 = vadd.f32 1.0, %v3238_v42 }
 0x80d   :  { %v1999_v27 = vmul.f32 %v3236_v24, %v1993_v58 }
 0x80e   :  { %v1998_v28 = vmul.f32 %v1995_v26, %v1891_v20  ;;  %v1997_v44 = vmul.f32 0.5, %v1996_v43 }
 0x810   :  { %v4476_v41 = vadd.f32 %v1999_v27, %v1998_v28 }
 0x812   :  { %3239 = vtanh.f32 %v4476_v41 }
 0x81c   :  { %v3240_v46 = vpop.eup %3239 }
 0x81d   :  { %v4479_v47 = vmul.f32 %v3240_v46, %v1997_v44 }
 0x81e   :  { %3335 = dma.done.wait [#allocation6], 4096 }
 0x81f   :  { %3336 = vsyncadd [#allocation6], 4294963200  ;;  %2094 = vmatprep.mubr.bf16.mxu0 %v4904_v11  ;;  %2135 = vmatprep.mubr.bf16.mxu1 %v4904_v11  ;;  %v2031_v48 = vld [vmem:[#allocation3 + $0x8] sm:$0xff]  ;;  %v2030_v49 = vld [vmem:[#allocation3] sm:$0xff]  ;;  %v2029_v4 = vpack.c.bf16 %v4479_v47, %v4479_v47 }
 0x820   :  { %v2033_v59 = vld [vmem:[#allocation3 + $0x18] sm:$0xff]  ;;  %2062 = vmatprep.subr.bf16.mxu0 %v2031_v48  ;;  %v2032_v60 = vld [vmem:[#allocation3 + $0x10] sm:$0xff]  ;;  %v2035_v61 = vld [vmem:[#allocation3 + $0x28] sm:$0xff] }
 0x821   :  { %2103 = vmatprep.subr.bf16.mxu1 %v2033_v59  ;;  %2063 = vmatpush1.bf16.msra.mxu0 %v2030_v49  ;;  %v2037_v62 = vld [vmem:[#allocation3 + $0x38] sm:$0xff]  ;;  %v2034_v0 = vld [vmem:[#allocation3 + $0x20] sm:$0xff]  ;;  %v2036_v1 = vld [vmem:[#allocation3 + $0x30] sm:$0xff] }
 0x822   :  { %2104 = vmatpush1.bf16.msra.mxu1 %v2032_v60  ;;  %2064 = vmatprep.subr.bf16.mxu0 %v2035_v61  ;;  %v2039_v2 = vld [vmem:[#allocation3 + $0x48] sm:$0xff]  ;;  %v2041_v29 = vld [vmem:[#allocation3 + $0x58] sm:$0xff]  ;;  %v2038_v3 = vld [vmem:[#allocation3 + $0x40] sm:$0xff] }
 0x823   :  { %2105 = vmatprep.subr.bf16.mxu1 %v2037_v62  ;;  %v2040_v31 = vld [vmem:[#allocation3 + $0x50] sm:$0xff]  ;;  %v2043_v32 = vld [vmem:[#allocation3 + $0x68] sm:$0xff]  ;;  %v2045_v33 = vld [vmem:[#allocation3 + $0x78] sm:$0xff] }
 0x824   :  { %v2042_v34 = vld [vmem:[#allocation3 + $0x60] sm:$0xff]  ;;  %v2044_v36 = vld [vmem:[#allocation3 + $0x70] sm:$0xff]  ;;  %v2047_v37 = vld [vmem:[#allocation3 + $0x88] sm:$0xff] }
 0x825   :  { %2065 = vmatpush1.bf16.msra.mxu0 %v2034_v0  ;;  %v2049_v38 = vld [vmem:[#allocation3 + $0x98] sm:$0xff]  ;;  %v2046_v39 = vld [vmem:[#allocation3 + $0x80] sm:$0xff]  ;;  %v2048_v21 = vld [vmem:[#allocation3 + $0x90] sm:$0xff] }
 0x826   :  { %2106 = vmatpush1.bf16.msra.mxu1 %v2036_v1  ;;  %2066 = vmatprep.subr.bf16.mxu0 %v2039_v2  ;;  %v2051_v16 = vld [vmem:[#allocation3 + $0xa8] sm:$0xff]  ;;  %v2053_v22 = vld [vmem:[#allocation3 + $0xb8] sm:$0xff]  ;;  %v2050_v20 = vld [vmem:[#allocation3 + $0xa0] sm:$0xff] }
 0x827   :  { %2107 = vmatprep.subr.bf16.mxu1 %v2041_v29  ;;  %v2052_v56 = vld [vmem:[#allocation3 + $0xb0] sm:$0xff]  ;;  %v2055_v14 = vld [vmem:[#allocation3 + $0xc8] sm:$0xff]  ;;  %v2057_v30 = vld [vmem:[#allocation3 + $0xd8] sm:$0xff] }
 0x828   :  { %v2054_v54 = vld [vmem:[#allocation3 + $0xc0] sm:$0xff]  ;;  %v2056_v55 = vld [vmem:[#allocation3 + $0xd0] sm:$0xff]  ;;  %v2059_v35 = vld [vmem:[#allocation3 + $0xe8] sm:$0xff] }
 0x829   :  { %2067 = vmatpush1.bf16.msra.mxu0 %v2038_v3  ;;  %v2061_v7 = vld [vmem:[#allocation3 + $0xf8] sm:$0xff]  ;;  %v2058_v52 = vld [vmem:[#allocation3 + $0xe0] sm:$0xff]  ;;  %v2060_v53 = vld [vmem:[#allocation3 + $0xf0] sm:$0xff] }
 0x82a   :  { %2108 = vmatpush1.bf16.msra.mxu1 %v2040_v31  ;;  %2068 = vmatprep.subr.bf16.mxu0 %v2043_v32  ;;  %v4944_v17 = vld [vmem:[#allocation21_spill] sm:$0xff]  ;;  %v4945_v5 = vld [vmem:[#allocation23_spill] sm:$0xff]  ;;  %v4946_v25 = vld [vmem:[#allocation22_spill] sm:$0xff] }
 0x82b   :  { %2109 = vmatprep.subr.bf16.mxu1 %v2045_v33  ;;  %v4947_v18 = vld [vmem:[#allocation24_spill] sm:$0xff] }
 0x82d   :  { %2069 = vmatpush1.bf16.msra.mxu0 %v2042_v34 }
 0x82e   :  { %2110 = vmatpush1.bf16.msra.mxu1 %v2044_v36  ;;  %2070 = vmatprep.subr.bf16.mxu0 %v2047_v37 }
 0x82f   :  { %2111 = vmatprep.subr.bf16.mxu1 %v2049_v38 }
 0x831   :  { %2071 = vmatpush1.bf16.msra.mxu0 %v2046_v39 }
 0x832   :  { %2112 = vmatpush1.bf16.msra.mxu1 %v2048_v21  ;;  %2072 = vmatprep.subr.bf16.mxu0 %v2051_v16 }
 0x833   :  { %2113 = vmatprep.subr.bf16.mxu1 %v2053_v22 }
 0x835   :  { %2073 = vmatpush1.bf16.msra.mxu0 %v2050_v20 }
 0x836   :  { %2114 = vmatpush1.bf16.msra.mxu1 %v2052_v56  ;;  %2074 = vmatprep.subr.bf16.mxu0 %v2055_v14 }
 0x837   :  { %2115 = vmatprep.subr.bf16.mxu1 %v2057_v30 }
 0x839   :  { %2075 = vmatpush1.bf16.msra.mxu0 %v2054_v54 }
 0x83a   :  { %2116 = vmatpush1.bf16.msra.mxu1 %v2056_v55  ;;  %2076 = vmatprep.subr.bf16.mxu0 %v2059_v35 }
 0x83b   :  { %2117 = vmatprep.subr.bf16.mxu1 %v2061_v7 }
 0x83d   :  { %2077 = vmatpush1.bf16.msra.mxu0 %v2058_v52 }
 0x83e   :  { %2118 = vmatpush1.bf16.msra.mxu1 %v2060_v53 }
 0x840   :  { %2095 = vmatmul.mubr.bf16.vlgmr.msra.gmra.mrb[44].mxu0 %v2029_v4 }
 0x841   :  { %2136 = vmatmul.mubr.bf16.vlgmr.msra.gmra.mrb[44].mxu1 %v2029_v4 }
 0x913   :  { %v2096_v63 = vpop.f32.mrb[44].mxu0 }
 0x914   :  { %v2137_v51 = vpop.f32.mrb[44].mxu1  ;;  %v2097_v15 = vadd.f32 %v2096_v63, %v4944_v17  ;;  %v2098_v12 = vpop.f32.mrb[45].mxu0 }
 0x915   :  { %v2138_v10 = vadd.f32 %v2137_v51, %v4945_v5  ;;  %v2139_v40 = vpop.f32.mrb[45].mxu1  ;;  %v2099_v6 = vadd.f32 %v2098_v12, %v4946_v25  ;;  %v2100_v45 = vpop.f32.mrb[46].mxu0 }
 0x916   :  { %v2141_v50 = vpop.f32.mrb[46].mxu1  ;;  %3255 = vtanh.f32 %v2097_v15  ;;  %v2101_v8 = vpop.f32.mrb[47].mxu0  ;;  %v2140_v19 = vadd.f32 %v2139_v40, %v4947_v18 }
 0x917   :  { %v2142_v9 = vpop.f32.mrb[47].mxu1  ;;  %3257 = vtanh.f32 %v2099_v6 }
 0x918   :  { %3259 = vtanh.f32 %v2138_v10 }
 0x919   :  { %3261 = vtanh.f32 %v2140_v19 }
 0x920   :  { %v3256_v13 = vpop.eup %3255 }
 0x921   :  { %v3258_v57 = vpop.eup %3257  ;;  %v2148_v58 = vadd.f32 1.0, %v3256_v13 }
 0x922   :  { %v3260_v23 = vpop.eup %3259  ;;  %v2150_v24 = vadd.f32 1.0, %v3258_v57 }
 0x923   :  { %v2149_v26 = vmul.f32 0.5, %v2148_v58  ;;  %v3262_v44 = vpop.eup %3261 }
 0x924   :  { %v2151_v27 = vmul.f32 0.5, %v2150_v24  ;;  %v2152_v46 = vadd.f32 1.0, %v3262_v44 }
 0x925   :  { %v2155_v28 = vmul.f32 %v3260_v23, %v2149_v26 }
 0x926   :  { %v2154_v42 = vmul.f32 %v2151_v27, %v4476_v41  ;;  %v2153_v47 = vmul.f32 0.5, %v2152_v46 }
 0x928   :  { %v4490_v43 = vadd.f32 %v2155_v28, %v2154_v42 }
 0x92a   :  { %3263 = vtanh.f32 %v4490_v43 }
 0x934   :  { %v3264_v48 = vpop.eup %3263 }
 0x935   :  { %v4493_v49 = vmul.f32 %v3264_v48, %v2153_v47 }
 0x936   :  { %3337 = dma.done.wait [#allocation6 + $0x1], 4096 }
 0x937   :  { %3338 = vsyncadd [#allocation6 + $0x1], 4294963200  ;;  %2226 = vmatprep.mubr.bf16.mxu0 %v4904_v11  ;;  %2267 = vmatprep.mubr.bf16.mxu1 %v4904_v11  ;;  %v4497_v59 = vld [vmem:[#allocation4 + $0x8] sm:$0xff]  ;;  %v4499_v60 = vld [vmem:[#allocation4] sm:$0xff]  ;;  %v2161_v63 = vpack.c.bf16 %v4493_v49, %v4493_v49 }
 0x938   :  { %v4501_v41 = vld [vmem:[#allocation4 + $0x18] sm:$0xff]  ;;  %2194 = vmatprep.subr.bf16.mxu0 %v4497_v59  ;;  %v4505_v61 = vld [vmem:[#allocation4 + $0x10] sm:$0xff]  ;;  %v4507_v62 = vld [vmem:[#allocation4 + $0x28] sm:$0xff] }
 0x939   :  { %2235 = vmatprep.subr.bf16.mxu1 %v4501_v41  ;;  %2195 = vmatpush1.bf16.msra.mxu0 %v4499_v60  ;;  %v4511_v0 = vld [vmem:[#allocation4 + $0x38] sm:$0xff]  ;;  %v4514_v1 = vld [vmem:[#allocation4 + $0x20] sm:$0xff]  ;;  %v4517_v2 = vld [vmem:[#allocation4 + $0x30] sm:$0xff] }
 0x93a   :  { %2236 = vmatpush1.bf16.msra.mxu1 %v4505_v61  ;;  %2196 = vmatprep.subr.bf16.mxu0 %v4507_v62  ;;  %v4519_v29 = vld [vmem:[#allocation4 + $0x48] sm:$0xff]  ;;  %v4521_v3 = vld [vmem:[#allocation4 + $0x58] sm:$0xff]  ;;  %v4526_v31 = vld [vmem:[#allocation4 + $0x40] sm:$0xff] }
 0x93b   :  { %2237 = vmatprep.subr.bf16.mxu1 %v4511_v0  ;;  %v4529_v32 = vld [vmem:[#allocation4 + $0x50] sm:$0xff]  ;;  %v4531_v33 = vld [vmem:[#allocation4 + $0x68] sm:$0xff]  ;;  %v4533_v34 = vld [vmem:[#allocation4 + $0x78] sm:$0xff] }
 0x93c   :  { %v4538_v36 = vld [vmem:[#allocation4 + $0x60] sm:$0xff]  ;;  %v4541_v37 = vld [vmem:[#allocation4 + $0x70] sm:$0xff]  ;;  %v4543_v38 = vld [vmem:[#allocation4 + $0x88] sm:$0xff] }
 0x93d   :  { %2197 = vmatpush1.bf16.msra.mxu0 %v4514_v1  ;;  %v4545_v39 = vld [vmem:[#allocation4 + $0x98] sm:$0xff]  ;;  %v4550_v21 = vld [vmem:[#allocation4 + $0x80] sm:$0xff]  ;;  %v4553_v16 = vld [vmem:[#allocation4 + $0x90] sm:$0xff] }
 0x93e   :  { %2238 = vmatpush1.bf16.msra.mxu1 %v4517_v2  ;;  %2198 = vmatprep.subr.bf16.mxu0 %v4519_v29  ;;  %v4555_v22 = vld [vmem:[#allocation4 + $0xa8] sm:$0xff]  ;;  %v4557_v20 = vld [vmem:[#allocation4 + $0xb8] sm:$0xff]  ;;  %v4562_v56 = vld [vmem:[#allocation4 + $0xa0] sm:$0xff] }
 0x93f   :  { %2239 = vmatprep.subr.bf16.mxu1 %v4521_v3  ;;  %v4565_v14 = vld [vmem:[#allocation4 + $0xb0] sm:$0xff]  ;;  %v4567_v30 = vld [vmem:[#allocation4 + $0xc8] sm:$0xff]  ;;  %v4569_v54 = vld [vmem:[#allocation4 + $0xd8] sm:$0xff] }
 0x940   :  { %v4574_v55 = vld [vmem:[#allocation4 + $0xc0] sm:$0xff]  ;;  %v4577_v35 = vld [vmem:[#allocation4 + $0xd0] sm:$0xff]  ;;  %v4579_v7 = vld [vmem:[#allocation4 + $0xe8] sm:$0xff] }
 0x941   :  { %2199 = vmatpush1.bf16.msra.mxu0 %v4526_v31  ;;  %v4581_v52 = vld [vmem:[#allocation4 + $0xf8] sm:$0xff]  ;;  %v4586_v53 = vld [vmem:[#allocation4 + $0xe0] sm:$0xff]  ;;  %v4589_v4 = vld [vmem:[#allocation4 + $0xf0] sm:$0xff] }
 0x942   :  { %2240 = vmatpush1.bf16.msra.mxu1 %v4529_v32  ;;  %2200 = vmatprep.subr.bf16.mxu0 %v4531_v33 }
 0x943   :  { %2241 = vmatprep.subr.bf16.mxu1 %v4533_v34 }
 0x945   :  { %2201 = vmatpush1.bf16.msra.mxu0 %v4538_v36 }
 0x946   :  { %2242 = vmatpush1.bf16.msra.mxu1 %v4541_v37  ;;  %2202 = vmatprep.subr.bf16.mxu0 %v4543_v38 }
 0x947   :  { %2243 = vmatprep.subr.bf16.mxu1 %v4545_v39 }
 0x949   :  { %2203 = vmatpush1.bf16.msra.mxu0 %v4550_v21 }
 0x94a   :  { %2244 = vmatpush1.bf16.msra.mxu1 %v4553_v16  ;;  %2204 = vmatprep.subr.bf16.mxu0 %v4555_v22 }
 0x94b   :  { %2245 = vmatprep.subr.bf16.mxu1 %v4557_v20 }
 0x94d   :  { %2205 = vmatpush1.bf16.msra.mxu0 %v4562_v56 }
 0x94e   :  { %2246 = vmatpush1.bf16.msra.mxu1 %v4565_v14  ;;  %2206 = vmatprep.subr.bf16.mxu0 %v4567_v30 }
 0x94f   :  { %2247 = vmatprep.subr.bf16.mxu1 %v4569_v54 }
 0x951   :  { %2207 = vmatpush1.bf16.msra.mxu0 %v4574_v55 }
 0x952   :  { %2248 = vmatpush1.bf16.msra.mxu1 %v4577_v35  ;;  %2208 = vmatprep.subr.bf16.mxu0 %v4579_v7 }
 0x953   :  { %2249 = vmatprep.subr.bf16.mxu1 %v4581_v52 }
 0x955   :  { %2209 = vmatpush1.bf16.msra.mxu0 %v4586_v53 }
 0x956   :  { %2250 = vmatpush1.bf16.msra.mxu1 %v4589_v4  ;;  %2292 = vmatprep.subr.bf16.mxu0 %v4497_v59 }
 0x957   :  { %2333 = vmatprep.subr.bf16.mxu1 %v4501_v41 }
 0x958   :  { %2227 = vmatmul.mubr.bf16.vlgmr.msra.gmra.mrb[48].mxu0 %v2161_v63 }
 0x959   :  { %2268 = vmatmul.mubr.bf16.vlgmr.msra.gmra.mrb[48].mxu1 %v2161_v63  ;;  %2293 = vmatpush1.bf16.msra.mxu0 %v4499_v60 }
 0x95a   :  { %2334 = vmatpush1.bf16.msra.mxu1 %v4505_v61  ;;  %2294 = vmatprep.subr.bf16.mxu0 %v4507_v62 }
 0x95b   :  { %2335 = vmatprep.subr.bf16.mxu1 %v4511_v0  ;;  %2324 = vmatprep.mubr.bf16.mxu0 %v4904_v11 }
 0x95c   :  { %2365 = vmatprep.mubr.bf16.mxu1 %v4904_v11 }
 0x95d   :  { %2295 = vmatpush1.bf16.msra.mxu0 %v4514_v1 }
 0x95e   :  { %2336 = vmatpush1.bf16.msra.mxu1 %v4517_v2  ;;  %2296 = vmatprep.subr.bf16.mxu0 %v4519_v29 }
 0x95f   :  { %2337 = vmatprep.subr.bf16.mxu1 %v4521_v3 }
 0x961   :  { %2297 = vmatpush1.bf16.msra.mxu0 %v4526_v31 }
 0x962   :  { %2338 = vmatpush1.bf16.msra.mxu1 %v4529_v32  ;;  %2298 = vmatprep.subr.bf16.mxu0 %v4531_v33 }
 0x963   :  { %2339 = vmatprep.subr.bf16.mxu1 %v4533_v34 }
 0x965   :  { %2299 = vmatpush1.bf16.msra.mxu0 %v4538_v36 }
 0x966   :  { %2340 = vmatpush1.bf16.msra.mxu1 %v4541_v37  ;;  %2300 = vmatprep.subr.bf16.mxu0 %v4543_v38 }
 0x967   :  { %2341 = vmatprep.subr.bf16.mxu1 %v4545_v39 }
 0x969   :  { %2301 = vmatpush1.bf16.msra.mxu0 %v4550_v21 }
 0x96a   :  { %2342 = vmatpush1.bf16.msra.mxu1 %v4553_v16  ;;  %2302 = vmatprep.subr.bf16.mxu0 %v4555_v22 }
 0x96b   :  { %2343 = vmatprep.subr.bf16.mxu1 %v4557_v20 }
 0x96d   :  { %2303 = vmatpush1.bf16.msra.mxu0 %v4562_v56 }
 0x96e   :  { %2344 = vmatpush1.bf16.msra.mxu1 %v4565_v14  ;;  %2304 = vmatprep.subr.bf16.mxu0 %v4567_v30 }
 0x96f   :  { %2345 = vmatprep.subr.bf16.mxu1 %v4569_v54 }
 0x971   :  { %2305 = vmatpush1.bf16.msra.mxu0 %v4574_v55 }
 0x972   :  { %2346 = vmatpush1.bf16.msra.mxu1 %v4577_v35  ;;  %2306 = vmatprep.subr.bf16.mxu0 %v4579_v7 }
 0x973   :  { %2347 = vmatprep.subr.bf16.mxu1 %v4581_v52 }
 0x975   :  { %2307 = vmatpush1.bf16.msra.mxu0 %v4586_v53 }
 0x976   :  { %2348 = vmatpush1.bf16.msra.mxu1 %v4589_v4  ;;  %2390 = vmatprep.subr.bf16.mxu0 %v4497_v59 }
 0x977   :  { %2431 = vmatprep.subr.bf16.mxu1 %v4501_v41 }
 0xa2b   :  { %v2228_v51 = vpop.f32.mrb[48].mxu0 }
 0xa2c   :  { %v2269_v15 = vpop.f32.mrb[48].mxu1  ;;  %v2229_v12 = vadd.f32 %v2228_v51, %v4944_v17  ;;  %v2230_v10 = vpop.f32.mrb[49].mxu0 }
 0xa2d   :  { %v2270_v40 = vadd.f32 %v2269_v15, %v4945_v5  ;;  %v2271_v6 = vpop.f32.mrb[49].mxu1  ;;  %v2231_v45 = vadd.f32 %v2230_v10, %v4946_v25  ;;  %v2232_v50 = vpop.f32.mrb[50].mxu0 }
 0xa2e   :  { %v2273_v8 = vpop.f32.mrb[50].mxu1  ;;  %3265 = vtanh.f32 %v2229_v12  ;;  %v2233_v9 = vpop.f32.mrb[51].mxu0  ;;  %v2272_v13 = vadd.f32 %v2271_v6, %v4947_v18 }
 0xa2f   :  { %v2274_v19 = vpop.f32.mrb[51].mxu1  ;;  %3267 = vtanh.f32 %v2231_v45 }
 0xa30   :  { %3269 = vtanh.f32 %v2270_v40 }
 0xa31   :  { %3271 = vtanh.f32 %v2272_v13 }
 0xa38   :  { %v3266_v57 = vpop.eup %3265 }
 0xa39   :  { %v3268_v58 = vpop.eup %3267  ;;  %v2280_v23 = vadd.f32 1.0, %v3266_v57 }
 0xa3a   :  { %v3270_v24 = vpop.eup %3269  ;;  %v2282_v26 = vadd.f32 1.0, %v3268_v58 }
 0xa3b   :  { %v2281_v27 = vmul.f32 0.5, %v2280_v23  ;;  %v3272_v47 = vpop.eup %3271 }
 0xa3c   :  { %v2283_v28 = vmul.f32 0.5, %v2282_v26  ;;  %v2284_v48 = vadd.f32 1.0, %v3272_v47 }
 0xa3d   :  { %v2287_v42 = vmul.f32 %v3270_v24, %v2281_v27 }
 0xa3e   :  { %v2286_v44 = vmul.f32 %v2283_v28, %v4490_v43  ;;  %v2285_v49 = vmul.f32 0.5, %v2284_v48 }
 0xa40   :  { %v4636_v46 = vadd.f32 %v2287_v42, %v2286_v44 }
 0xa42   :  { %3273 = vtanh.f32 %v4636_v46 }
 0xa4c   :  { %v3274_v63 = vpop.eup %3273 }
 0xa4d   :  { %v2290_v51 = vmul.f32 %v3274_v63, %v2285_v49 }
 0xa4f   :  { %v2291_v15 = vpack.c.bf16 %v2290_v51, %v2290_v51 }
 0xa51   :  { %2325 = vmatmul.mubr.bf16.vlgmr.msra.gmra.mrb[52].mxu0 %v2291_v15  ;;  %2366 = vmatmul.mubr.bf16.vlgmr.msra.gmra.mrb[52].mxu1 %v2291_v15 }
 0xa52   :  { %2391 = vmatpush1.bf16.msra.mxu0 %v4499_v60  ;;  %2432 = vmatpush1.bf16.msra.mxu1 %v4505_v61 }
 0xa53   :  { %2392 = vmatprep.subr.bf16.mxu0 %v4507_v62  ;;  %2433 = vmatprep.subr.bf16.mxu1 %v4511_v0 }
 0xa54   :  { %2422 = vmatprep.mubr.bf16.mxu0 %v4904_v11  ;;  %2463 = vmatprep.mubr.bf16.mxu1 %v4904_v11 }
 0xa56   :  { %2393 = vmatpush1.bf16.msra.mxu0 %v4514_v1  ;;  %2434 = vmatpush1.bf16.msra.mxu1 %v4517_v2 }
 0xa57   :  { %2394 = vmatprep.subr.bf16.mxu0 %v4519_v29  ;;  %2435 = vmatprep.subr.bf16.mxu1 %v4521_v3 }
 0xa5a   :  { %2395 = vmatpush1.bf16.msra.mxu0 %v4526_v31  ;;  %2436 = vmatpush1.bf16.msra.mxu1 %v4529_v32 }
 0xa5b   :  { %2396 = vmatprep.subr.bf16.mxu0 %v4531_v33  ;;  %2437 = vmatprep.subr.bf16.mxu1 %v4533_v34 }
 0xa5e   :  { %2397 = vmatpush1.bf16.msra.mxu0 %v4538_v36  ;;  %2438 = vmatpush1.bf16.msra.mxu1 %v4541_v37 }
 0xa5f   :  { %2398 = vmatprep.subr.bf16.mxu0 %v4543_v38  ;;  %2439 = vmatprep.subr.bf16.mxu1 %v4545_v39 }
 0xa62   :  { %2399 = vmatpush1.bf16.msra.mxu0 %v4550_v21  ;;  %2440 = vmatpush1.bf16.msra.mxu1 %v4553_v16 }
 0xa63   :  { %2400 = vmatprep.subr.bf16.mxu0 %v4555_v22  ;;  %2441 = vmatprep.subr.bf16.mxu1 %v4557_v20 }
 0xa66   :  { %2401 = vmatpush1.bf16.msra.mxu0 %v4562_v56  ;;  %2442 = vmatpush1.bf16.msra.mxu1 %v4565_v14 }
 0xa67   :  { %2402 = vmatprep.subr.bf16.mxu0 %v4567_v30  ;;  %2443 = vmatprep.subr.bf16.mxu1 %v4569_v54 }
 0xa6a   :  { %2403 = vmatpush1.bf16.msra.mxu0 %v4574_v55  ;;  %2444 = vmatpush1.bf16.msra.mxu1 %v4577_v35 }
 0xa6b   :  { %2404 = vmatprep.subr.bf16.mxu0 %v4579_v7  ;;  %2445 = vmatprep.subr.bf16.mxu1 %v4581_v52 }
 0xa6e   :  { %2405 = vmatpush1.bf16.msra.mxu0 %v4586_v53  ;;  %2446 = vmatpush1.bf16.msra.mxu1 %v4589_v4 }
 0xa6f   :  { %2488 = vmatprep.subr.bf16.mxu0 %v4497_v59  ;;  %2529 = vmatprep.subr.bf16.mxu1 %v4501_v41 }
 0xb24   :  { %v2326_v43 = vpop.f32.mrb[52].mxu0  ;;  %v2367_v12 = vpop.f32.mrb[52].mxu1 }
 0xb25   :  { %v2327_v10 = vadd.f32 %v2326_v43, %v4944_v17  ;;  %v2328_v40 = vpop.f32.mrb[53].mxu0  ;;  %v2369_v6 = vpop.f32.mrb[53].mxu1  ;;  %v2368_v9 = vadd.f32 %v2367_v12, %v4945_v5 }
 0xb26   :  { %v2329_v45 = vadd.f32 %v2328_v40, %v4946_v25  ;;  %v2330_v50 = vpop.f32.mrb[54].mxu0  ;;  %v2371_v8 = vpop.f32.mrb[54].mxu1  ;;  %v2370_v57 = vadd.f32 %v2369_v6, %v4947_v18 }
 0xb27   :  { %3275 = vtanh.f32 %v2327_v10  ;;  %v2331_v19 = vpop.f32.mrb[55].mxu0  ;;  %v2372_v13 = vpop.f32.mrb[55].mxu1 }
 0xb28   :  { %3277 = vtanh.f32 %v2329_v45 }
 0xb29   :  { %3279 = vtanh.f32 %v2368_v9 }
 0xb2a   :  { %3281 = vtanh.f32 %v2370_v57 }
 0xb31   :  { %v3276_v58 = vpop.eup %3275 }
 0xb32   :  { %v2378_v23 = vadd.f32 1.0, %v3276_v58  ;;  %v3278_v24 = vpop.eup %3277 }
 0xb33   :  { %v2380_v27 = vadd.f32 1.0, %v3278_v24  ;;  %v3280_v28 = vpop.eup %3279 }
 0xb34   :  { %v2379_v26 = vmul.f32 0.5, %v2378_v23  ;;  %v3282_v49 = vpop.eup %3281 }
 0xb35   :  { %v2381_v42 = vmul.f32 0.5, %v2380_v27  ;;  %v2382_v63 = vadd.f32 1.0, %v3282_v49 }
 0xb36   :  { %v2385_v44 = vmul.f32 %v3280_v28, %v2379_v26 }
 0xb37   :  { %v2384_v47 = vmul.f32 %v2381_v42, %v4636_v46  ;;  %v2383_v51 = vmul.f32 0.5, %v2382_v63 }
 0xb39   :  { %v4678_v48 = vadd.f32 %v2385_v44, %v2384_v47 }
 0xb3b   :  { %3283 = vtanh.f32 %v4678_v48 }
 0xb45   :  { %v3284_v15 = vpop.eup %3283 }
 0xb46   :  { %v2388_v43 = vmul.f32 %v3284_v15, %v2383_v51 }
 0xb48   :  { %v2389_v12 = vpack.c.bf16 %v2388_v43, %v2388_v43 }
 0xb4a   :  { %2423 = vmatmul.mubr.bf16.vlgmr.msra.gmra.mrb[56].mxu0 %v2389_v12  ;;  %2464 = vmatmul.mubr.bf16.vlgmr.msra.gmra.mrb[56].mxu1 %v2389_v12 }
 0xb4b   :  { %2489 = vmatpush1.bf16.msra.mxu0 %v4499_v60  ;;  %2530 = vmatpush1.bf16.msra.mxu1 %v4505_v61 }
 0xb4c   :  { %2490 = vmatprep.subr.bf16.mxu0 %v4507_v62  ;;  %2531 = vmatprep.subr.bf16.mxu1 %v4511_v0 }
 0xb4d   :  { %2520 = vmatprep.mubr.bf16.mxu0 %v4904_v11  ;;  %2561 = vmatprep.mubr.bf16.mxu1 %v4904_v11 }
 0xb4f   :  { %2491 = vmatpush1.bf16.msra.mxu0 %v4514_v1  ;;  %2532 = vmatpush1.bf16.msra.mxu1 %v4517_v2 }
 0xb50   :  { %2492 = vmatprep.subr.bf16.mxu0 %v4519_v29  ;;  %2533 = vmatprep.subr.bf16.mxu1 %v4521_v3 }
 0xb53   :  { %2493 = vmatpush1.bf16.msra.mxu0 %v4526_v31  ;;  %2534 = vmatpush1.bf16.msra.mxu1 %v4529_v32 }
 0xb54   :  { %2494 = vmatprep.subr.bf16.mxu0 %v4531_v33  ;;  %2535 = vmatprep.subr.bf16.mxu1 %v4533_v34 }
 0xb57   :  { %2495 = vmatpush1.bf16.msra.mxu0 %v4538_v36  ;;  %2536 = vmatpush1.bf16.msra.mxu1 %v4541_v37 }
 0xb58   :  { %2496 = vmatprep.subr.bf16.mxu0 %v4543_v38  ;;  %2537 = vmatprep.subr.bf16.mxu1 %v4545_v39 }
 0xb5b   :  { %2497 = vmatpush1.bf16.msra.mxu0 %v4550_v21  ;;  %2538 = vmatpush1.bf16.msra.mxu1 %v4553_v16 }
 0xb5c   :  { %2498 = vmatprep.subr.bf16.mxu0 %v4555_v22  ;;  %2539 = vmatprep.subr.bf16.mxu1 %v4557_v20 }
 0xb5f   :  { %2499 = vmatpush1.bf16.msra.mxu0 %v4562_v56  ;;  %2540 = vmatpush1.bf16.msra.mxu1 %v4565_v14 }
 0xb60   :  { %2500 = vmatprep.subr.bf16.mxu0 %v4567_v30  ;;  %2541 = vmatprep.subr.bf16.mxu1 %v4569_v54 }
 0xb63   :  { %2501 = vmatpush1.bf16.msra.mxu0 %v4574_v55  ;;  %2542 = vmatpush1.bf16.msra.mxu1 %v4577_v35 }
 0xb64   :  { %2502 = vmatprep.subr.bf16.mxu0 %v4579_v7  ;;  %2543 = vmatprep.subr.bf16.mxu1 %v4581_v52 }
 0xb67   :  { %2503 = vmatpush1.bf16.msra.mxu0 %v4586_v53  ;;  %2544 = vmatpush1.bf16.msra.mxu1 %v4589_v4 }
 0xb68   :  { %2586 = vmatprep.subr.bf16.mxu0 %v4497_v59  ;;  %2627 = vmatprep.subr.bf16.mxu1 %v4501_v41 }
 0xc1d   :  { %v2424_v46 = vpop.f32.mrb[56].mxu0  ;;  %v2465_v10 = vpop.f32.mrb[56].mxu1 }
 0xc1e   :  { %v2425_v40 = vadd.f32 %v2424_v46, %v4944_v17  ;;  %v2426_v6 = vpop.f32.mrb[57].mxu0  ;;  %v2467_v45 = vpop.f32.mrb[57].mxu1  ;;  %v2466_v19 = vadd.f32 %v2465_v10, %v4945_v5 }
 0xc1f   :  { %v2427_v50 = vadd.f32 %v2426_v6, %v4946_v25  ;;  %v2428_v8 = vpop.f32.mrb[58].mxu0  ;;  %v2469_v9 = vpop.f32.mrb[58].mxu1  ;;  %v2468_v58 = vadd.f32 %v2467_v45, %v4947_v18 }
 0xc20   :  { %3285 = vtanh.f32 %v2425_v40  ;;  %v2429_v13 = vpop.f32.mrb[59].mxu0  ;;  %v2470_v57 = vpop.f32.mrb[59].mxu1 }
 0xc21   :  { %3287 = vtanh.f32 %v2427_v50 }
 0xc22   :  { %3289 = vtanh.f32 %v2466_v19 }
 0xc23   :  { %3291 = vtanh.f32 %v2468_v58 }
 0xc2a   :  { %v3286_v23 = vpop.eup %3285 }
 0xc2b   :  { %v2476_v24 = vadd.f32 1.0, %v3286_v23  ;;  %v3288_v26 = vpop.eup %3287 }
 0xc2c   :  { %v2478_v28 = vadd.f32 1.0, %v3288_v26  ;;  %v3290_v42 = vpop.eup %3289 }
 0xc2d   :  { %v2477_v27 = vmul.f32 0.5, %v2476_v24  ;;  %v3292_v51 = vpop.eup %3291 }
 0xc2e   :  { %v2479_v44 = vmul.f32 0.5, %v2478_v28  ;;  %v2480_v15 = vadd.f32 1.0, %v3292_v51 }
 0xc2f   :  { %v2483_v47 = vmul.f32 %v3290_v42, %v2477_v27 }
 0xc30   :  { %v2482_v49 = vmul.f32 %v2479_v44, %v4678_v48  ;;  %v2481_v43 = vmul.f32 0.5, %v2480_v15 }
 0xc32   :  { %v4720_v63 = vadd.f32 %v2483_v47, %v2482_v49 }
 0xc34   :  { %3293 = vtanh.f32 %v4720_v63 }
 0xc3e   :  { %v3294_v12 = vpop.eup %3293 }
 0xc3f   :  { %v2486_v46 = vmul.f32 %v3294_v12, %v2481_v43 }
 0xc41   :  { %v2487_v10 = vpack.c.bf16 %v2486_v46, %v2486_v46 }
 0xc43   :  { %2521 = vmatmul.mubr.bf16.vlgmr.msra.gmra.mrb[60].mxu0 %v2487_v10  ;;  %2562 = vmatmul.mubr.bf16.vlgmr.msra.gmra.mrb[60].mxu1 %v2487_v10 }
 0xc44   :  { %2587 = vmatpush1.bf16.msra.mxu0 %v4499_v60  ;;  %2628 = vmatpush1.bf16.msra.mxu1 %v4505_v61 }
 0xc45   :  { %2588 = vmatprep.subr.bf16.mxu0 %v4507_v62  ;;  %2629 = vmatprep.subr.bf16.mxu1 %v4511_v0 }
 0xc46   :  { %2618 = vmatprep.mubr.bf16.mxu0 %v4904_v11  ;;  %2659 = vmatprep.mubr.bf16.mxu1 %v4904_v11 }
 0xc48   :  { %2589 = vmatpush1.bf16.msra.mxu0 %v4514_v1  ;;  %2630 = vmatpush1.bf16.msra.mxu1 %v4517_v2 }
 0xc49   :  { %2590 = vmatprep.subr.bf16.mxu0 %v4519_v29  ;;  %2631 = vmatprep.subr.bf16.mxu1 %v4521_v3 }
 0xc4c   :  { %2591 = vmatpush1.bf16.msra.mxu0 %v4526_v31  ;;  %2632 = vmatpush1.bf16.msra.mxu1 %v4529_v32 }
 0xc4d   :  { %2592 = vmatprep.subr.bf16.mxu0 %v4531_v33  ;;  %2633 = vmatprep.subr.bf16.mxu1 %v4533_v34 }
 0xc50   :  { %2593 = vmatpush1.bf16.msra.mxu0 %v4538_v36  ;;  %2634 = vmatpush1.bf16.msra.mxu1 %v4541_v37 }
 0xc51   :  { %2594 = vmatprep.subr.bf16.mxu0 %v4543_v38  ;;  %2635 = vmatprep.subr.bf16.mxu1 %v4545_v39 }
 0xc54   :  { %2595 = vmatpush1.bf16.msra.mxu0 %v4550_v21  ;;  %2636 = vmatpush1.bf16.msra.mxu1 %v4553_v16 }
 0xc55   :  { %2596 = vmatprep.subr.bf16.mxu0 %v4555_v22  ;;  %2637 = vmatprep.subr.bf16.mxu1 %v4557_v20 }
 0xc58   :  { %2597 = vmatpush1.bf16.msra.mxu0 %v4562_v56  ;;  %2638 = vmatpush1.bf16.msra.mxu1 %v4565_v14 }
 0xc59   :  { %2598 = vmatprep.subr.bf16.mxu0 %v4567_v30  ;;  %2639 = vmatprep.subr.bf16.mxu1 %v4569_v54 }
 0xc5c   :  { %2599 = vmatpush1.bf16.msra.mxu0 %v4574_v55  ;;  %2640 = vmatpush1.bf16.msra.mxu1 %v4577_v35 }
 0xc5d   :  { %2600 = vmatprep.subr.bf16.mxu0 %v4579_v7  ;;  %2641 = vmatprep.subr.bf16.mxu1 %v4581_v52 }
 0xc60   :  { %2601 = vmatpush1.bf16.msra.mxu0 %v4586_v53  ;;  %2642 = vmatpush1.bf16.msra.mxu1 %v4589_v4 }
 0xc61   :  { %2684 = vmatprep.subr.bf16.mxu0 %v4497_v59  ;;  %2725 = vmatprep.subr.bf16.mxu1 %v4501_v41 }
 0xd16   :  { %v2522_v48 = vpop.f32.mrb[60].mxu0  ;;  %v2563_v40 = vpop.f32.mrb[60].mxu1 }
 0xd17   :  { %v2523_v6 = vadd.f32 %v2522_v48, %v4944_v17  ;;  %v2524_v45 = vpop.f32.mrb[61].mxu0  ;;  %v2565_v50 = vpop.f32.mrb[61].mxu1  ;;  %v2564_v13 = vadd.f32 %v2563_v40, %v4945_v5 }
 0xd18   :  { %v2525_v8 = vadd.f32 %v2524_v45, %v4946_v25  ;;  %v2526_v9 = vpop.f32.mrb[62].mxu0  ;;  %v2567_v19 = vpop.f32.mrb[62].mxu1  ;;  %v2566_v23 = vadd.f32 %v2565_v50, %v4947_v18 }
 0xd19   :  { %3295 = vtanh.f32 %v2523_v6  ;;  %v2527_v57 = vpop.f32.mrb[63].mxu0  ;;  %v2568_v58 = vpop.f32.mrb[63].mxu1 }
 0xd1a   :  { %3297 = vtanh.f32 %v2525_v8 }
 0xd1b   :  { %3299 = vtanh.f32 %v2564_v13 }
 0xd1c   :  { %3301 = vtanh.f32 %v2566_v23 }
 0xd23   :  { %v3296_v24 = vpop.eup %3295 }
 0xd24   :  { %v2574_v26 = vadd.f32 1.0, %v3296_v24  ;;  %v3298_v27 = vpop.eup %3297 }
 0xd25   :  { %v2576_v42 = vadd.f32 1.0, %v3298_v27  ;;  %v3300_v44 = vpop.eup %3299 }
 0xd26   :  { %v2575_v28 = vmul.f32 0.5, %v2574_v26  ;;  %v3302_v43 = vpop.eup %3301 }
 0xd27   :  { %v2577_v47 = vmul.f32 0.5, %v2576_v42  ;;  %v2578_v12 = vadd.f32 1.0, %v3302_v43 }
 0xd28   :  { %v2581_v49 = vmul.f32 %v3300_v44, %v2575_v28 }
 0xd29   :  { %v2580_v51 = vmul.f32 %v2577_v47, %v4720_v63  ;;  %v2579_v46 = vmul.f32 0.5, %v2578_v12 }
 0xd2b   :  { %v4762_v15 = vadd.f32 %v2581_v49, %v2580_v51 }
 0xd2d   :  { %3303 = vtanh.f32 %v4762_v15 }
 0xd37   :  { %v3304_v10 = vpop.eup %3303 }
 0xd38   :  { %v2584_v48 = vmul.f32 %v3304_v10, %v2579_v46 }
 0xd3a   :  { %v2585_v40 = vpack.c.bf16 %v2584_v48, %v2584_v48 }
 0xd3c   :  { %2619 = vmatmul.mubr.bf16.vlgmr.msra.gmra.mrb[64].mxu0 %v2585_v40  ;;  %2660 = vmatmul.mubr.bf16.vlgmr.msra.gmra.mrb[64].mxu1 %v2585_v40 }
 0xd3d   :  { %2685 = vmatpush1.bf16.msra.mxu0 %v4499_v60  ;;  %2726 = vmatpush1.bf16.msra.mxu1 %v4505_v61 }
 0xd3e   :  { %2686 = vmatprep.subr.bf16.mxu0 %v4507_v62  ;;  %2727 = vmatprep.subr.bf16.mxu1 %v4511_v0 }
 0xd3f   :  { %2716 = vmatprep.mubr.bf16.mxu0 %v4904_v11  ;;  %2757 = vmatprep.mubr.bf16.mxu1 %v4904_v11 }
 0xd41   :  { %2687 = vmatpush1.bf16.msra.mxu0 %v4514_v1  ;;  %2728 = vmatpush1.bf16.msra.mxu1 %v4517_v2 }
 0xd42   :  { %2688 = vmatprep.subr.bf16.mxu0 %v4519_v29  ;;  %2729 = vmatprep.subr.bf16.mxu1 %v4521_v3 }
 0xd45   :  { %2689 = vmatpush1.bf16.msra.mxu0 %v4526_v31  ;;  %2730 = vmatpush1.bf16.msra.mxu1 %v4529_v32 }
 0xd46   :  { %2690 = vmatprep.subr.bf16.mxu0 %v4531_v33  ;;  %2731 = vmatprep.subr.bf16.mxu1 %v4533_v34 }
 0xd49   :  { %2691 = vmatpush1.bf16.msra.mxu0 %v4538_v36  ;;  %2732 = vmatpush1.bf16.msra.mxu1 %v4541_v37 }
 0xd4a   :  { %2692 = vmatprep.subr.bf16.mxu0 %v4543_v38  ;;  %2733 = vmatprep.subr.bf16.mxu1 %v4545_v39 }
 0xd4d   :  { %2693 = vmatpush1.bf16.msra.mxu0 %v4550_v21  ;;  %2734 = vmatpush1.bf16.msra.mxu1 %v4553_v16 }
 0xd4e   :  { %2694 = vmatprep.subr.bf16.mxu0 %v4555_v22  ;;  %2735 = vmatprep.subr.bf16.mxu1 %v4557_v20 }
 0xd51   :  { %2695 = vmatpush1.bf16.msra.mxu0 %v4562_v56  ;;  %2736 = vmatpush1.bf16.msra.mxu1 %v4565_v14 }
 0xd52   :  { %2696 = vmatprep.subr.bf16.mxu0 %v4567_v30  ;;  %2737 = vmatprep.subr.bf16.mxu1 %v4569_v54 }
 0xd55   :  { %2697 = vmatpush1.bf16.msra.mxu0 %v4574_v55  ;;  %2738 = vmatpush1.bf16.msra.mxu1 %v4577_v35 }
 0xd56   :  { %2698 = vmatprep.subr.bf16.mxu0 %v4579_v7  ;;  %2739 = vmatprep.subr.bf16.mxu1 %v4581_v52 }
 0xd59   :  { %2699 = vmatpush1.bf16.msra.mxu0 %v4586_v53  ;;  %2740 = vmatpush1.bf16.msra.mxu1 %v4589_v4 }
 0xd5a   :  { %2782 = vmatprep.subr.bf16.mxu0 %v4497_v59  ;;  %2823 = vmatprep.subr.bf16.mxu1 %v4501_v41 }
 0xe0f   :  { %v2620_v63 = vpop.f32.mrb[64].mxu0  ;;  %v2661_v6 = vpop.f32.mrb[64].mxu1 }
 0xe10   :  { %v2621_v45 = vadd.f32 %v2620_v63, %v4944_v17  ;;  %v2622_v50 = vpop.f32.mrb[65].mxu0  ;;  %v2663_v8 = vpop.f32.mrb[65].mxu1  ;;  %v2662_v57 = vadd.f32 %v2661_v6, %v4945_v5 }
 0xe11   :  { %v2623_v9 = vadd.f32 %v2622_v50, %v4946_v25  ;;  %v2624_v19 = vpop.f32.mrb[66].mxu0  ;;  %v2665_v13 = vpop.f32.mrb[66].mxu1  ;;  %v2664_v59 = vadd.f32 %v2663_v8, %v4947_v18 }
 0xe12   :  { %3305 = vtanh.f32 %v2621_v45  ;;  %v2625_v58 = vpop.f32.mrb[67].mxu0  ;;  %v2666_v23 = vpop.f32.mrb[67].mxu1 }
 0xe13   :  { %3307 = vtanh.f32 %v2623_v9 }
 0xe14   :  { %3309 = vtanh.f32 %v2662_v57 }
 0xe15   :  { %3311 = vtanh.f32 %v2664_v59 }
 0xe1c   :  { %v3306_v41 = vpop.eup %3305 }
 0xe1d   :  { %v2672_v24 = vadd.f32 1.0, %v3306_v41  ;;  %v3308_v26 = vpop.eup %3307 }
 0xe1e   :  { %v2674_v28 = vadd.f32 1.0, %v3308_v26  ;;  %v3310_v42 = vpop.eup %3309 }
 0xe1f   :  { %v2673_v27 = vmul.f32 0.5, %v2672_v24  ;;  %v3312_v43 = vpop.eup %3311 }
 0xe20   :  { %v2675_v44 = vmul.f32 0.5, %v2674_v28  ;;  %v2676_v12 = vadd.f32 1.0, %v3312_v43 }
 0xe21   :  { %v2679_v47 = vmul.f32 %v3310_v42, %v2673_v27 }
 0xe22   :  { %v2678_v49 = vmul.f32 %v2675_v44, %v4762_v15  ;;  %v2677_v46 = vmul.f32 0.5, %v2676_v12 }
 0xe24   :  { %v4804_v51 = vadd.f32 %v2679_v47, %v2678_v49  ;;  %v4948_v49 = vmov 0.0  }
 0xe26   :  { %3313 = vtanh.f32 %v4804_v51 }
 0xe30   :  { %v3314_v10 = vpop.eup %3313 }
 0xe31   :  { %v2682_v48 = vmul.f32 %v3314_v10, %v2677_v46 }
 0xe33   :  { %v2683_v40 = vpack.c.bf16 %v2682_v48, %v2682_v48 }
 0xe35   :  { %2717 = vmatmul.mubr.bf16.vlgmr.msra.gmra.mrb[68].mxu0 %v2683_v40  ;;  %2758 = vmatmul.mubr.bf16.vlgmr.msra.gmra.mrb[68].mxu1 %v2683_v40 }
 0xe36   :  { %2783 = vmatpush1.bf16.msra.mxu0 %v4499_v60  ;;  %2824 = vmatpush1.bf16.msra.mxu1 %v4505_v61 }
 0xe37   :  { %2784 = vmatprep.subr.bf16.mxu0 %v4507_v62  ;;  %2825 = vmatprep.subr.bf16.mxu1 %v4511_v0 }
 0xe38   :  { %2814 = vmatprep.mubr.bf16.mxu0 %v4904_v11  ;;  %2855 = vmatprep.mubr.bf16.mxu1 %v4904_v11 }
 0xe3a   :  { %2785 = vmatpush1.bf16.msra.mxu0 %v4514_v1  ;;  %2826 = vmatpush1.bf16.msra.mxu1 %v4517_v2 }
 0xe3b   :  { %2786 = vmatprep.subr.bf16.mxu0 %v4519_v29  ;;  %2827 = vmatprep.subr.bf16.mxu1 %v4521_v3 }
 0xe3e   :  { %2787 = vmatpush1.bf16.msra.mxu0 %v4526_v31  ;;  %2828 = vmatpush1.bf16.msra.mxu1 %v4529_v32 }
 0xe3f   :  { %2788 = vmatprep.subr.bf16.mxu0 %v4531_v33  ;;  %2829 = vmatprep.subr.bf16.mxu1 %v4533_v34 }
 0xe42   :  { %2789 = vmatpush1.bf16.msra.mxu0 %v4538_v36  ;;  %2830 = vmatpush1.bf16.msra.mxu1 %v4541_v37 }
 0xe43   :  { %2790 = vmatprep.subr.bf16.mxu0 %v4543_v38  ;;  %2831 = vmatprep.subr.bf16.mxu1 %v4545_v39 }
 0xe46   :  { %2791 = vmatpush1.bf16.msra.mxu0 %v4550_v21  ;;  %2832 = vmatpush1.bf16.msra.mxu1 %v4553_v16 }
 0xe47   :  { %2792 = vmatprep.subr.bf16.mxu0 %v4555_v22  ;;  %2833 = vmatprep.subr.bf16.mxu1 %v4557_v20 }
 0xe4a   :  { %2793 = vmatpush1.bf16.msra.mxu0 %v4562_v56  ;;  %2834 = vmatpush1.bf16.msra.mxu1 %v4565_v14 }
 0xe4b   :  { %2794 = vmatprep.subr.bf16.mxu0 %v4567_v30  ;;  %2835 = vmatprep.subr.bf16.mxu1 %v4569_v54 }
 0xe4e   :  { %2795 = vmatpush1.bf16.msra.mxu0 %v4574_v55  ;;  %2836 = vmatpush1.bf16.msra.mxu1 %v4577_v35 }
 0xe4f   :  { %2796 = vmatprep.subr.bf16.mxu0 %v4579_v7  ;;  %2837 = vmatprep.subr.bf16.mxu1 %v4581_v52 }
 0xe52   :  { %2797 = vmatpush1.bf16.msra.mxu0 %v4586_v53  ;;  %2838 = vmatpush1.bf16.msra.mxu1 %v4589_v4 }
 0xe53   :  { %3071 = vmatprep.subr.bf16.mxu0 %v4948_v49 }
 0xf08   :  { %v2718_v11 = vpop.f32.mrb[68].mxu0  ;;  %v2759_v60 = vpop.f32.mrb[68].mxu1 }
 0xf09   :  { %v2719_v61 = vadd.f32 %v2718_v11, %v4944_v17  ;;  %v2720_v62 = vpop.f32.mrb[69].mxu0  ;;  %v2761_v0 = vpop.f32.mrb[69].mxu1  ;;  %v2760_v3 = vadd.f32 %v2759_v60, %v4945_v5 }
 0xf0a   :  { %v2721_v1 = vadd.f32 %v2720_v62, %v4946_v25  ;;  %v2722_v2 = vpop.f32.mrb[70].mxu0  ;;  %v2763_v29 = vpop.f32.mrb[70].mxu1  ;;  %v2762_v33 = vadd.f32 %v2761_v0, %v4947_v18 }
 0xf0b   :  { %3315 = vtanh.f32 %v2719_v61  ;;  %v2723_v31 = vpop.f32.mrb[71].mxu0  ;;  %v2764_v32 = vpop.f32.mrb[71].mxu1 }
 0xf0c   :  { %3317 = vtanh.f32 %v2721_v1 }
 0xf0d   :  { %3319 = vtanh.f32 %v2760_v3 }
 0xf0e   :  { %3321 = vtanh.f32 %v2762_v33 }
 0xf15   :  { %v3316_v34 = vpop.eup %3315 }
 0xf16   :  { %v2770_v36 = vadd.f32 1.0, %v3316_v34  ;;  %v3318_v37 = vpop.eup %3317 }
 0xf17   :  { %v2772_v39 = vadd.f32 1.0, %v3318_v37  ;;  %v3320_v21 = vpop.eup %3319 }
 0xf18   :  { %v2771_v38 = vmul.f32 0.5, %v2770_v36  ;;  %v3322_v14 = vpop.eup %3321 }
 0xf19   :  { %v2773_v16 = vmul.f32 0.5, %v2772_v39  ;;  %v2774_v30 = vadd.f32 1.0, %v3322_v14 }
 0xf1a   :  { %v2777_v22 = vmul.f32 %v3320_v21, %v2771_v38 }
 0xf1b   :  { %v2776_v20 = vmul.f32 %v2773_v16, %v4804_v51  ;;  %v2775_v54 = vmul.f32 0.5, %v2774_v30 }
 0xf1d   :  { %v2778_v56 = vadd.f32 %v2777_v22, %v2776_v20 }
 0xf1f   :  { %3323 = vtanh.f32 %v2778_v56 }
 0xf29   :  { %v3324_v55 = vpop.eup %3323 }
 0xf2a   :  { %v2780_v35 = vmul.f32 %v3324_v55, %v2775_v54 }
 0xf2c   :  { %v2781_v7 = vpack.c.bf16 %v2780_v35, %v2780_v35 }
 0xf2e   :  { %2815 = vmatmul.mubr.bf16.vlgmr.msra.gmra.mrb[72].mxu0 %v2781_v7  ;;  %2856 = vmatmul.mubr.bf16.vlgmr.msra.gmra.mrb[72].mxu1 %v2781_v7 }
0x1001   :  { %v2816_v52 = vpop.f32.mrb[72].mxu0  ;;  %v2857_v53 = vpop.f32.mrb[72].mxu1 }
0x1002   :  { %v2817_v4 = vadd.f32 %v2816_v52, %v4944_v17  ;;  %v2818_v15 = vpop.f32.mrb[73].mxu0  ;;  %v2859_v63 = vpop.f32.mrb[73].mxu1  ;;  %v2858_v8 = vadd.f32 %v2857_v53, %v4945_v5 }
0x1003   :  { %v2819_v6 = vadd.f32 %v2818_v15, %v4946_v25  ;;  %v2820_v45 = vpop.f32.mrb[74].mxu0  ;;  %v2861_v50 = vpop.f32.mrb[74].mxu1  ;;  %v2860_v13 = vadd.f32 %v2859_v63, %v4947_v18 }
0x1004   :  { %3325 = vtanh.f32 %v2817_v4  ;;  %v2821_v9 = vpop.f32.mrb[75].mxu0  ;;  %v2862_v19 = vpop.f32.mrb[75].mxu1 }
0x1005   :  { %3327 = vtanh.f32 %v2819_v6 }
0x1006   :  { %3329 = vtanh.f32 %v2858_v8 }
0x1007   :  { %3331 = vtanh.f32 %v2860_v13 }
0x100e   :  { %v3326_v57 = vpop.eup %3325 }
0x100f   :  { %v2868_v58 = vadd.f32 1.0, %v3326_v57  ;;  %v3328_v23 = vpop.eup %3327 }
0x1010   :  { %v2870_v17 = vadd.f32 1.0, %v3328_v23  ;;  %v3330_v41 = vpop.eup %3329 }
0x1011   :  { %v2869_v59 = vmul.f32 0.5, %v2868_v58  ;;  %v3332_v28 = vpop.eup %3331 }
0x1012   :  { %v2871_v24 = vmul.f32 0.5, %v2870_v17  ;;  %v2872_v5 = vadd.f32 1.0, %v3332_v28 }
0x1013   :  { %v2875_v25 = vmul.f32 %v3330_v41, %v2869_v59 }
0x1014   :  { %v2874_v26 = vmul.f32 %v2871_v24, %v2778_v56  ;;  %v2873_v42 = vmul.f32 0.5, %v2872_v5 }
0x1016   :  { %v2876_v27 = vadd.f32 %v2875_v25, %v2874_v26 }
0x1018   :  { %3333 = vtanh.f32 %v2876_v27 }
0x1022   :  { %v3334_v44 = vpop.eup %3333 }
0x1023   :  { %v2878_v47 = vmul.f32 %v3334_v44, %v2873_v42 }
0x1024   :  { %3339 = dma.done.wait [#allocation6 + $0x2], 1024 }
0x1025   :  { %3340 = vsyncadd [#allocation6 + $0x2], 4294966272  ;;  %v4949_v18 = vld [vmem:[#allocation13_spill] sm:$0xff]  ;;  %vm3344_vm4 = vmmov 0   ;;  %v4950_v51 = vld [vmem:[#allocation14_spill] sm:$0xff]  ;;  %v2882_v40 = vpack.c.bf16 %v2878_v47, %v2878_v47 }
0x1026   :  { %3072 = vmatpush3.bf16.msra.mxu0 %v4949_v18  ;;  %3087 = vmatprep.mubr.msk.bf16.mxu0 %vm3344_vm4, %v4948_v49  ;;  %v4951_v43 = vld [vmem:[#allocation15_spill] sm:$0xff]  ;;  %v4952_v12 = vld [vmem:[#allocation16_spill] sm:$0xff]  ;;  %v4953_v46 = vld [vmem:[#allocation17_spill] sm:$0xff] }
0x1027   :  { %3073 = vmatprep.subr.bf16.mxu0 %v4948_v49  ;;  %v4954_v10 = vld [vmem:[#allocation18_spill] sm:$0xff]  ;;  %v4955_v48 = vld [vmem:[#allocation19_spill] sm:$0xff]  ;;  %v4956_v11 = vld [vmem:[#allocation20_spill] sm:$0xff] }
0x1028   :  { %v3058_v60 = vld [vmem:[%s4876_s5] ss:$0 sm:$0xff] }
0x102a   :  { %3074 = vmatpush3.bf16.msra.mxu0 %v4950_v51 }
0x102b   :  { %3075 = vmatprep.subr.bf16.mxu0 %v4948_v49 }
0x102e   :  { %3076 = vmatpush3.bf16.msra.mxu0 %v4951_v43 }
0x102f   :  { %3077 = vmatprep.subr.bf16.mxu0 %v4948_v49 }
0x1032   :  { %3078 = vmatpush3.bf16.msra.mxu0 %v4952_v12 }
0x1033   :  { %3079 = vmatprep.subr.bf16.mxu0 %v4948_v49 }
0x1036   :  { %3080 = vmatpush3.bf16.msra.mxu0 %v4953_v46 }
0x1037   :  { %3081 = vmatprep.subr.bf16.mxu0 %v4948_v49 }
0x103a   :  { %3082 = vmatpush3.bf16.msra.mxu0 %v4954_v10 }
0x103b   :  { %3083 = vmatprep.subr.bf16.mxu0 %v4948_v49 }
0x103e   :  { %3084 = vmatpush3.bf16.msra.mxu0 %v4955_v48 }
0x103f   :  { %3085 = vmatprep.subr.bf16.mxu0 %v4948_v49 }
0x1042   :  { %3086 = vmatpush3.bf16.msra.mxu0 %v4956_v11 }
0x1045   :  { %3088 = vmatmul.mubr.bf16.vlgmr.msra.gmra.mrb[76].mxu0 %v2882_v40 }
0x1118   :  { %v2932_v61 = vpop.f32.mrb[76].mxu0 }
0x1119   :  { %v2933_v62 = vadd.f32 %v3058_v60, %v2932_v61  ;;  %v3089_v0 = vpop.f32.mrb[77].mxu0 }
0x111a   :  { %v2935_v1 = vpop.f32.mrb[78].mxu0 }
0x111b   :  { %2938 = vst [vmem:[%s4880_s9] sm:$0xff] %v2933_v62  ;;  %v3090_v2 = vpop.f32.mrb[79].mxu0 }
0x111c   :  { %2943 = vsyncmov [#allocation6] }
0x111f   :  { %s2944_s7 = vpop.sfrf %2943 }
0x1120   :  { %p3059_p0 = scmp.ne.s32.totalorder %s2944_s7, 0 }
0x1122   :  { %2948 = shalt.err (%p3059_p0)  }
0x1123   :  { %2950 = vsyncmov [#allocation6 + $0x1] }
0x1126   :  { %s2951_s29 = vpop.sfrf %2950 }
0x1127   :  { %p3060_p1 = scmp.ne.s32.totalorder %s2951_s29, 0 }
0x1129   :  { %2955 = shalt.err (%p3060_p1)  }
0x112a   :  { %2957 = vsyncmov [#allocation6 + $0x2] }
0x112d   :  { %s2958_s30 = vpop.sfrf %2957 }
0x112e   :  { %p3061_p2 = scmp.ne.s32.totalorder %s2958_s30, 0 }
0x1130   :  { %2962 = shalt.err (%p3061_p2)  }

</bundles_post_ra>
